<compile_context>
chip_gen: v6e
topology: v6e:2x2x1
jax: 0.10.0
libtpu: 0.0.40
codegen_flags: <defaults>
</compile_context>

<pallas_src>
import jax
import jax.numpy as jnp
import numpy as np
from jax.experimental import pallas as pl
from jax.experimental.pallas import tpu as pltpu


# ----------------------------- Pallas kernel -------------------------------


def fused_seg_head_kernel(xp_ref, w1_ref, b1_ref, w2_ref, b2_ref,
                          ahb_ref, awt_ref, out_ref):
    """conv1(3x3)+ReLU+conv2(1x1)+bilinear upsample for one batch element.

    xp_ref : (G+2, G+2, C)    zero-padded NHWC activation, bf16
    w1_ref : (9, C, M)        conv1 weights (tap-major HWIO), bf16
    b1_ref : (1, M)           f32
    w2_ref : (M, NC)          conv2 (1x1) weights, bf16
    b2_ref : (1, NC)          f32
    ahb_ref: (NC*Hout, G*NC)  H-interp + class de-interleave block matrix, bf16
    awt_ref: (G, Wout)        W-interp matrix (transposed), bf16
    out_ref: (NC*Hout, Wout)  f32, rows in NCHW order (c*Hout + ho)
    """
    Gp = xp_ref.shape[0]
    G = Gp - 2
    C = xp_ref.shape[2]
    M = w1_ref.shape[2]

    xp = xp_ref[...]                                     # (G+2, G+2, C) bf16

    # conv1: 3x3 "same" conv as 9 shifted (G*G, C) @ (C, M) MXU matmuls with
    # f32 accumulation.  No HBM im2col, no giant K=9*C patch tile in VMEM.
    acc = jnp.zeros((G * G, M), jnp.float32)
    for dy in range(3):
        slab = xp[dy:dy + G]                             # (G, G+2, C)
        for dx in range(3):
            win = slab[:, dx:dx + G, :].reshape(G * G, C)
            acc = acc + jnp.dot(win, w1_ref[dy * 3 + dx],
                                preferred_element_type=jnp.float32)
    h = jnp.maximum(acc + b1_ref[...], 0.0)              # bias + ReLU in f32

    # conv2: 1x1 conv + bias (HW rows, class lanes); bf16 operands, f32 acc.
    y = jnp.dot(h.astype(jnp.bfloat16), w2_ref[...],
                preferred_element_type=jnp.float32) + b2_ref[...]   # (HW, NC)

    # Re-layout (HW, NC) -> (G*NC, G): aligned sublane slices + lane concat +
    # one small 2-D transpose (the only relayout in the fused pipeline; <5%).
    z = jnp.concatenate([y[r * G:(r + 1) * G, :] for r in range(G)],
                        axis=1)                          # (G, G*NC)
    zt = z.T.astype(jnp.bfloat16)                        # (G*NC, G)

    # Separable bilinear upsample (align_corners=True):
    # 1) W-interpolation batched over every (row, class) pair.
    tmp = jnp.dot(zt, awt_ref[...],
                  preferred_element_type=jnp.float32)    # (G*NC, Wout)
    # 2) H-interpolation + per-class de-interleave as one block-structured
    #    matmul; rows come out directly in NCHW (c*Hout + ho) order.
    out_ref[...] = jnp.dot(ahb_ref[...], tmp.astype(jnp.bfloat16),
                           preferred_element_type=jnp.float32)


# ------------------------------ JAX wrappers --------------------------------


def fused_seg_head(xp, w1, b1, w2, b2, ahb, awt):
    """One pallas_call over grid=(B,): conv1+ReLU+conv2+bilinear upsample."""
    B, Gp, _, C = xp.shape
    M = w1.shape[2]
    NC = w2.shape[1]
    G, Wout = awt.shape
    Hout = ahb.shape[0] // NC

    def const_spec(shape):
        # Grid-invariant operand: constant index map + single buffer
        # (no re-DMA to hide across grid steps; saves VMEM headroom).
        return pl.BlockSpec(shape, lambda *_: (0,) * len(shape),
                            pipeline_mode=pl.Buffered(1))

    return pl.pallas_call(
        fused_seg_head_kernel,
        out_shape=jax.ShapeDtypeStruct((B, NC * Hout, Wout), jnp.float32),
        grid_spec=pltpu.PrefetchScalarGridSpec(
            num_scalar_prefetch=0,
            grid=(B,),
            in_specs=[
                pl.BlockSpec((None, Gp, Gp, C), lambda b: (b, 0, 0, 0)),
                const_spec((9, C, M)),
                const_spec((1, M)),
                const_spec((M, NC)),
                const_spec((1, NC)),
                const_spec(ahb.shape),
                const_spec((G, Wout)),
            ],
            out_specs=pl.BlockSpec((None, NC * Hout, Wout),
                                   lambda b: (b, 0, 0)),
        ),
        compiler_params=pltpu.CompilerParams(
            # TODO(synk): on v7x with B == 1, add a second "parallel" grid axis
            # (e.g. split the token rows) so both TensorCores get work.
            dimension_semantics=("parallel",),   # batch axis -> 2 TCs on v7x
            vmem_limit_bytes=48 * 1024 * 1024),
    )(xp, w1, b1, w2, b2, ahb, awt)


def bilinear_matrix(n_in, n_out):
    """(n_out, n_in) interpolation matrix, PyTorch bilinear align_corners=True
    (the module passes align_corners=True explicitly)."""
    if n_in == 1:
        return jnp.ones((n_out, 1), jnp.float32)
    src = jnp.arange(n_out, dtype=jnp.float32) * (n_in - 1) / (n_out - 1)
    i0 = jnp.clip(jnp.floor(src).astype(jnp.int32), 0, n_in - 1)
    i1 = jnp.clip(i0 + 1, 0, n_in - 1)
    frac = src - i0.astype(jnp.float32)
    rows = jnp.arange(n_out)
    A = jnp.zeros((n_out, n_in), jnp.float32)
    A = A.at[rows, i0].add(1.0 - frac)
    A = A.at[rows, i1].add(frac)
    return A


def build_upsample_row_matrix(a_h, num_classes):
    """(NC*Hout, H*NC) block matrix: M[c*Hout+ho, h*NC+c'] = a_h[ho,h]*(c==c').

    Folds the H-interpolation and the class de-interleave into one matmul so
    the kernel writes a lane-dense NCHW block directly.
    """
    Hout, H = a_h.shape
    eye = jnp.eye(num_classes, dtype=a_h.dtype)
    big = jnp.einsum("oh,cd->cohd", a_h, eye)            # (NC, Hout, H, NC)
    return big.reshape(num_classes * Hout, H * num_classes)


def segmentation_head_forward(last_hidden_state, params, grid_hw, scale=14):
    B, S, C = last_hidden_state.shape
    G = grid_hw
    assert S == G * G + 1
    M = params["w1"].shape[-1]
    NC = params["w2"].shape[-1]

    # Token glue: drop CLS.  PyTorch's NCHW reshape followed by our NHWC view
    # collapses to a single reshape (no transpose HLOs).
    x_nhwc = last_hidden_state[:, 1:, :].reshape(B, G, G, C)

    # Zero pad once for the 3x3 "same" conv and cast to bf16 at the kernel
    # boundary (full-rate MXU, half the per-batch DMA).  Accumulation is f32.
    xp = jnp.pad(x_nhwc, ((0, 0), (1, 1), (1, 1), (0, 0))).astype(jnp.bfloat16)

    w1 = params["w1"].reshape(9, C, M).astype(jnp.bfloat16)      # tap-major HWIO
    w2 = params["w2"].astype(jnp.bfloat16)                       # (M, NC)
    b1 = params["b1"].reshape(1, M).astype(jnp.float32)
    b2 = params["b2"].reshape(1, NC).astype(jnp.float32)

    a = bilinear_matrix(G, G * scale)                            # (Hout, G)
    ahb = build_upsample_row_matrix(a, NC).astype(jnp.bfloat16)  # (NC*Hout, G*NC)
    awt = a.T.astype(jnp.bfloat16)                               # (G, Wout)

    out2d = fused_seg_head(xp, w1, b1, w2, b2, ahb, awt)  # (B, NC*Hout, Wout)
    return out2d.reshape(B, NC, G * scale, G * scale)     # free leading reshape


# --------------------------------- main --------------------------------------

if __name__ == "__main__":
    # Scaled-down but structurally identical config (module hard-codes
    # C=768, G=32; here C=32, G=16 keeps the demo small).
    B = 2          # batch
    C = 32         # in_channels (stand-in for 768)
    G = 16         # token grid (stand-in for 32x32)
    M = 256        # conv1 output channels (as in the module)
    NC = 4         # num_classes
    SCALE = 14     # upsample scale_factor

    key = jax.random.PRNGKey(0)
    k1, k2, k3, k4, k5 = jax.random.split(key, 5)

    # Deterministic synthetic parameters (PyTorch OIHW shapes, then repacked).
    w1_oihw = jax.random.normal(k1, (M, C, 3, 3), jnp.float32) * 0.05
    b1 = jax.random.normal(k2, (M,), jnp.float32) * 0.05
    w2_oihw = jax.random.normal(k3, (NC, M, 1, 1), jnp.float32) * 0.05
    b2 = jax.random.normal(k4, (NC,), jnp.float32) * 0.05

    params = {
        "w1": jnp.transpose(w1_oihw, (2, 3, 1, 0)),   # (3, 3, C, M)  HWIO
        "b1": b1,
        "w2": w2_oihw[:, :, 0, 0].T,                  # (M, NC)
        "b2": b2,
    }

    # Synthetic ViT output: (B, 1 + G*G, C)  (CLS token + patch tokens).
    last_hidden_state = jax.random.normal(k5, (B, G * G + 1, C), jnp.float32)

    fwd = jax.jit(segmentation_head_forward, static_argnums=(2, 3))
    out = jax.block_until_ready(fwd(last_hidden_state, params, G, SCALE))
    assert out.shape == (B, NC, G * SCALE, G * SCALE)

    # ---- pure-JAX f32 reference for correctness check ----
    # The kernel runs the matmuls with bf16 operands (f32 accumulation), so the
    # tolerance is bf16-level rather than the f32-level 2e-3 of the old kernel.
    x_tok = last_hidden_state[:, 1:, :]
    x_nchw = jnp.transpose(x_tok, (0, 2, 1)).reshape(B, C, G, G)
    ref = jax.lax.conv_general_dilated(
        x_nchw, w1_oihw, (1, 1), "SAME",
        dimension_numbers=("NCHW", "OIHW", "NCHW")) + b1[None, :, None, None]
    ref = jnp.maximum(ref, 0.0)
    ref = jax.lax.conv_general_dilated(
        ref, w2_oihw, (1, 1), "SAME",
        dimension_numbers=("NCHW", "OIHW", "NCHW")) + b2[None, :, None, None]
    A = bilinear_matrix(G, G * SCALE)
    ref = jnp.einsum("oh,pw,bchw->bcop", A, A, ref)

    np.testing.assert_allclose(np.asarray(out), np.asarray(ref),
                               rtol=3e-2, atol=3e-2)
    print("KERNEL_OK")
</pallas_src>

<mosaic_0001>
module attributes {stable_mosaic.version = 11 : i64} {
  func.func private @main(%arg0: i32) attributes {dimension_semantics = [#tpu.dimension_semantics<core_parallel>], iteration_bounds = array<i64: 2>, tpu.core_type = #tpu.core_type<sc_scalar_subcore>, window_params = []} {
    return
  }
}

module attributes {stable_mosaic.version = 11 : i64} {
  func.func private @main(%arg0: i32) attributes {dimension_semantics = [#tpu.dimension_semantics<core_parallel>], iteration_bounds = array<i64: 2>, tpu.core_type = #tpu.core_type<sc_scalar_subcore>, window_params = []} {
    return
  }
}

module attributes {stable_mosaic.version = 11 : i64} {
  func.func @fused_seg_head_kernel(%arg0: i32, %arg1: memref<1x18x18x32xbf16, #tpu.memory_space<vmem>>, %arg2: memref<9x32x256xbf16, #tpu.memory_space<vmem>>, %arg3: memref<1x256xf32, #tpu.memory_space<vmem>>, %arg4: memref<256x4xbf16, #tpu.memory_space<vmem>>, %arg5: memref<1x4xf32, #tpu.memory_space<vmem>>, %arg6: memref<896x64xbf16, #tpu.memory_space<vmem>>, %arg7: memref<16x224xbf16, #tpu.memory_space<vmem>>, %arg8: memref<1x896x224xf32, #tpu.memory_space<vmem>>) attributes {dimension_semantics = [#tpu.dimension_semantics<parallel>], iteration_bounds = array<i64: 2>, scalar_prefetch = 0 : i64, scratch_operands = 0 : i64, tpu.core_type = #tpu.core_type<tc>, window_params = [{transform_indices = @transform_0, window_bounds = array<i64: 1, 18, 18, 32>}, {pipeline_mode = #tpu.pipeline_mode<synchronous>, transform_indices = @transform_1, window_bounds = array<i64: 9, 32, 256>}, {pipeline_mode = #tpu.pipeline_mode<synchronous>, transform_indices = @transform_2, window_bounds = array<i64: 1, 256>}, {pipeline_mode = #tpu.pipeline_mode<synchronous>, transform_indices = @transform_3, window_bounds = array<i64: 256, 4>}, {pipeline_mode = #tpu.pipeline_mode<synchronous>, transform_indices = @transform_4, window_bounds = array<i64: 1, 4>}, {pipeline_mode = #tpu.pipeline_mode<synchronous>, transform_indices = @transform_5, window_bounds = array<i64: 896, 64>}, {pipeline_mode = #tpu.pipeline_mode<synchronous>, transform_indices = @transform_6, window_bounds = array<i64: 16, 224>}, {transform_indices = @transform_7, window_bounds = array<i64: 1, 896, 224>}]} {
    %c0 = arith.constant 0 : index
    %c0_0 = arith.constant 0 : index
    %c0_1 = arith.constant 0 : index
    %c0_2 = arith.constant 0 : index
    %0 = vector.load %arg1[%c0, %c0_0, %c0_1, %c0_2] : memref<1x18x18x32xbf16, #tpu.memory_space<vmem>>, vector<1x18x18x32xbf16>
    %1 = vector.shape_cast %0 : vector<1x18x18x32xbf16> to vector<18x18x32xbf16>
    %cst = arith.constant 0.000000e+00 : f32
    %2 = vector.broadcast %cst : f32 to vector<256x256xf32>
    %3 = vector.extract_strided_slice %1 {offsets = [0, 0, 0], sizes = [16, 18, 32], strides = [1, 1, 1]} : vector<18x18x32xbf16> to vector<16x18x32xbf16>
    %4 = vector.extract_strided_slice %3 {offsets = [0, 0, 0], sizes = [16, 16, 32], strides = [1, 1, 1]} : vector<16x18x32xbf16> to vector<16x16x32xbf16>
    %5 = vector.shape_cast %4 : vector<16x16x32xbf16> to vector<256x32xbf16>
    %c0_3 = arith.constant 0 : index
    %c0_4 = arith.constant 0 : index
    %c0_5 = arith.constant 0 : index
    %6 = vector.load %arg2[%c0_3, %c0_4, %c0_5] : memref<9x32x256xbf16, #tpu.memory_space<vmem>>, vector<1x32x256xbf16>
    %7 = vector.shape_cast %6 : vector<1x32x256xbf16> to vector<32x256xbf16>
    %cst_6 = arith.constant dense<0.000000e+00> : vector<256x256xf32>
    %8 = tpu.matmul %5, %7, %cst_6 {dimension_numbers = #tpu.dot_dimension_numbers<[1], [0], [0], [1], [0, 0, 1, 1], [], []>} : vector<256x32xbf16>, vector<32x256xbf16>, vector<256x256xf32> -> vector<256x256xf32>
    %9 = arith.addf %2, %8 : vector<256x256xf32>
    %10 = vector.extract_strided_slice %3 {offsets = [0, 1, 0], sizes = [16, 16, 32], strides = [1, 1, 1]} : vector<16x18x32xbf16> to vector<16x16x32xbf16>
    %11 = vector.shape_cast %10 : vector<16x16x32xbf16> to vector<256x32xbf16>
    %c1 = arith.constant 1 : index
    %c0_7 = arith.constant 0 : index
    %c0_8 = arith.constant 0 : index
    %12 = vector.load %arg2[%c1, %c0_7, %c0_8] : memref<9x32x256xbf16, #tpu.memory_space<vmem>>, vector<1x32x256xbf16>
    %13 = vector.shape_cast %12 : vector<1x32x256xbf16> to vector<32x256xbf16>
    %cst_9 = arith.constant dense<0.000000e+00> : vector<256x256xf32>
    %14 = tpu.matmul %11, %13, %cst_9 {dimension_numbers = #tpu.dot_dimension_numbers<[1], [0], [0], [1], [0, 0, 1, 1], [], []>} : vector<256x32xbf16>, vector<32x256xbf16>, vector<256x256xf32> -> vector<256x256xf32>
    %15 = arith.addf %9, %14 : vector<256x256xf32>
    %16 = vector.extract_strided_slice %3 {offsets = [0, 2, 0], sizes = [16, 16, 32], strides = [1, 1, 1]} : vector<16x18x32xbf16> to vector<16x16x32xbf16>
    %17 = vector.shape_cast %16 : vector<16x16x32xbf16> to vector<256x32xbf16>
    %c2 = arith.constant 2 : index
    %c0_10 = arith.constant 0 : index
    %c0_11 = arith.constant 0 : index
    %18 = vector.load %arg2[%c2, %c0_10, %c0_11] : memref<9x32x256xbf16, #tpu.memory_space<vmem>>, vector<1x32x256xbf16>
    %19 = vector.shape_cast %18 : vector<1x32x256xbf16> to vector<32x256xbf16>
    %cst_12 = arith.constant dense<0.000000e+00> : vector<256x256xf32>
    %20 = tpu.matmul %17, %19, %cst_12 {dimension_numbers = #tpu.dot_dimension_numbers<[1], [0], [0], [1], [0, 0, 1, 1], [], []>} : vector<256x32xbf16>, vector<32x256xbf16>, vector<256x256xf32> -> vector<256x256xf32>
    %21 = arith.addf %15, %20 : vector<256x256xf32>
    %22 = vector.extract_strided_slice %1 {offsets = [1, 0, 0], sizes = [16, 18, 32], strides = [1, 1, 1]} : vector<18x18x32xbf16> to vector<16x18x32xbf16>
    %23 = vector.extract_strided_slice %22 {offsets = [0, 0, 0], sizes = [16, 16, 32], strides = [1, 1, 1]} : vector<16x18x32xbf16> to vector<16x16x32xbf16>
    %24 = vector.shape_cast %23 : vector<16x16x32xbf16> to vector<256x32xbf16>
    %c3 = arith.constant 3 : index
    %c0_13 = arith.constant 0 : index
    %c0_14 = arith.constant 0 : index
    %25 = vector.load %arg2[%c3, %c0_13, %c0_14] : memref<9x32x256xbf16, #tpu.memory_space<vmem>>, vector<1x32x256xbf16>
    %26 = vector.shape_cast %25 : vector<1x32x256xbf16> to vector<32x256xbf16>
    %cst_15 = arith.constant dense<0.000000e+00> : vector<256x256xf32>
    %27 = tpu.matmul %24, %26, %cst_15 {dimension_numbers = #tpu.dot_dimension_numbers<[1], [0], [0], [1], [0, 0, 1, 1], [], []>} : vector<256x32xbf16>, vector<32x256xbf16>, vector<256x256xf32> -> vector<256x256xf32>
    %28 = arith.addf %21, %27 : vector<256x256xf32>
    %29 = vector.extract_strided_slice %22 {offsets = [0, 1, 0], sizes = [16, 16, 32], strides = [1, 1, 1]} : vector<16x18x32xbf16> to vector<16x16x32xbf16>
    %30 = vector.shape_cast %29 : vector<16x16x32xbf16> to vector<256x32xbf16>
    %c4 = arith.constant 4 : index
    %c0_16 = arith.constant 0 : index
    %c0_17 = arith.constant 0 : index
    %31 = vector.load %arg2[%c4, %c0_16, %c0_17] : memref<9x32x256xbf16, #tpu.memory_space<vmem>>, vector<1x32x256xbf16>
    %32 = vector.shape_cast %31 : vector<1x32x256xbf16> to vector<32x256xbf16>
    %cst_18 = arith.constant dense<0.000000e+00> : vector<256x256xf32>
    %33 = tpu.matmul %30, %32, %cst_18 {dimension_numbers = #tpu.dot_dimension_numbers<[1], [0], [0], [1], [0, 0, 1, 1], [], []>} : vector<256x32xbf16>, vector<32x256xbf16>, vector<256x256xf32> -> vector<256x256xf32>
    %34 = arith.addf %28, %33 : vector<256x256xf32>
    %35 = vector.extract_strided_slice %22 {offsets = [0, 2, 0], sizes = [16, 16, 32], strides = [1, 1, 1]} : vector<16x18x32xbf16> to vector<16x16x32xbf16>
    %36 = vector.shape_cast %35 : vector<16x16x32xbf16> to vector<256x32xbf16>
    %c5 = arith.constant 5 : index
    %c0_19 = arith.constant 0 : index
    %c0_20 = arith.constant 0 : index
    %37 = vector.load %arg2[%c5, %c0_19, %c0_20] : memref<9x32x256xbf16, #tpu.memory_space<vmem>>, vector<1x32x256xbf16>
    %38 = vector.shape_cast %37 : vector<1x32x256xbf16> to vector<32x256xbf16>
    %cst_21 = arith.constant dense<0.000000e+00> : vector<256x256xf32>
    %39 = tpu.matmul %36, %38, %cst_21 {dimension_numbers = #tpu.dot_dimension_numbers<[1], [0], [0], [1], [0, 0, 1, 1], [], []>} : vector<256x32xbf16>, vector<32x256xbf16>, vector<256x256xf32> -> vector<256x256xf32>
    %40 = arith.addf %34, %39 : vector<256x256xf32>
    %41 = vector.extract_strided_slice %1 {offsets = [2, 0, 0], sizes = [16, 18, 32], strides = [1, 1, 1]} : vector<18x18x32xbf16> to vector<16x18x32xbf16>
    %42 = vector.extract_strided_slice %41 {offsets = [0, 0, 0], sizes = [16, 16, 32], strides = [1, 1, 1]} : vector<16x18x32xbf16> to vector<16x16x32xbf16>
    %43 = vector.shape_cast %42 : vector<16x16x32xbf16> to vector<256x32xbf16>
    %c6 = arith.constant 6 : index
    %c0_22 = arith.constant 0 : index
    %c0_23 = arith.constant 0 : index
    %44 = vector.load %arg2[%c6, %c0_22, %c0_23] : memref<9x32x256xbf16, #tpu.memory_space<vmem>>, vector<1x32x256xbf16>
    %45 = vector.shape_cast %44 : vector<1x32x256xbf16> to vector<32x256xbf16>
    %cst_24 = arith.constant dense<0.000000e+00> : vector<256x256xf32>
    %46 = tpu.matmul %43, %45, %cst_24 {dimension_numbers = #tpu.dot_dimension_numbers<[1], [0], [0], [1], [0, 0, 1, 1], [], []>} : vector<256x32xbf16>, vector<32x256xbf16>, vector<256x256xf32> -> vector<256x256xf32>
    %47 = arith.addf %40, %46 : vector<256x256xf32>
    %48 = vector.extract_strided_slice %41 {offsets = [0, 1, 0], sizes = [16, 16, 32], strides = [1, 1, 1]} : vector<16x18x32xbf16> to vector<16x16x32xbf16>
    %49 = vector.shape_cast %48 : vector<16x16x32xbf16> to vector<256x32xbf16>
    %c7 = arith.constant 7 : index
    %c0_25 = arith.constant 0 : index
    %c0_26 = arith.constant 0 : index
    %50 = vector.load %arg2[%c7, %c0_25, %c0_26] : memref<9x32x256xbf16, #tpu.memory_space<vmem>>, vector<1x32x256xbf16>
    %51 = vector.shape_cast %50 : vector<1x32x256xbf16> to vector<32x256xbf16>
    %cst_27 = arith.constant dense<0.000000e+00> : vector<256x256xf32>
    %52 = tpu.matmul %49, %51, %cst_27 {dimension_numbers = #tpu.dot_dimension_numbers<[1], [0], [0], [1], [0, 0, 1, 1], [], []>} : vector<256x32xbf16>, vector<32x256xbf16>, vector<256x256xf32> -> vector<256x256xf32>
    %53 = arith.addf %47, %52 : vector<256x256xf32>
    %54 = vector.extract_strided_slice %41 {offsets = [0, 2, 0], sizes = [16, 16, 32], strides = [1, 1, 1]} : vector<16x18x32xbf16> to vector<16x16x32xbf16>
    %55 = vector.shape_cast %54 : vector<16x16x32xbf16> to vector<256x32xbf16>
    %c8 = arith.constant 8 : index
    %c0_28 = arith.constant 0 : index
    %c0_29 = arith.constant 0 : index
    %56 = vector.load %arg2[%c8, %c0_28, %c0_29] : memref<9x32x256xbf16, #tpu.memory_space<vmem>>, vector<1x32x256xbf16>
    %57 = vector.shape_cast %56 : vector<1x32x256xbf16> to vector<32x256xbf16>
    %cst_30 = arith.constant dense<0.000000e+00> : vector<256x256xf32>
    %58 = tpu.matmul %55, %57, %cst_30 {dimension_numbers = #tpu.dot_dimension_numbers<[1], [0], [0], [1], [0, 0, 1, 1], [], []>} : vector<256x32xbf16>, vector<32x256xbf16>, vector<256x256xf32> -> vector<256x256xf32>
    %59 = arith.addf %53, %58 : vector<256x256xf32>
    %c0_31 = arith.constant 0 : index
    %c0_32 = arith.constant 0 : index
    %60 = vector.load %arg3[%c0_31, %c0_32] : memref<1x256xf32, #tpu.memory_space<vmem>>, vector<1x256xf32>
    %61 = vector.broadcast %60 : vector<1x256xf32> to vector<256x256xf32>
    %62 = arith.addf %59, %61 : vector<256x256xf32>
    %cst_33 = arith.constant 0.000000e+00 : f32
    %63 = vector.broadcast %cst_33 : f32 to vector<256x256xf32>
    %64 = arith.maximumf %62, %63 : vector<256x256xf32>
    %65 = arith.truncf %64 : vector<256x256xf32> to vector<256x256xbf16>
    %c0_34 = arith.constant 0 : index
    %c0_35 = arith.constant 0 : index
    %66 = vector.load %arg4[%c0_34, %c0_35] : memref<256x4xbf16, #tpu.memory_space<vmem>>, vector<256x4xbf16>
    %cst_36 = arith.constant dense<0.000000e+00> : vector<256x4xf32>
    %67 = tpu.matmul %65, %66, %cst_36 {dimension_numbers = #tpu.dot_dimension_numbers<[1], [0], [0], [1], [0, 0, 1, 1], [], []>} : vector<256x256xbf16>, vector<256x4xbf16>, vector<256x4xf32> -> vector<256x4xf32>
    %c0_37 = arith.constant 0 : index
    %c0_38 = arith.constant 0 : index
    %68 = vector.load %arg5[%c0_37, %c0_38] : memref<1x4xf32, #tpu.memory_space<vmem>>, vector<1x4xf32>
    %69 = vector.broadcast %68 : vector<1x4xf32> to vector<256x4xf32>
    %70 = arith.addf %67, %69 : vector<256x4xf32>
    %71 = vector.extract_strided_slice %70 {offsets = [0, 0], sizes = [16, 4], strides = [1, 1]} : vector<256x4xf32> to vector<16x4xf32>
    %72 = vector.extract_strided_slice %70 {offsets = [16, 0], sizes = [16, 4], strides = [1, 1]} : vector<256x4xf32> to vector<16x4xf32>
    %73 = vector.extract_strided_slice %70 {offsets = [32, 0], sizes = [16, 4], strides = [1, 1]} : vector<256x4xf32> to vector<16x4xf32>
    %74 = vector.extract_strided_slice %70 {offsets = [48, 0], sizes = [16, 4], strides = [1, 1]} : vector<256x4xf32> to vector<16x4xf32>
    %75 = vector.extract_strided_slice %70 {offsets = [64, 0], sizes = [16, 4], strides = [1, 1]} : vector<256x4xf32> to vector<16x4xf32>
    %76 = vector.extract_strided_slice %70 {offsets = [80, 0], sizes = [16, 4], strides = [1, 1]} : vector<256x4xf32> to vector<16x4xf32>
    %77 = vector.extract_strided_slice %70 {offsets = [96, 0], sizes = [16, 4], strides = [1, 1]} : vector<256x4xf32> to vector<16x4xf32>
    %78 = vector.extract_strided_slice %70 {offsets = [112, 0], sizes = [16, 4], strides = [1, 1]} : vector<256x4xf32> to vector<16x4xf32>
    %79 = vector.extract_strided_slice %70 {offsets = [128, 0], sizes = [16, 4], strides = [1, 1]} : vector<256x4xf32> to vector<16x4xf32>
    %80 = vector.extract_strided_slice %70 {offsets = [144, 0], sizes = [16, 4], strides = [1, 1]} : vector<256x4xf32> to vector<16x4xf32>
    %81 = vector.extract_strided_slice %70 {offsets = [160, 0], sizes = [16, 4], strides = [1, 1]} : vector<256x4xf32> to vector<16x4xf32>
    %82 = vector.extract_strided_slice %70 {offsets = [176, 0], sizes = [16, 4], strides = [1, 1]} : vector<256x4xf32> to vector<16x4xf32>
    %83 = vector.extract_strided_slice %70 {offsets = [192, 0], sizes = [16, 4], strides = [1, 1]} : vector<256x4xf32> to vector<16x4xf32>
    %84 = vector.extract_strided_slice %70 {offsets = [208, 0], sizes = [16, 4], strides = [1, 1]} : vector<256x4xf32> to vector<16x4xf32>
    %85 = vector.extract_strided_slice %70 {offsets = [224, 0], sizes = [16, 4], strides = [1, 1]} : vector<256x4xf32> to vector<16x4xf32>
    %86 = vector.extract_strided_slice %70 {offsets = [240, 0], sizes = [16, 4], strides = [1, 1]} : vector<256x4xf32> to vector<16x4xf32>
    %87 = tpu.concatenate %71, %72, %73, %74, %75, %76, %77, %78, %79, %80, %81, %82, %83, %84, %85, %86 in 1 : vector<16x4xf32>, vector<16x4xf32>, vector<16x4xf32>, vector<16x4xf32>, vector<16x4xf32>, vector<16x4xf32>, vector<16x4xf32>, vector<16x4xf32>, vector<16x4xf32>, vector<16x4xf32>, vector<16x4xf32>, vector<16x4xf32>, vector<16x4xf32>, vector<16x4xf32>, vector<16x4xf32>, vector<16x4xf32> -> vector<16x64xf32>
    %88 = tpu.transpose %87, [1, 0] : vector<16x64xf32> -> vector<64x16xf32>
    %89 = arith.truncf %88 : vector<64x16xf32> to vector<64x16xbf16>
    %c0_39 = arith.constant 0 : index
    %c0_40 = arith.constant 0 : index
    %90 = vector.load %arg7[%c0_39, %c0_40] : memref<16x224xbf16, #tpu.memory_space<vmem>>, vector<16x224xbf16>
    %cst_41 = arith.constant dense<0.000000e+00> : vector<64x224xf32>
    %91 = tpu.matmul %89, %90, %cst_41 {dimension_numbers = #tpu.dot_dimension_numbers<[1], [0], [0], [1], [0, 0, 1, 1], [], []>} : vector<64x16xbf16>, vector<16x224xbf16>, vector<64x224xf32> -> vector<64x224xf32>
    %c0_42 = arith.constant 0 : index
    %c0_43 = arith.constant 0 : index
    %92 = vector.load %arg6[%c0_42, %c0_43] : memref<896x64xbf16, #tpu.memory_space<vmem>>, vector<896x64xbf16>
    %93 = arith.truncf %91 : vector<64x224xf32> to vector<64x224xbf16>
    %cst_44 = arith.constant dense<0.000000e+00> : vector<896x224xf32>
    %94 = tpu.matmul %92, %93, %cst_44 {dimension_numbers = #tpu.dot_dimension_numbers<[1], [0], [0], [1], [0, 0, 1, 1], [], []>} : vector<896x64xbf16>, vector<64x224xbf16>, vector<896x224xf32> -> vector<896x224xf32>
    %c0_45 = arith.constant 0 : index
    %c0_46 = arith.constant 0 : index
    %c0_47 = arith.constant 0 : index
    %95 = vector.load %arg8[%c0_45, %c0_46, %c0_47] : memref<1x896x224xf32, #tpu.memory_space<vmem>>, vector<1x896x224xf32>
    %96 = vector.shape_cast %95 : vector<1x896x224xf32> to vector<896x224xf32>
    %97 = vector.shape_cast %94 : vector<896x224xf32> to vector<1x896x224xf32>
    tpu.vector_store %arg8[%c0_45, %c0_46, %c0_47], %97 {strides = array<i32>} : memref<1x896x224xf32, #tpu.memory_space<vmem>>, vector<1x896x224xf32>,
    return
  }
  func.func @transform_0(%arg0: i32) -> (i32, i32, i32, i32) {
    %c0_i32 = arith.constant 0 : i32
    %c0_i32_0 = arith.constant 0 : i32
    %c0_i32_1 = arith.constant 0 : i32
    %c0_i32_2 = arith.constant 0 : i32
    return %arg0, %c0_i32, %c0_i32_0, %c0_i32_1 : i32, i32, i32, i32
  }
  func.func @transform_1(%arg0: i32) -> (i32, i32, i32) {
    %c0_i32 = arith.constant 0 : i32
    %c0_i32_0 = arith.constant 0 : i32
    %c0_i32_1 = arith.constant 0 : i32
    %c0_i32_2 = arith.constant 0 : i32
    return %c0_i32, %c0_i32_0, %c0_i32_1 : i32, i32, i32
  }
  func.func @transform_2(%arg0: i32) -> (i32, i32) {
    %c0_i32 = arith.constant 0 : i32
    %c0_i32_0 = arith.constant 0 : i32
    %c0_i32_1 = arith.constant 0 : i32
    return %c0_i32, %c0_i32_0 : i32, i32
  }
  func.func @transform_3(%arg0: i32) -> (i32, i32) {
    %c0_i32 = arith.constant 0 : i32
    %c0_i32_0 = arith.constant 0 : i32
    %c0_i32_1 = arith.constant 0 : i32
    return %c0_i32, %c0_i32_0 : i32, i32
  }
  func.func @transform_4(%arg0: i32) -> (i32, i32) {
    %c0_i32 = arith.constant 0 : i32
    %c0_i32_0 = arith.constant 0 : i32
    %c0_i32_1 = arith.constant 0 : i32
    return %c0_i32, %c0_i32_0 : i32, i32
  }
  func.func @transform_5(%arg0: i32) -> (i32, i32) {
    %c0_i32 = arith.constant 0 : i32
    %c0_i32_0 = arith.constant 0 : i32
    %c0_i32_1 = arith.constant 0 : i32
    return %c0_i32, %c0_i32_0 : i32, i32
  }
  func.func @transform_6(%arg0: i32) -> (i32, i32) {
    %c0_i32 = arith.constant 0 : i32
    %c0_i32_0 = arith.constant 0 : i32
    %c0_i32_1 = arith.constant 0 : i32
    return %c0_i32, %c0_i32_0 : i32, i32
  }
  func.func @transform_7(%arg0: i32) -> (i32, i32, i32) {
    %c0_i32 = arith.constant 0 : i32
    %c0_i32_0 = arith.constant 0 : i32
    %c0_i32_1 = arith.constant 0 : i32
    return %arg0, %c0_i32, %c0_i32_0 : i32, i32, i32
  }
}

</mosaic_0001>

<bundles_post_ra>
// kernel: segmentation_head_forward.1
= control target key start
LH: loop header
LB: loop body
LE: loop exit
PB: predicated region body
PF: predicated region fallthrough
CT: control target
= control target key end

     0   :  { %12 = vsyncpa [#allocation3], 0  ;;  %s10019_s0 = inlined_call_operand.vmem [shape: bf16[2,18,18,32], index: 0, kind: input, shape index: {}]   ;;  %s10020_s1 = inlined_call_operand.vmem [shape: bf16[9,32,256], index: 1, kind: input, shape index: {}]   ;;  %s10021_s2 = inlined_call_operand.vmem [shape: f32[1,256], index: 2, kind: input, shape index: {}]   ;;  %s10022_s3 = inlined_call_operand.vmem [shape: bf16[256,4], index: 3, kind: input, shape index: {}]   ;;  %s10023_s4 = inlined_call_operand.vmem [shape: f32[1,4], index: 4, kind: input, shape index: {}]   ;;  %s10024_s5 = inlined_call_operand.vmem [shape: bf16[896,64], index: 5, kind: input, shape index: {}]   ;;  %s10025_s6 = inlined_call_operand.vmem [shape: bf16[16,224], index: 6, kind: input, shape index: {}]   ;;  %s10026_s7 = inlined_call_operand.hbm [shape: f32[2,896,224], index: 7, kind: output, shape index: {}]  }
   0x1   :  { %14 = vsyncpa [#allocation3 + $0x1], 0  ;;  %s6862_s24 = smov 0   ;;  %s6864_s25 = smov 0  }
   0x2   :  { %s6866_s26 = smov 0   ;;  %s6868_s27 = smov 0  }
   0x3 LB: > { %s6883_s28 = sadd.s32 4294967295, %s6802_s27   ;;  %s5912_s29 = sadd.s32 4294967294, %s6802_s27   ;;  %s6802_s27 = sphi %s6868_s27, %s10560_s27   ;;  %s6798_s26 = sphi %s6866_s26, %s10559_s26   ;;  %s6794_s25 = sphi %s6864_s25, %s10558_s25   ;;  %s6790_s24 = sphi %s6862_s24, %s10557_s24  }
   0x4   : > { %s6887_s30 = sadd.s32 1, %s6802_s27   ;;  %s179_s8 = sadd.s32 1, %s6798_s26 }
   0x5   : > { %s176_s9 = ssub.s32 %s6802_s27, %s6887_s30  ;;  %p189_p0 = scmp.ne.s32.totalorder %s6798_s26, %s6794_s25 }
   0x6   : > { %p177_p1 = scmp.eq.s32.totalorder %s176_s9, 0  ;;  %p190_p2 = scmp.eq.s32.totalorder %s6883_s28, 1 }
   0x7   : > { %p195_p3 = scmp.ne.s32.totalorder %s6794_s25, %s6790_s24  ;;  %p196_p4 = scmp.eq.s32.totalorder %s5912_s29, 1 }
   0x8   : > { %s6898_s10 = scalar_select %p177_p1, %s6798_s26, %s179_s8  }
   0x9   : > { %p6900_p5 = por %p190_p2, %p189_p0  ;;  %p6904_p6 = por %p196_p4, %p195_p3 }
   0xa   : > { %p5915_p7 = scmp.ge.s32.totalorder %s6802_s27, 1  ;;  %p240_p8 = scmp.lt.s32.totalorder %s6802_s27, 3 }
   0xc   : > { %p241_p9 = pnand %p5915_p7, %p240_p8 }
   0xe   : > { %244 = sbr.rel (%p241_p9) target bundleno = 2011 (0x7db), region = 48 }
  0x13   : > { %v6589_v0 = vld [vmem:[%s10020_s1 + $0x34] ss:$8 sps:$4 sm:$0xff]   ;;  %p272_p10 = scmp.lt.s32.totalorder %s6883_s28, 1  ;;  %v10027_v2 = vmov 0   ;;  %v6593_v3 = vld [vmem:[%s10020_s1 + $0x30] ss:$8 sps:$4 sm:$0xff]  }
  0x14   : > { %v6591_v1 = vld [vmem:[%s10020_s1 + $0x14] ss:$8 sps:$4 sm:$0xff]   ;;  %877 = vmatprep.mubr.bf16.mxu0 %v10027_v2  ;;  %1218 = vmatprep.mubr.bf16.mxu1 %v10027_v2  ;;  %v6594_v4 = vld [vmem:[%s10020_s1 + $0x10] ss:$8 sps:$4 sm:$0xff]   ;;  %v6595_v5 = vld [vmem:[%s10020_s1 + $0x24] ss:$8 sps:$4 sm:$0xff]  }
  0x15   : > { %857 = vmatprep.subr.bf16.mxu0 %v6589_v0  ;;  %s273_s21 = scalar_select %p272_p10, %s6883_s28, 1  ;;  %1198 = vmatprep.subr.bf16.mxu1 %v6591_v1  ;;  %v6597_v6 = vld [vmem:[%s10020_s1 + $0x4] ss:$8 sps:$4 sm:$0xff]   ;;  %v6599_v7 = vld [vmem:[%s10020_s1 + $0x20] ss:$8 sps:$4 sm:$0xff]   ;;  %vm796_vm1 = vcmask 261120  }
  0x16   : > { %858 = vmatpush1.bf16.msra.mxu0 %v6593_v3  ;;  %1199 = vmatpush1.bf16.msra.mxu1 %v6594_v4  ;;  %v6600_v8 = vld [vmem:[%s10020_s1] ss:$8 sps:$4 sm:$0xff]   ;;  %vm336_vm0 = vsmask.f32 3328  ;;  %v6618_v9 = vld [vmem:[%s10020_s1 + $0x54] ss:$8 sps:$4 sm:$0xff]  }
  0x17   : > { %s6460_s14 = smul.u32 216, %s273_s21  ;;  %859 = vmatprep.subr.bf16.mxu0 %v6595_v5  ;;  %1200 = vmatprep.subr.bf16.mxu1 %v6597_v6  ;;  %vm337_vm2 = vsmask.f32 7440  ;;  %v10112_v36 = vmov 0  ;;  %v6616_v59 = vld [vmem:[%s10020_s1 + $0x50] ss:$8 sps:$4 sm:$0xff]  }
  0x18   : > { %vm6971_vm3 = vmor %vm336_vm0, %vm337_vm2  ;;  %vm1395_vm4 = vcmask 1042432   ;;  %vm1396_vm5 = vcmask 1046532   ;;  %s6805_s17 = smov 4   ;;  %s6806_s18 = smov 8   ;;  %vm4272_vm7 = vcmask 31744   ;;  %vm4275_vm8 = vcmask 64512  }
  0x19   : > { %s6941_s19 = scalar_lea.vmem %s10019_s0, %s6460_s14  ;;  %v10113_v36 = vsel %vm6971_vm3, 4294967295, %v10112_v36  ;;  %vm7407_vm6 = vmor %vm1395_vm4, %vm1396_vm5  ;;  %s6807_s20 = smov 12   ;;  %vm4278_vm9 = vcmask 97280   ;;  %vm4281_vm10 = vcmask 130048   ;;  %vm4284_vm11 = vcmask 162816  }
  0x1a   : > { %v6947_v10 = vld [vmem:[%s6941_s19] sm:$0xf]  ;;  %v6950_v11 = vld [vmem:[%s6941_s19 + $0x4] sm:$0xf]  ;;  %v6953_v12 = vld [vmem:[%s6941_s19 + $0x8] sm:$0x1]  ;;  %860 = vmatpush1.bf16.msra.mxu0 %v6599_v7  ;;  %1201 = vmatpush1.bf16.msra.mxu1 %v6600_v8 }
  0x1b   : > { %v340_v13 = vshrl.u32 %v6947_v10, 16  ;;  %v343_v14 = vshll.u32 %v6947_v10, 16  ;;  %v349_v15 = vshll.u32 %v6950_v11, 16  ;;  %v353_v16 = vshrl.u32 %v6950_v11, 16  ;;  %v281_v17 = vld [vmem:[%s6941_s19 + $0xc] sm:$0xf]  ;;  %1643 = vmatprep.subr.bf16.mxu0 %v6618_v9 }
  0x1c   : > { %v359_v18 = vshll.u32 %v6953_v12, 16  ;;  %v5957_v19 = vcombine.low %v6947_v10, %v6950_v11  ;;  %v282_v20 = vld [vmem:[%s6941_s19 + $0x10] sm:$0xf]  ;;  %v283_v25 = vld [vmem:[%s6941_s19 + $0x14] sm:$0x1]  ;;  %v364_v27 = vshrl.u32 %v281_v17, 16 }
  0x1d   : > { %v342_v21 = vrot.slane %v340_v13, 4  ;;  %v345_v22 = vrot.slane %v343_v14, 5  ;;  %v351_v23 = vrot.slane %v349_v15, 5  ;;  %v355_v24 = vrot.slane %v353_v16, 4  ;;  %v284_v34 = vld [vmem:[%s6941_s19 + $0x18] sm:$0xf] }
  0x1e   : > { %v361_v26 = vrot.slane %v359_v18, 5  ;;  %5977 = vmatmul.mubr.msk.bf16.vlgmr.msra.gmra.mxu1 %vm796_vm1, %v5957_v19  ;;  %v367_v28 = vshll.u32 %v281_v17, 16  ;;  %v373_v29 = vshll.u32 %v282_v20, 16  ;;  %v377_v32 = vshrl.u32 %v282_v20, 16  ;;  %v285_v35 = vld [vmem:[%s6941_s19 + $0x1c] sm:$0xf] }
  0x1f   : > { %v346_v30 = vor.u32 %v345_v22, %v342_v21  ;;  %v356_v31 = vor.u32 %v355_v24, %v351_v23  ;;  %1228 = vmatprep.mubr.bf16.mxu1 %v10027_v2  ;;  %v383_v33 = vshll.u32 %v283_v25, 16  ;;  %10114 = vst [vmem:[#allocation5_spill] sm:$0xff] %v10113_v36  ;;  %v366_v37 = vrot.slane %v364_v27, 4  ;;  %v286_v46 = vld [vmem:[%s6941_s19 + $0x20] sm:$0x1]  ;;  %s6808_s21 = smov 16  }
  0x20   : > { %v369_v38 = vrot.slane %v367_v28, 5  ;;  %v375_v39 = vrot.slane %v373_v29, 5  ;;  %v6975_v40 = vcombine.low %v281_v17, %v282_v20  ;;  %v379_v43 = vrot.slane %v377_v32, 4  ;;  %v6983_v54 = vld [vmem:[%s6941_s19 + $0x24] sm:$0xf]  ;;  %s6809_s22 = smov 20  }
  0x21   : > { %v347_v41 = vrot.slane %v346_v30, 4  ;;  %v357_v42 = vrot.slane %v356_v31, 4  ;;  %v385_v44 = vrot.slane %v383_v33, 5  ;;  %v388_v47 = vshrl.u32 %v284_v34, 16  ;;  %v6989_v0 = vld [vmem:[%s6941_s19 + $0x28] sm:$0xf] }
  0x22   : > { %10115 = vst [vmem:[#allocation6_spill] sm:$0xff] %v6975_v40  ;;  %v370_v45 = vor.u32 %v369_v38, %v366_v37  ;;  %v391_v48 = vshll.u32 %v284_v34, 16  ;;  %v397_v49 = vshll.u32 %v285_v35, 16  ;;  %v380_v52 = vor.u32 %v379_v43, %v375_v39  ;;  %v7003_v13 = vld [vmem:[%s6941_s19 + $0x2c] sm:$0x1]  ;;  %s6810_s23 = smov 24  }
  0x23   : > { %v352_v50 = vsel %vm6971_vm3, %v347_v41, %v351_v23  ;;  %v362_v51 = vsel %vm6971_vm3, %v357_v42, %v361_v26  ;;  %v401_v53 = vshrl.u32 %v285_v35, 16  ;;  %v390_v57 = vrot.slane %v388_v47, 4  ;;  %v7008_v19 = vld [vmem:[%s6941_s19 + $0x30] sm:$0xf]  ;;  %v7015_v23 = vld [vmem:[%s6941_s19 + $0x34] sm:$0xf] }
  0x24   : > { %v5921_v55 = vcombine.low %v352_v50, %v362_v51  ;;  %v371_v56 = vrot.slane %v370_v45, 4  ;;  %v393_v58 = vrot.slane %v391_v48, 5  ;;  %v381_v60 = vrot.slane %v380_v52, 4  ;;  %v7045_v42 = vld [vmem:[%s6941_s19 + $0x38] sm:$0x1]  ;;  %s6812_s29 = smov 32  }
  0x25   : > { %v399_v61 = vrot.slane %v397_v49, 5  ;;  %v403_v62 = vrot.slane %v401_v53, 4  ;;  %v407_v63 = vshll.u32 %v286_v46, 16  ;;  %v412_v3 = vshrl.u32 %v6983_v54, 16  ;;  %v7054_v52 = vld [vmem:[%s6941_s19 + $0x48] sm:$0xf] }
  0x26   : > { %5941 = vmatmul.mubr.msk.bf16.vlgmr.msra.gmra.mxu0 %vm796_vm1, %v5921_v55  ;;  %5978 = vmatmul.mubr.msk.bf16.gmra.mxu1 %vm796_vm1, %v6975_v40  ;;  %v394_v1 = vor.u32 %v393_v58, %v390_v57  ;;  %v376_v4 = vsel %vm6971_vm3, %v371_v56, %v375_v39  ;;  %v386_v5 = vsel %vm6971_vm3, %v381_v60, %v385_v44  ;;  %v415_v7 = vshll.u32 %v6983_v54, 16  ;;  %v7042_v39 = vld [vmem:[%s6941_s19 + $0x40] sm:$0xf]  ;;  %v7060_v57 = vld [vmem:[%s6941_s19 + $0x4c] sm:$0xf]  ;;  %s6813_s8 = smov 36  }
  0x27   : > { %887 = vmatprep.mubr.bf16.mxu0 %v10027_v2  ;;  %1238 = vmatprep.mubr.bf16.mxu1 %v10027_v2  ;;  %v404_v6 = vor.u32 %v403_v62, %v399_v61  ;;  %v409_v9 = vrot.slane %v407_v63, 5  ;;  %v421_v14 = vshll.u32 %v6989_v0, 16  ;;  %v414_v16 = vrot.slane %v412_v3, 4  ;;  %10120 = vst [vmem:[#allocation11_spill] sm:$0xff] %v7060_v57  ;;  %v7072_v62 = vld [vmem:[%s6941_s19 + $0x44] sm:$0x1] }
  0x28   : > { %v395_v8 = vrot.slane %v394_v1, 4  ;;  %1644 = vmatpush1.bf16.msra.mxu0 %v6616_v59  ;;  %v417_v17 = vrot.slane %v415_v7, 5  ;;  %v425_v18 = vshrl.u32 %v6989_v0, 16  ;;  %v7010_v20 = vcombine.low %v376_v4, %v386_v5  ;;  %s6814_s9 = smov 40   ;;  %s6815_s13 = smov 44  }
  0x29   : > { %v405_v15 = vrot.slane %v404_v6, 4  ;;  %v7012_v21 = vcombine.low %v284_v34, %v285_v35  ;;  %v423_v22 = vrot.slane %v421_v14, 5  ;;  %v431_v26 = vshll.u32 %v7003_v13, 16  ;;  %v7033_v34 = vld [vmem:[%s6941_s19 + $0x3c] sm:$0xf]  ;;  %s6816_s14 = smov 48  }
  0x2a   : > { %10116 = vst [vmem:[#allocation7_spill] sm:$0xff] %v7010_v20  ;;  %v427_v24 = vrot.slane %v425_v18, 4  ;;  %v400_v25 = vsel %vm6971_vm3, %v395_v8, %v399_v61  ;;  %v436_v27 = vshrl.u32 %v7008_v19, 16  ;;  %v418_v29 = vor.u32 %v417_v17, %v414_v16  ;;  %s6817_s15 = smov 52   ;;  %s6820_s16 = smov [#allocation2]  }
  0x2b   : > { %10117 = vst [vmem:[#allocation8_spill] sm:$0xff] %v7012_v21  ;;  %v410_v28 = vsel %vm6971_vm3, %v405_v15, %v409_v9  ;;  %v439_v30 = vshll.u32 %v7008_v19, 16  ;;  %v445_v31 = vshll.u32 %v7015_v23, 16  ;;  %v449_v33 = vshrl.u32 %v7015_v23, 16  ;;  %v7087_v15 = vld [vmem:[%s6941_s19 + $0x54] sm:$0xf] }
  0x2c   : > { %v428_v32 = vor.u32 %v427_v24, %v423_v22  ;;  %v7035_v35 = vcombine.low %v400_v25, %v410_v28  ;;  %v433_v37 = vrot.slane %v431_v26, 5  ;;  %v7039_v38 = vcombine.low %v6983_v54, %v6989_v0  ;;  %10122 = vst [vmem:[#allocation13_spill] sm:$0xff] %v7087_v15  ;;  %v7094_v26 = vld [vmem:[%s6941_s19 + $0x50] sm:$0x1] }
  0x2d   : > { %v419_v41 = vrot.slane %v418_v29, 4  ;;  %v438_v43 = vrot.slane %v436_v27, 4  ;;  %v441_v44 = vrot.slane %v439_v30, 5  ;;  %v7047_v45 = vrot.slane %v445_v31, 5  ;;  %10124 = vst [vmem:[#allocation15_spill] sm:$0xff] %v7094_v26 }
  0x2e   : > { %5942 = vmatmul.mubr.msk.bf16.gmra.mxu0 %vm796_vm1, %v7010_v20  ;;  %5979 = vmatmul.mubr.msk.bf16.gmra.mxu1 %vm796_vm1, %v7012_v21  ;;  %10118 = vst [vmem:[#allocation9_spill] sm:$0xff] %v7035_v35  ;;  %10119 = vst [vmem:[#allocation10_spill] sm:$0xff] %v7039_v38  ;;  %v429_v46 = vrot.slane %v428_v32, 4  ;;  %v451_v47 = vrot.slane %v449_v33, 4  ;;  %v460_v48 = vshrl.u32 %v7033_v34, 16  ;;  %v463_v49 = vshll.u32 %v7033_v34, 16 }
  0x2f   : > { %897 = vmatprep.mubr.bf16.mxu0 %v10027_v2  ;;  %1248 = vmatprep.mubr.bf16.mxu1 %v10027_v2  ;;  %v469_v50 = vshll.u32 %v7042_v39, 16  ;;  %v473_v51 = vshrl.u32 %v7042_v39, 16  ;;  %v424_v53 = vsel %vm6971_vm3, %v419_v41, %v423_v22  ;;  %v442_v55 = vor.u32 %v441_v44, %v438_v43  ;;  %v7097_v29 = vld [vmem:[%s6941_s19 + $0x58] sm:$0xf]  ;;  %v6622_v43 = vld [vmem:[%s10020_s1 + $0x74] ss:$8 sps:$4 sm:$0xff]  }
  0x30   : > { %v455_v56 = vshll.u32 %v7045_v42, 16  ;;  %v434_v58 = vsel %vm6971_vm3, %v429_v46, %v433_v37  ;;  %v452_v59 = vor.u32 %v451_v47, %v7047_v45  ;;  %v462_v60 = vrot.slane %v460_v48, 4  ;;  %10125 = vst [vmem:[#allocation16_spill] sm:$0xff] %v7097_v29  ;;  %v7104_v37 = vld [vmem:[%s6941_s19 + $0x60] sm:$0xf]  ;;  %1933 = vmatprep.subr.bf16.mxu1 %v6622_v43 }
  0x31   : > { %v465_v61 = vrot.slane %v463_v49, 5  ;;  %v7074_v63 = vrot.slane %v469_v50, 5  ;;  %v475_v1 = vrot.slane %v473_v51, 4  ;;  %v484_v3 = vshrl.u32 %v7054_v52, 16  ;;  %10126 = vst [vmem:[#allocation17_spill] sm:$0xff] %v7104_v37 }
  0x32   : > { %v487_v4 = vshll.u32 %v7054_v52, 16  ;;  %v493_v5 = vshll.u32 %v7060_v57, 16  ;;  %v497_v6 = vshrl.u32 %v7060_v57, 16  ;;  %v457_v9 = vrot.slane %v455_v56, 5  ;;  %v6620_v41 = vld [vmem:[%s10020_s1 + $0x70] ss:$8 sps:$4 sm:$0xff]  }
  0x33   : > { %v7084_v14 = vcombine.low %v7008_v19, %v7015_v23  ;;  %v7089_v16 = vcombine.low %v424_v53, %v434_v58  ;;  %v443_v17 = vrot.slane %v442_v55, 4  ;;  %v453_v18 = vrot.slane %v452_v59, 4  ;;  %v6623_v44 = vld [vmem:[%s10020_s1 + $0x40] ss:$8 sps:$4 sm:$0xff]   ;;  %v6625_v49 = vld [vmem:[%s10020_s1 + $0x44] ss:$8 sps:$4 sm:$0xff]   ;;  %1934 = vmatpush1.bf16.msra.mxu1 %v6620_v41 }
  0x34   : > { %v479_v22 = vshll.u32 %v7072_v62, 16  ;;  %v466_v24 = vor.u32 %v465_v61, %v462_v60  ;;  %v476_v25 = vor.u32 %v475_v1, %v7074_v63  ;;  %v486_v27 = vrot.slane %v484_v3, 4  ;;  %v7134_v60 = vld [vmem:[%s6941_s19 + $0x5c] sm:$0x1]  ;;  %v7137_v61 = vld [vmem:[%s6941_s19 + $0x64] sm:$0xf]  ;;  %1645 = vmatprep.subr.bf16.mxu0 %v6625_v49 }
  0x35   : > { %10121 = vst [vmem:[#allocation12_spill] sm:$0xff] %v7084_v14  ;;  %10123 = vst [vmem:[#allocation14_spill] sm:$0xff] %v7089_v16  ;;  %v489_v28 = vrot.slane %v487_v4, 5  ;;  %v7099_v30 = vrot.slane %v493_v5, 5  ;;  %v499_v31 = vrot.slane %v497_v6, 4  ;;  %v508_v32 = vshrl.u32 %v7087_v15, 16  ;;  %1646 = vmatpush1.bf16.msra.mxu0 %v6623_v44 }
  0x36   : > { %5943 = vmatmul.mubr.msk.bf16.gmra.mxu0 %vm796_vm1, %v7035_v35  ;;  %5980 = vmatmul.mubr.msk.bf16.gmra.mxu1 %vm796_vm1, %v7039_v38  ;;  %v511_v33 = vshll.u32 %v7087_v15, 16  ;;  %v481_v46 = vrot.slane %v479_v22, 5  ;;  %v517_v47 = vshll.u32 %v7097_v29, 16  ;;  %v521_v48 = vshrl.u32 %v7097_v29, 16  ;;  %10127 = vst [vmem:[#allocation18_spill] sm:$0xff] %v7134_v60  ;;  %10128 = vst [vmem:[#allocation19_spill] sm:$0xff] %v7137_v61 }
  0x37   : > { %907 = vmatprep.mubr.bf16.mxu0 %v10027_v2  ;;  %1258 = vmatprep.mubr.bf16.mxu1 %v10027_v2  ;;  %v448_v50 = vsel %vm6971_vm3, %v443_v17, %v7047_v45  ;;  %v458_v51 = vsel %vm6971_vm3, %v453_v18, %v457_v9  ;;  %v467_v53 = vrot.slane %v466_v24, 4  ;;  %v477_v55 = vrot.slane %v476_v25, 4  ;;  %v6626_v45 = vld [vmem:[%s10020_s1 + $0x60] ss:$8 sps:$4 sm:$0xff]   ;;  %v6628_v1 = vld [vmem:[%s10020_s1 + $0x64] ss:$8 sps:$4 sm:$0xff]  }
  0x38   : > { %v490_v56 = vor.u32 %v489_v28, %v486_v27  ;;  %v500_v58 = vor.u32 %v499_v31, %v7099_v30  ;;  %v503_v59 = vshll.u32 %v7094_v26, 16  ;;  %v7147_v3 = vcombine.low %v7033_v34, %v7042_v39  ;;  %v7156_v24 = vld [vmem:[%s6941_s19 + $0x6c] sm:$0xf]  ;;  %1935 = vmatprep.subr.bf16.mxu1 %v6628_v1  ;;  %v7162_v27 = vld [vmem:[%s6941_s19 + $0x70] sm:$0xf] }
  0x39   : > { %v510_v4 = vrot.slane %v508_v32, 4  ;;  %v513_v5 = vrot.slane %v511_v33, 5  ;;  %v532_v6 = vshrl.u32 %v7104_v37, 16  ;;  %v7150_v9 = vcombine.low %v448_v50, %v458_v51  ;;  %v7167_v41 = vld [vmem:[%s6941_s19 + $0x68] sm:$0x1]  ;;  %1936 = vmatpush1.bf16.msra.mxu1 %v6626_v45 }
  0x3a   : > { %10129 = vst [vmem:[#allocation20_spill] sm:$0xff] %v7147_v3  ;;  %v7152_v17 = vrot.slane %v517_v47, 5  ;;  %v523_v18 = vrot.slane %v521_v48, 4  ;;  %v535_v22 = vshll.u32 %v7104_v37, 16  ;;  %v472_v25 = vsel %vm6971_vm3, %v467_v53, %v7074_v63  ;;  %10131 = vst [vmem:[#allocation22_spill] sm:$0xff] %v7167_v41 }
  0x3b   : > { %10130 = vst [vmem:[#allocation21_spill] sm:$0xff] %v7150_v9  ;;  %v482_v28 = vsel %vm6971_vm3, %v477_v55, %v481_v46  ;;  %v491_v31 = vrot.slane %v490_v56, 4  ;;  %v501_v32 = vrot.slane %v500_v58, 4  ;;  %v505_v33 = vrot.slane %v503_v59, 5  ;;  %v7182_v53 = vld [vmem:[%s6941_s19 + $0x78] sm:$0xf] }
  0x3c   : > { %v514_v43 = vor.u32 %v513_v5, %v510_v4  ;;  %v527_v44 = vshll.u32 %v7134_v60, 16  ;;  %v534_v47 = vrot.slane %v532_v6, 4  ;;  %v541_v48 = vshll.u32 %v7137_v61, 16  ;;  %v7193_v45 = vld [vmem:[%s6941_s19 + $0x7c] sm:$0xf] }
  0x3d   : > { %v524_v63 = vor.u32 %v523_v18, %v7152_v17  ;;  %v537_v46 = vrot.slane %v535_v22, 5  ;;  %v545_v49 = vshrl.u32 %v7137_v61, 16  ;;  %v556_v50 = vshrl.u32 %v7156_v24, 16  ;;  %v7203_v18 = vld [vmem:[%s6941_s19 + $0x74] sm:$0x1] }
  0x3e   : > { %5944 = vmatmul.mubr.msk.bf16.gmra.mxu0 %vm796_vm1, %v7089_v16  ;;  %5981 = vmatmul.mubr.msk.bf16.gmra.mxu1 %vm796_vm1, %v7084_v14  ;;  %v559_v51 = vshll.u32 %v7156_v24, 16  ;;  %v7184_v55 = vcombine.low %v472_v25, %v482_v28  ;;  %v7188_v56 = vcombine.low %v7054_v52, %v7060_v57  ;;  %v565_v58 = vshll.u32 %v7162_v27, 16  ;;  %10134 = vst [vmem:[#allocation25_spill] sm:$0xff] %v7203_v18  ;;  %v7295_v60 = vld [vmem:[%s6941_s19 + $0xa8] sm:$0xf] }
  0x3f   : > { %917 = vmatprep.mubr.bf16.mxu0 %v10027_v2  ;;  %1268 = vmatprep.mubr.bf16.mxu1 %v10027_v2  ;;  %v569_v59 = vshrl.u32 %v7162_v27, 16  ;;  %v7195_v1 = vrot.slane %v514_v43, 4  ;;  %v7197_v4 = vrot.slane %v527_v44, 5  ;;  %v7199_v5 = vrot.slane %v541_v48, 5  ;;  %v7213_v48 = vld [vmem:[%s6941_s19 + $0x80] sm:$0x1] }
  0x40   : > { %10132 = vst [vmem:[#allocation23_spill] sm:$0xff] %v7184_v55  ;;  %10133 = vst [vmem:[#allocation24_spill] sm:$0xff] %v7188_v56  ;;  %v551_v6 = vshll.u32 %v7167_v41, 16  ;;  %v496_v22 = vsel %vm6971_vm3, %v491_v31, %v7099_v30  ;;  %v506_v25 = vsel %vm6971_vm3, %v501_v32, %v505_v33  ;;  %v7210_v28 = vrot.slane %v524_v63, 4  ;;  %v7340_v57 = vld [vmem:[%s6941_s19 + $0xb0] sm:$0x1] }
  0x41   : > { %v547_v43 = vrot.slane %v545_v49, 4  ;;  %v538_v8 = vor.u32 %v537_v46, %v534_v47  ;;  %v558_v44 = vrot.slane %v556_v50, 4  ;;  %v561_v7 = vrot.slane %v559_v51, 5  ;;  %10135 = vst [vmem:[#allocation26_spill] sm:$0xff] %v7213_v48  ;;  %v7231_v49 = vld [vmem:[%s6941_s19 + $0x88] sm:$0xf] }
  0x42   : > { %v7222_v30 = vrot.slane %v565_v58, 5  ;;  %v571_v31 = vrot.slane %v569_v59, 4  ;;  %v580_v32 = vshrl.u32 %v7182_v53, 16  ;;  %v7225_v33 = vcombine.low %v496_v22, %v506_v25  ;;  %v7248_v22 = vld [vmem:[%s6941_s19 + $0x90] sm:$0xf] }
  0x43   : > { %v583_v47 = vshll.u32 %v7182_v53, 16  ;;  %v589_v63 = vshll.u32 %v7193_v45, 16  ;;  %v593_v46 = vshrl.u32 %v7193_v45, 16  ;;  %v520_v50 = vsel %vm6971_vm3, %v7195_v1, %v7152_v17  ;;  %10139 = vst [vmem:[#allocation30_spill] sm:$0xff] %v7248_v22  ;;  %v7251_v25 = vld [vmem:[%s6941_s19 + $0x94] sm:$0xf] }
  0x44   : > { %10137 = vst [vmem:[#allocation28_spill] sm:$0xff] %v7225_v33  ;;  %v548_v51 = vor.u32 %v547_v43, %v7199_v5  ;;  %v7244_v58 = vcombine.low %v7104_v37, %v7137_v61  ;;  %v575_v59 = vshll.u32 %v7203_v18, 16  ;;  %10140 = vst [vmem:[#allocation31_spill] sm:$0xff] %v7251_v25  ;;  %v530_v17 = vsel %vm6971_vm3, %v7210_v28, %v7197_v4  ;;  %v7273_v4 = vld [vmem:[%s6941_s19 + $0x9c] sm:$0xf] }
  0x45   : > { %v7259_v1 = vrot.slane %v538_v8, 4  ;;  %v7261_v43 = vrot.slane %v551_v6, 5  ;;  %v562_v16 = vor.u32 %v561_v7, %v558_v44  ;;  %v572_v35 = vor.u32 %v571_v31, %v7222_v30  ;;  %10143 = vst [vmem:[#allocation33_spill] sm:$0xff] %v7273_v4 }
  0x46   : > { %5945 = vmatmul.mubr.msk.bf16.gmra.mxu0 %vm796_vm1, %v7150_v9  ;;  %5982 = vmatmul.mubr.msk.bf16.gmra.mxu1 %vm796_vm1, %v7147_v3  ;;  %v7220_v9 = vcombine.low %v7087_v15, %v7097_v29  ;;  %10138 = vst [vmem:[#allocation29_spill] sm:$0xff] %v7244_v58  ;;  %v582_v20 = vrot.slane %v580_v32, 4  ;;  %v7266_v3 = vld [vmem:[%s6941_s19 + $0x8c] sm:$0x1]  ;;  %v585_v38 = vrot.slane %v583_v47, 5  ;;  %v7269_v21 = vrot.slane %v589_v63, 5 }
  0x47   : > { %927 = vmatprep.mubr.bf16.mxu0 %v10027_v2  ;;  %1278 = vmatprep.mubr.bf16.mxu1 %v10027_v2  ;;  %v7216_v2 = vld [vmem:[%s6941_s19 + $0x84] sm:$0xf]  ;;  %10142 = vst [vmem:[#allocation32_spill] sm:$0xff] %v7266_v3  ;;  %v595_v40 = vrot.slane %v593_v46, 4  ;;  %v549_v6 = vrot.slane %v548_v51, 4  ;;  %v7275_v7 = vrot.slane %v575_v59, 5 }
  0x48   : > { %10136 = vst [vmem:[#allocation27_spill] sm:$0xff] %v7220_v9  ;;  %v604_v14 = vshrl.u32 %v7216_v2, 16  ;;  %v607_v8 = vshll.u32 %v7216_v2, 16  ;;  %v613_v28 = vshll.u32 %v7231_v49, 16  ;;  %v617_v44 = vshrl.u32 %v7231_v49, 16 }
  0x49   : > { %v628_v31 = vshrl.u32 %v7248_v22, 16  ;;  %v631_v32 = vshll.u32 %v7248_v22, 16  ;;  %v637_v47 = vshll.u32 %v7251_v25, 16  ;;  %v641_v63 = vshrl.u32 %v7251_v25, 16  ;;  %v7284_v46 = vld [vmem:[%s6941_s19 + $0xa0] sm:$0xf] }
  0x4a   : > { %10144 = vst [vmem:[#allocation34_spill] sm:$0xff] %v7284_v46  ;;  %v7288_v51 = vrot.slane %v572_v35, 4  ;;  %v606_v18 = vrot.slane %v604_v14, 4  ;;  %v586_v41 = vor.u32 %v585_v38, %v582_v20  ;;  %v596_v61 = vor.u32 %v595_v40, %v7269_v21  ;;  %v7304_v14 = vld [vmem:[%s6941_s19 + $0x98] sm:$0x1] }
  0x4b   : > { %v609_v37 = vrot.slane %v607_v8, 5  ;;  %v623_v22 = vshll.u32 %v7266_v3, 16  ;;  %v7301_v35 = vrot.slane %v613_v28, 5  ;;  %v652_v40 = vshrl.u32 %v7273_v4, 16  ;;  %v7324_v3 = vld [vmem:[%s6941_s19 + $0xac] sm:$0xf] }
  0x4c   : > { %v655_v20 = vshll.u32 %v7273_v4, 16  ;;  %v630_v38 = vrot.slane %v628_v31, 4  ;;  %v7310_v8 = vrot.slane %v637_v47, 5  ;;  %v7315_v28 = vcombine.low %v520_v50, %v530_v17 }
  0x4d   : > { %v661_v4 = vshll.u32 %v7284_v46, 16  ;;  %v665_v25 = vshrl.u32 %v7284_v46, 16  ;;  %v554_v31 = vsel %vm6971_vm3, %v549_v6, %v7261_v43  ;;  %v7331_v50 = vrot.slane %v596_v61, 4 }
  0x4e   : > { %5946 = vmatmul.mubr.msk.bf16.gmra.mxu0 %vm796_vm1, %v7184_v55  ;;  %5983 = vmatmul.mubr.msk.bf16.gmra.mxu1 %vm796_vm1, %v7188_v56  ;;  %v10141_v55 = vmov 0   ;;  %v599_v56 = vshll.u32 %v7213_v48, 16  ;;  %v7286_v48 = vrot.slane %v562_v16, 4  ;;  %v619_v16 = vrot.slane %v617_v44, 4  ;;  %10145 = vst [vmem:[#allocation35_spill] sm:$0xff] %v7315_v28 }
  0x4f   : > { %937 = vmatprep.mubr.bf16.mxu0 %v10141_v55  ;;  %1288 = vmatprep.mubr.bf16.mxu1 %v10141_v55  ;;  %v544_v44 = vsel %vm6971_vm3, %v7259_v1, %v7199_v5  ;;  %v610_v17 = vor.u32 %v609_v37, %v606_v18  ;;  %v654_v47 = vrot.slane %v652_v40, 4  ;;  %v676_v5 = vshrl.u32 %v7295_v60, 16 }
  0x50   : > { %v7290_v59 = vrot.slane %v599_v56, 5  ;;  %v633_v56 = vrot.slane %v631_v32, 5  ;;  %v7329_v32 = vrot.slane %v586_v41, 4  ;;  %v679_v1 = vshll.u32 %v7295_v60, 16 }
  0x51   : > { %v620_v29 = vor.u32 %v619_v16, %v7301_v35  ;;  %v7336_v46 = vrot.slane %v623_v22, 5  ;;  %v647_v26 = vshll.u32 %v7304_v14, 16  ;;  %v7343_v61 = vrot.slane %v661_v4, 5 }
  0x52   : > { %v634_v15 = vor.u32 %v633_v56, %v630_v38  ;;  %v667_v37 = vrot.slane %v665_v25, 4  ;;  %v7348_v43 = vcombine.low %v7156_v24, %v7162_v27  ;;  %v685_v6 = vshll.u32 %v7324_v3, 16  ;;  %v7391_v56 = vld [vmem:[%s6941_s19 + $0xbc] sm:$0x1] }
  0x53   : > { %v689_v22 = vshrl.u32 %v7324_v3, 16  ;;  %v7354_v16 = vcombine.low %v544_v44, %v554_v31  ;;  %v678_v25 = vrot.slane %v676_v5, 4  ;;  %v681_v4 = vrot.slane %v679_v1, 5  ;;  %v7374_v5 = vld [vmem:[%s6941_s19 + $0xb4] sm:$0xf] }
  0x54   : > { %10146 = vst [vmem:[#allocation36_spill] sm:$0xff] %v7348_v43  ;;  %v7360_v40 = vrot.slane %v610_v17, 4  ;;  %v7364_v38 = vrot.slane %v647_v26, 5  ;;  %v7367_v44 = vrot.slane %v634_v15, 4  ;;  %v7379_v17 = vrot.slane %v685_v6, 5 }
  0x55   : > { %10147 = vst [vmem:[#allocation37_spill] sm:$0xff] %v7354_v16  ;;  %v691_v26 = vrot.slane %v689_v22, 4  ;;  %v568_v15 = vsel %vm6971_vm3, %v7286_v48, %v7222_v30  ;;  %v592_v6 = vsel %vm6971_vm3, %v7329_v32, %v7269_v21  ;;  %v5993_v22 = vrot.slane %v6947_v10, 9 }
  0x56   : > { %5947 = vmatmul.mubr.msk.bf16.gmra.mxu0 %vm796_vm1, %v7225_v33  ;;  %5984 = vmatmul.mubr.msk.bf16.gmra.mxu1 %vm796_vm1, %v7220_v9  ;;  %v643_v33 = vrot.slane %v641_v63, 4  ;;  %v7313_v9 = vld [vmem:[%s6941_s19 + $0xa4] sm:$0x1]  ;;  %v657_v63 = vrot.slane %v655_v20, 5  ;;  %v7362_v20 = vrot.slane %v620_v29, 4  ;;  %v700_v21 = vshrl.u32 %v7374_v5, 16 }
  0x57   : > { %947 = vmatprep.mubr.bf16.mxu0 %v10141_v55  ;;  %1298 = vmatprep.mubr.bf16.mxu1 %v10141_v55  ;;  %v671_v18 = vshll.u32 %v7313_v9, 16  ;;  %v703_v32 = vshll.u32 %v7374_v5, 16  ;;  %vm4287_vm12 = vcmask 195584   ;;  %vm4290_vm13 = vcmask 228352  }
  0x58   : > { %v644_v41 = vor.u32 %v643_v33, %v7310_v8  ;;  %v658_v33 = vor.u32 %v657_v63, %v654_v47  ;;  %v668_v47 = vor.u32 %v667_v37, %v7343_v61  ;;  %v695_v63 = vshll.u32 %v7340_v57, 16 }
  0x59   : > { %v7376_v1 = vrot.slane %v671_v18, 5  ;;  %v682_v37 = vor.u32 %v681_v4, %v678_v25  ;;  %v578_v18 = vsel %vm6971_vm3, %v7288_v51, %v7275_v7  ;;  %v10148_v25 = vmov 0 }
  0x5a   : > { %v7369_v31 = vrot.slane %v644_v41, 4  ;;  %v7388_v41 = vrot.slane %v658_v33, 4  ;;  %v7402_v48 = vrot.slane %v668_v47, 4  ;;  %v7404_v30 = vrot.slane %v695_v63, 5 }
  0x5b   : > { %v10149_v25 = vsel %vm7407_vm6, 4294967295, %v10148_v25  ;;  %v10151_v7 = vrot.slane %v6950_v11, 5  ;;  %v692_v4 = vor.u32 %v691_v26, %v7379_v17  ;;  %v602_v63 = vsel %vm6971_vm3, %v7331_v50, %v7290_v59 }
  0x5c   : > { %10150 = vst [vmem:[#allocation38_spill] sm:$0xff] %v10149_v25  ;;  %v7430_v26 = vrot.slane %v682_v37, 4  ;;  %v10153_v11 = vrot.slane %v6953_v12, 5  ;;  %v7449_v12 = vcombine.low %v568_v15, %v578_v18  ;;  %v1421_v33 = vrot.slane %v6989_v0, 5 }
  0x5d   : > { %v1402_v51 = vrot.slane %v10151_v7, 4  ;;  %v10152_v10 = vmov %v10151_v7  ;;  %v7457_v29 = vcombine.low %v592_v6, %v602_v63  ;;  %v7463_v59 = vrot.slane %v692_v4, 4 }
  0x5e   : > { %5948 = vmatmul.mubr.msk.bf16.gmra.mxu0 %vm796_vm1, %v7315_v28  ;;  %5985 = vmatmul.mubr.msk.bf16.gmra.mxu1 %vm796_vm1, %v7244_v58  ;;  %v7382_v28 = vld [vmem:[%s6941_s19 + $0xb8] sm:$0xf]  ;;  %v7420_v47 = vsel %vm7407_vm6, %v5993_v22, %v10152_v10  ;;  %v7443_v10 = vcombine.low %v7182_v53, %v7193_v45  ;;  %10155 = vst [vmem:[#allocation40_spill] sm:$0xff] %v7449_v12  ;;  %v1424_v15 = vrot.slane %v7003_v13, 5  ;;  %v1423_v37 = vrot.slane %v1421_v33, 4 }
  0x5f   : > { %957 = vmatprep.mubr.bf16.mxu0 %v10141_v55  ;;  %1308 = vmatprep.mubr.bf16.mxu1 %v10141_v55  ;;  %v7437_v22 = vsel %vm7407_vm6, %v1402_v51, %v10153_v11  ;;  %v7453_v51 = vcombine.low %v7216_v2, %v7231_v49  ;;  %v5996_v11 = vrot.slane %v6983_v54, 9  ;;  %v5997_v7 = vrot.slane %v7008_v19, 9 }
  0x60   : > { %10154 = vst [vmem:[#allocation39_spill] sm:$0xff] %v7443_v10  ;;  %v1428_v54 = vrot.slane %v7015_v23, 5  ;;  %v7470_v0 = vrot.slane %v700_v21, 4  ;;  %v1431_v6 = vrot.slane %v7045_v42, 5  ;;  %v5998_v63 = vrot.slane %v7033_v34, 9 }
  0x61   : > { %10156 = vst [vmem:[#allocation41_spill] sm:$0xff] %v7453_v51  ;;  %v1422_v18 = vsel %vm7407_vm6, %v5996_v11, %v1421_v33  ;;  %v1435_v50 = vrot.slane %v7042_v39, 5  ;;  %v7475_v4 = vrot.slane %v703_v32, 5  ;;  %v1425_v13 = vsel %vm7407_vm6, %v1423_v37, %v1424_v15  ;;  %v10158_v32 = vld [vmem:[#allocation11_spill] sm:$0xff] }
  0x62   : > { %v1429_v33 = vsel %vm7407_vm6, %v5997_v7, %v1428_v54  ;;  %v1430_v11 = vrot.slane %v1428_v54, 4  ;;  %v7481_v19 = vcombine.low %v1422_v18, %v1425_v13  ;;  %v1438_v42 = vrot.slane %v7072_v62, 5  ;;  %v10159_v37 = vld [vmem:[#allocation15_spill] sm:$0xff]  ;;  %v10161_v18 = vld [vmem:[#allocation13_spill] sm:$0xff] }
  0x63   : > { %v1436_v23 = vsel %vm7407_vm6, %v5998_v63, %v1435_v50  ;;  %v1437_v21 = vrot.slane %v1435_v50, 4  ;;  %v5999_v39 = vrot.slane %v7054_v52, 9  ;;  %v1442_v7 = vrot.slane %v10158_v32, 5  ;;  %v10162_v63 = vld [vmem:[#allocation16_spill] sm:$0xff]  ;;  %v10164_v32 = vld [vmem:[#allocation18_spill] sm:$0xff] }
  0x64   : > { %10157 = vst [vmem:[#allocation42_spill] sm:$0xff] %v7481_v19  ;;  %v1432_v34 = vsel %vm7407_vm6, %v1430_v11, %v1431_v6  ;;  %v1445_v15 = vrot.slane %v10159_v37, 5  ;;  %v6000_v54 = vrot.slane %v10161_v18, 9  ;;  %v1449_v13 = vrot.slane %v10162_v63, 5  ;;  %v10167_v18 = vld [vmem:[#allocation22_spill] sm:$0xff] }
  0x65   : > { %v7497_v62 = vcombine.low %v1429_v33, %v1432_v34  ;;  %v1439_v50 = vsel %vm7407_vm6, %v1437_v21, %v1438_v42  ;;  %v1443_v52 = vsel %vm7407_vm6, %v5999_v39, %v1442_v7  ;;  %v1444_v11 = vrot.slane %v1442_v7, 4  ;;  %v10165_v34 = vld [vmem:[#allocation17_spill] sm:$0xff] }
  0x66   : > { %5949 = vmatmul.mubr.msk.bf16.gmra.mxu0 %vm796_vm1, %v7354_v16  ;;  %5986 = vmatmul.mubr.msk.bf16.gmra.mxu1 %vm796_vm1, %v7348_v43  ;;  %v7503_v6 = vcombine.low %v1436_v23, %v1439_v50  ;;  %v1452_v37 = vrot.slane %v10164_v32, 5  ;;  %v1451_v33 = vrot.slane %v1449_v13, 4  ;;  %v6001_v16 = vrot.slane %v10165_v34, 9 }
  0x67   : > { %967 = vmatprep.mubr.bf16.mxu0 %v10141_v55  ;;  %1318 = vmatprep.mubr.bf16.mxu1 %v10141_v55  ;;  %10160 = vst [vmem:[#allocation11_spill] sm:$0xff] %v7497_v62  ;;  %v1446_v42 = vsel %vm7407_vm6, %v1444_v11, %v1445_v15  ;;  %v1459_v23 = vrot.slane %v10167_v18, 5  ;;  %v6002_v50 = vrot.slane %v7156_v24, 9  ;;  %v1463_v39 = vrot.slane %v7162_v27, 5  ;;  %v10170_v11 = vld [vmem:[#allocation25_spill] sm:$0xff] }
  0x68   : > { %10163 = vst [vmem:[#allocation15_spill] sm:$0xff] %v7503_v6  ;;  %v7517_v7 = vcombine.low %v1443_v52, %v1446_v42  ;;  %v1453_v63 = vsel %vm7407_vm6, %v1451_v33, %v1452_v37  ;;  %v1466_v34 = vrot.slane %v10170_v11, 5  ;;  %v6003_v27 = vrot.slane %v7182_v53, 9  ;;  %v10171_v37 = vld [vmem:[#allocation26_spill] sm:$0xff] }
  0x69   : > { %v1465_v15 = vrot.slane %v1463_v39, 4  ;;  %v1470_v52 = vrot.slane %v7193_v45, 5  ;;  %v1473_v33 = vrot.slane %v10171_v37, 5  ;;  %v6004_v18 = vrot.slane %v7216_v2, 9 }
  0x6a   : > { %10168 = vst [vmem:[#allocation13_spill] sm:$0xff] %v7517_v7  ;;  %vm4295_vm14 = vcmask 293888   ;;  %vm4298_vm15 = vcmask 326656   ;;  %vm4301_vm0 = vcmask 359424   ;;  %vm4304_vm2 = vcmask 392192  }
  0x6b   : > { %v1467_v53 = vsel %vm7407_vm6, %v1465_v15, %v1466_v34  ;;  %v1472_v42 = vrot.slane %v1470_v52, 4  ;;  %vm4310_vm4 = vcmask 457728   ;;  %vm4313_vm5 = vcmask 490496  }
  0x6e   : > { %5950 = vmatmul.mubr.msk.bf16.gmra.mxu0 %vm796_vm1, %v7449_v12  ;;  %5987 = vmatmul.mubr.msk.bf16.gmra.mxu1 %vm796_vm1, %v7443_v10  ;;  %v1450_v12 = vsel %vm7407_vm6, %v6000_v54, %v1449_v13  ;;  %v10166_v10 = vld [vmem:[#allocation19_spill] sm:$0xff] }
  0x6f   : > { %977 = vmatprep.mubr.bf16.mxu0 %v10141_v55  ;;  %1328 = vmatprep.mubr.bf16.mxu1 %v10141_v55  ;;  %v1456_v21 = vrot.slane %v10166_v10, 5  ;;  %v7523_v32 = vcombine.low %v1450_v12, %v1453_v63  ;;  %v1464_v10 = vsel %vm7407_vm6, %v6002_v50, %v1463_v39  ;;  %v10174_v50 = vld [vmem:[#allocation32_spill] sm:$0xff]  ;;  %v10175_v63 = vsel %vm6971_vm3, %v7360_v40, %v7301_v35 }
  0x70   : > { %v7547_v45 = vcombine.low %v1464_v10, %v1467_v53  ;;  %v1480_v39 = vrot.slane %v10174_v50, 5  ;;  %v10177_v10 = vld [vmem:[#allocation30_spill] sm:$0xff]  ;;  %v640_v35 = vsel %vm6971_vm3, %v7367_v44, %v7310_v8  ;;  %v650_v40 = vsel %vm6971_vm3, %v7369_v31, %v7364_v38 }
  0x71   : > { %v1457_v54 = vsel %vm7407_vm6, %v6001_v16, %v1456_v21  ;;  %v1458_v13 = vrot.slane %v1456_v21, 4  ;;  %10169 = vst [vmem:[#allocation16_spill] sm:$0xff] %v7523_v32  ;;  %v626_v16 = vsel %vm6971_vm3, %v7362_v20, %v7336_v46  ;;  %v1471_v21 = vsel %vm7407_vm6, %v6003_v27, %v1470_v52  ;;  %v10182_v53 = vld [vmem:[#allocation34_spill] sm:$0xff] }
  0x72   : > { %10173 = vst [vmem:[#allocation17_spill] sm:$0xff] %v7547_v45  ;;  %v1477_v46 = vrot.slane %v7231_v49, 5  ;;  %v1474_v20 = vsel %vm7407_vm6, %v1472_v42, %v1473_v33  ;;  %v6005_v37 = vrot.slane %v10177_v10, 9  ;;  %v10185_v38 = vrot.slane %v7304_v14, 5 }
  0x73   : > { %v1460_v24 = vsel %vm7407_vm6, %v1458_v13, %v1459_v23  ;;  %v10176_v13 = vld [vmem:[#allocation31_spill] sm:$0xff]  ;;  %v7567_v49 = vcombine.low %v1471_v21, %v1474_v20  ;;  %v10183_v21 = vld [vmem:[#allocation33_spill] sm:$0xff]  ;;  %v674_v14 = vsel %vm6971_vm3, %v7402_v48, %v7376_v1  ;;  %v10187_v20 = vshrl.u32 %v7382_v28, 16 }
  0x74   : > { %v7541_v12 = vcombine.low %v1457_v54, %v1460_v24  ;;  %v1479_v23 = vrot.slane %v1477_v46, 4  ;;  %v7561_v54 = vcombine.low %v10175_v63, %v626_v16  ;;  %v7565_v15 = vcombine.low %v10177_v10, %v10176_v13 }
  0x75   : > { %10179 = vst [vmem:[#allocation22_spill] sm:$0xff] %v7567_v49  ;;  %v1478_v11 = vsel %vm7407_vm6, %v6004_v18, %v1477_v46  ;;  %v10181_v24 = vshll.u32 %v7382_v28, 16  ;;  %v1484_v52 = vrot.slane %v10176_v13, 5  ;;  %v7593_v16 = vcombine.low %v640_v35, %v650_v40 }
  0x76   : > { %5951 = vmatmul.mubr.msk.bf16.gmra.mxu0 %vm796_vm1, %v7457_v29  ;;  %5988 = vmatmul.mubr.msk.bf16.gmra.mxu1 %vm796_vm1, %v7453_v51  ;;  %10172 = vst [vmem:[#allocation18_spill] sm:$0xff] %v7541_v12  ;;  %10178 = vst [vmem:[#allocation19_spill] sm:$0xff] %v7565_v15  ;;  %v1481_v2 = vsel %vm7407_vm6, %v1479_v23, %v1480_v39  ;;  %v7597_v8 = vcombine.low %v10183_v21, %v10182_v53  ;;  %v715_v18 = vrot.slane %v10187_v20, 4  ;;  %v6736_v20 = vld [vmem:[%s6941_s19 + $0x10] sm:$0xf] }
  0x77   : > { %987 = vmatprep.mubr.bf16.mxu0 %v10141_v55  ;;  %1338 = vmatprep.mubr.bf16.mxu1 %v10141_v55  ;;  %v7573_v34 = vcombine.low %v1478_v11, %v1481_v2  ;;  %v711_v27 = vrot.slane %v10181_v24, 5  ;;  %v1486_v33 = vrot.slane %v1484_v52, 4  ;;  %v1485_v44 = vsel %vm7407_vm6, %v6005_v37, %v1484_v52 }
  0x78   : > { %10184 = vst [vmem:[#allocation26_spill] sm:$0xff] %v7597_v8  ;;  %v664_v46 = vsel %vm6971_vm3, %v7388_v41, %v7343_v61  ;;  %v1491_v23 = vrot.slane %v10182_v53, 5  ;;  %v6006_v50 = vrot.slane %v10183_v21, 9  ;;  %v7629_v61 = vcombine.low %v7295_v60, %v7324_v3  ;;  %v6631_v21 = vld [vmem:[%s10020_s1 + $0x94] ss:$8 sps:$4 sm:$0xff]  }
  0x79   : > { %10180 = vst [vmem:[#allocation25_spill] sm:$0xff] %v7573_v34  ;;  %v1488_v31 = vsel %vm7407_vm6, %v1486_v33, %v10185_v38  ;;  %v7625_v63 = vcombine.low %v664_v46, %v674_v14  ;;  %v10189_v1 = vrot.slane %v7313_v9, 5  ;;  %v688_v10 = vsel %vm6971_vm3, %v7430_v26, %v7379_v17  ;;  %2245 = vmatprep.subr.bf16.mxu0 %v6631_v21 }
  0x7a   : > { %v7605_v42 = vcombine.low %v1485_v44, %v1488_v31  ;;  %v1493_v39 = vrot.slane %v1491_v23, 4  ;;  %10188 = vst [vmem:[#allocation31_spill] sm:$0xff] %v7629_v61  ;;  %v1492_v41 = vsel %vm7407_vm6, %v6006_v50, %v1491_v23  ;;  %v698_v9 = vsel %vm6971_vm3, %v7463_v59, %v7404_v30  ;;  %v6633_v23 = vld [vmem:[%s10020_s1 + $0xb0] ss:$8 sps:$4 sm:$0xff]   ;;  %v6641_v50 = vld [vmem:[%s10020_s1 + $0xa4] ss:$8 sps:$4 sm:$0xff]  }
  0x7b   : > { %v706_v11 = vor.u32 %v7475_v4, %v7470_v0  ;;  %v716_v2 = vor.u32 %v715_v18, %v711_v27  ;;  %v1498_v35 = vrot.slane %v7324_v3, 5  ;;  %v6007_v17 = vrot.slane %v7295_v60, 9 }
  0x7c   : > { %10186 = vst [vmem:[#allocation32_spill] sm:$0xff] %v7605_v42  ;;  %v1495_v48 = vsel %vm7407_vm6, %v1493_v39, %v10189_v1  ;;  %v7657_v40 = vcombine.low %v688_v10, %v698_v9  ;;  %v10191_v24 = vshll.u32 %v7391_v56, 16  ;;  %v7663_v37 = vcombine.low %v7374_v5, %v7382_v28  ;;  %v6737_v39 = vld [vmem:[%s6941_s19 + $0xc] sm:$0xf]  ;;  %v6639_v9 = vld [vmem:[%s10020_s1 + $0xa0] ss:$8 sps:$4 sm:$0xff]  }
  0x7d   : > { %v7637_v13 = vcombine.low %v1492_v41, %v1495_v48  ;;  %v1500_v26 = vrot.slane %v1498_v35, 4  ;;  %v707_v30 = vrot.slane %v706_v11, 4  ;;  %v717_v59 = vrot.slane %v716_v2, 4  ;;  %v6738_v48 = vld [vmem:[%s6941_s19 + $0x14] sm:$0x1] }
  0x7e   : > { %5952 = vmatmul.mubr.msk.bf16.gmra.mxu0 %vm796_vm1, %v7561_v54  ;;  %5989 = vmatmul.mubr.msk.bf16.gmra.mxu1 %vm796_vm1, %v7565_v15  ;;  %v721_v52 = vrot.slane %v10191_v24, 5  ;;  %10192 = vst [vmem:[#allocation34_spill] sm:$0xff] %v7663_v37  ;;  %v1499_v0 = vsel %vm7407_vm6, %v6007_v17, %v1498_v35  ;;  %v10193_v4 = vrot.slane %v7340_v57, 5  ;;  %v1508_v57 = vrot.slane %v7391_v56, 5  ;;  %v6629_v11 = vld [vmem:[%s10020_s1 + $0x90] ss:$8 sps:$4 sm:$0xff]  }
  0x7f   : > { %997 = vmatprep.mubr.bf16.mxu0 %v10141_v55  ;;  %1348 = vmatprep.mubr.bf16.mxu1 %v10141_v55  ;;  %10190 = vst [vmem:[#allocation30_spill] sm:$0xff] %v7637_v13  ;;  %v712_v33 = vsel %vm6971_vm3, %v707_v30, %v711_v27  ;;  %v1505_v44 = vrot.slane %v7382_v28, 5  ;;  %v6008_v38 = vrot.slane %v7374_v5, 9  ;;  %v10197_v28 = vld [vmem:[#allocation6_spill] sm:$0xff]  ;;  %v6635_v5 = vld [vmem:[%s10020_s1 + $0xb4] ss:$8 sps:$4 sm:$0xff]   ;;  %v10198_v35 = vcombine.low %v7420_v47, %v7437_v22 }
  0x80   : > { %v1502_v60 = vsel %vm7407_vm6, %v1500_v26, %v10193_v4  ;;  %v722_v53 = vsel %vm6971_vm3, %v717_v59, %v721_v52  ;;  %v1407_v18 = vrot.slane %v6736_v20, 5  ;;  %2541 = vmatprep.subr.bf16.mxu1 %v6635_v5  ;;  %v5994_v41 = vrot.slane %v6737_v39, 9  ;;  %v6638_v2 = vld [vmem:[%s10020_s1 + $0x84] ss:$8 sps:$4 sm:$0xff]   ;;  %v10199_v17 = vld [vmem:[#allocation8_spill] sm:$0xff]  ;;  %v10206_v39 = vld [vmem:[#allocation39_spill] sm:$0xff] }
  0x81   : > { %v7671_v3 = vcombine.low %v1499_v0, %v1502_v60  ;;  %v1507_v31 = vrot.slane %v1505_v44, 4  ;;  %v7689_v27 = vcombine.low %v712_v33, %v722_v53  ;;  %v1506_v46 = vsel %vm7407_vm6, %v6008_v38, %v1505_v44  ;;  %v6739_v52 = vld [vmem:[%s6941_s19 + $0x1c] sm:$0xf]  ;;  %v6636_v47 = vld [vmem:[%s10020_s1 + $0x80] ss:$8 sps:$4 sm:$0xff]  }
  0x82   : > { %v1409_v1 = vrot.slane %v1407_v18, 4  ;;  %v1410_v10 = vrot.slane %v6738_v48, 5  ;;  %v1408_v26 = vsel %vm7407_vm6, %v5994_v41, %v1407_v18  ;;  %v1414_v30 = vrot.slane %v6739_v52, 5  ;;  %v6740_v59 = vld [vmem:[%s6941_s19 + $0x18] sm:$0xf]  ;;  %v10200_v53 = vld [vmem:[#allocation10_spill] sm:$0xff] }
  0x83   : > { %10194 = vst [vmem:[#allocation33_spill] sm:$0xff] %v7671_v3  ;;  %10195 = vst [vmem:[#allocation43_spill] sm:$0xff] %v7689_v27  ;;  %v1509_v56 = vsel %vm7407_vm6, %v1507_v31, %v1508_v57  ;;  %v5995_v0 = vrot.slane %v6740_v59, 9  ;;  %v6741_v60 = vld [vmem:[%s6941_s19 + $0x20] sm:$0x1]  ;;  %v10202_v38 = vld [vmem:[#allocation12_spill] sm:$0xff] }
  0x84   : > { %v7695_v14 = vcombine.low %v1506_v46, %v1509_v56  ;;  %v1411_v24 = vsel %vm7407_vm6, %v1409_v1, %v1410_v10  ;;  %v1416_v4 = vrot.slane %v1414_v30, 4  ;;  %v1417_v33 = vrot.slane %v6741_v60, 5  ;;  %v10203_v31 = vld [vmem:[#allocation20_spill] sm:$0xff]  ;;  %v10205_v56 = vld [vmem:[#allocation27_spill] sm:$0xff] }
  0x85   : > { %v7740_v22 = vcombine.low %v1408_v26, %v1411_v24  ;;  %v1415_v57 = vsel %vm7407_vm6, %v5995_v0, %v1414_v30  ;;  %v10204_v46 = vld [vmem:[#allocation24_spill] sm:$0xff] }
  0x86   : > { %5953 = vmatmul.mubr.msk.bf16.gmra.mxu0 %vm796_vm1, %v7593_v16  ;;  %5990 = vmatmul.mubr.msk.bf16.gmra.mxu1 %vm796_vm1, %v7597_v8  ;;  %10196 = vst [vmem:[#allocation44_spill] sm:$0xff] %v7695_v14  ;;  %v1418_v21 = vsel %vm7407_vm6, %v1416_v4, %v1417_v33 }
  0x87   : > { %1007 = vmatprep.mubr.bf16.mxu0 %v10141_v55  ;;  %1358 = vmatprep.mubr.bf16.mxu1 %v10141_v55  ;;  %v7754_v44 = vcombine.low %v1415_v57, %v1418_v21 }
  0x89   : > { %10201 = vst [vmem:[#allocation6_spill] sm:$0xff] %v7754_v44 }
  0x8e   : > { %5954 = vmatmul.mubr.msk.bf16.gmra.mxu0 %vm796_vm1, %v7625_v63  ;;  %5991 = vmatmul.mubr.msk.bf16.gmra.mxu1 %vm796_vm1, %v7629_v61 }
  0x8f   : > { %1017 = vmatprep.mubr.bf16.mxu0 %v10141_v55  ;;  %1368 = vmatprep.mubr.bf16.mxu1 %v10141_v55 }
  0x96   : > { %5955 = vmatmul.mubr.msk.bf16.gmra.mxu0 %vm796_vm1, %v7657_v40  ;;  %5992 = vmatmul.mubr.msk.bf16.gmra.mxu1 %vm796_vm1, %v7663_v37 }
  0x97   : > { %1027 = vmatprep.mubr.bf16.mxu0 %v10141_v55  ;;  %1953 = vmatprep.mubr.bf16.mxu1 %v10141_v55 }
  0x9e   : > { %5956 = vmatmul.mubr.msk.bf16.gmra.mxu0 %vm796_vm1, %v7689_v27  ;;  %6058 = vmatmul.mubr.msk.bf16.vlgmr.msra.gmra.mxu1 %vm796_vm1, %v10197_v28 }
  0x9f   : > { %1663 = vmatprep.mubr.bf16.mxu0 %v10141_v55  ;;  %1963 = vmatprep.mubr.bf16.mxu1 %v10141_v55 }
  0xa0   : > { %2542 = vmatpush1.bf16.msra.mxu1 %v6633_v23 }
  0xa1   : > { %2543 = vmatprep.subr.bf16.mxu1 %v6641_v50 }
  0xa4   : > { %2544 = vmatpush1.bf16.msra.mxu1 %v6639_v9 }
  0xa6   : > { %6033 = vmatmul.mubr.msk.bf16.vlgmr.msra.gmra.mxu0 %vm796_vm1, %v10198_v35  ;;  %6059 = vmatmul.mubr.msk.bf16.gmra.mxu1 %vm796_vm1, %v10199_v17 }
  0xa7   : > { %1673 = vmatprep.mubr.bf16.mxu0 %v10141_v55  ;;  %1973 = vmatprep.mubr.bf16.mxu1 %v10141_v55 }
  0xa8   : > { %2246 = vmatpush1.bf16.msra.mxu0 %v6629_v11 }
  0xa9   : > { %2247 = vmatprep.subr.bf16.mxu0 %v6638_v2 }
  0xac   : > { %2248 = vmatpush1.bf16.msra.mxu0 %v6636_v47 }
  0xae   : > { %6034 = vmatmul.mubr.msk.bf16.gmra.mxu0 %vm796_vm1, %v7740_v22  ;;  %6060 = vmatmul.mubr.msk.bf16.gmra.mxu1 %vm796_vm1, %v10200_v53 }
  0xaf   : > { %1683 = vmatprep.mubr.bf16.mxu0 %v10141_v55  ;;  %1983 = vmatprep.mubr.bf16.mxu1 %v10141_v55 }
  0xb6   : > { %6035 = vmatmul.mubr.msk.bf16.gmra.mxu0 %vm796_vm1, %v7754_v44  ;;  %6061 = vmatmul.mubr.msk.bf16.gmra.mxu1 %vm796_vm1, %v10202_v38 }
  0xb7   : > { %1693 = vmatprep.mubr.bf16.mxu0 %v10141_v55  ;;  %1993 = vmatprep.mubr.bf16.mxu1 %v10141_v55 }
  0xbe   : > { %6036 = vmatmul.mubr.msk.bf16.gmra.mxu0 %vm796_vm1, %v7481_v19  ;;  %6062 = vmatmul.mubr.msk.bf16.gmra.mxu1 %vm796_vm1, %v10203_v31 }
  0xbf   : > { %1703 = vmatprep.mubr.bf16.mxu0 %v10141_v55  ;;  %2003 = vmatprep.mubr.bf16.mxu1 %v10141_v55 }
  0xc6   : > { %6037 = vmatmul.mubr.msk.bf16.gmra.mxu0 %vm796_vm1, %v7497_v62  ;;  %6063 = vmatmul.mubr.msk.bf16.gmra.mxu1 %vm796_vm1, %v10204_v46 }
  0xc7   : > { %1713 = vmatprep.mubr.bf16.mxu0 %v10141_v55  ;;  %2013 = vmatprep.mubr.bf16.mxu1 %v10141_v55 }
  0xce   : > { %6038 = vmatmul.mubr.msk.bf16.gmra.mxu0 %vm796_vm1, %v7503_v6  ;;  %6064 = vmatmul.mubr.msk.bf16.gmra.mxu1 %vm796_vm1, %v10205_v56 }
  0xcf   : > { %1723 = vmatprep.mubr.bf16.mxu0 %v10141_v55  ;;  %2023 = vmatprep.mubr.bf16.mxu1 %v10141_v55 }
  0xd6   : > { %6039 = vmatmul.mubr.msk.bf16.gmra.mxu0 %vm796_vm1, %v7517_v7  ;;  %6065 = vmatmul.mubr.msk.bf16.gmra.mxu1 %vm796_vm1, %v7244_v58 }
  0xd7   : > { %1733 = vmatprep.mubr.bf16.mxu0 %v10141_v55  ;;  %2033 = vmatprep.mubr.bf16.mxu1 %v10141_v55 }
  0xde   : > { %6040 = vmatmul.mubr.msk.bf16.gmra.mxu0 %vm796_vm1, %v7523_v32  ;;  %v1220_v28 = vpop.f32.mrf.mxu1  ;;  %6066 = vmatmul.mubr.msk.bf16.gmra.mxu1 %vm796_vm1, %v7348_v43 }
  0xdf   : > { %1743 = vmatprep.mubr.bf16.mxu0 %v10141_v55  ;;  %2043 = vmatprep.mubr.bf16.mxu1 %v10141_v55 }
  0xe0   : > { %v1222_v5 = vpop.f32.mrf.mxu1 }
  0xe2   : > { %v1224_v20 = vpop.f32.mrf.mxu1 }
  0xe4   : > { %v1226_v18 = vpop.f32.mrf.mxu1 }
  0xe6   : > { %v879_v23 = vpop.f32.mrf.mxu0  ;;  %6041 = vmatmul.mubr.msk.bf16.gmra.mxu0 %vm796_vm1, %v7541_v12  ;;  %v1230_v50 = vpop.f32.mrf.mxu1  ;;  %6067 = vmatmul.mubr.msk.bf16.gmra.mxu1 %vm796_vm1, %v10206_v39 }
  0xe7   : > { %v7796_v41 = vadd.f32 %v1220_v28, %v879_v23  ;;  %1753 = vmatprep.mubr.bf16.mxu0 %v10141_v55  ;;  %2053 = vmatprep.mubr.bf16.mxu1 %v10141_v55 }
  0xe8   : > { %v881_v1 = vpop.f32.mrf.mxu0  ;;  %v1232_v48 = vpop.f32.mrf.mxu1 }
  0xe9   : > { %v7800_v10 = vadd.f32 %v1222_v5, %v881_v1 }
  0xea   : > { %v883_v9 = vpop.f32.mrf.mxu0  ;;  %v1234_v11 = vpop.f32.mrf.mxu1 }
  0xeb   : > { %v7802_v2 = vadd.f32 %v1224_v20, %v883_v9 }
  0xec   : > { %v885_v35 = vpop.f32.mrf.mxu0  ;;  %v1236_v26 = vpop.f32.mrf.mxu1 }
  0xed   : > { %v7804_v24 = vadd.f32 %v1226_v18, %v885_v35 }
  0xee   : > { %v889_v52 = vpop.f32.mrf.mxu0  ;;  %6042 = vmatmul.mubr.msk.bf16.gmra.mxu0 %vm796_vm1, %v7547_v45  ;;  %v1240_v30 = vpop.f32.mrf.mxu1  ;;  %6068 = vmatmul.mubr.msk.bf16.gmra.mxu1 %vm796_vm1, %v7453_v51 }
  0xef   : > { %v7810_v47 = vadd.f32 %v1230_v50, %v889_v52  ;;  %1763 = vmatprep.mubr.bf16.mxu0 %v10141_v55  ;;  %2063 = vmatprep.mubr.bf16.mxu1 %v10141_v55 }
  0xf0   : > { %v891_v59 = vpop.f32.mrf.mxu0  ;;  %v1242_v0 = vpop.f32.mrf.mxu1 }
  0xf1   : > { %v7814_v4 = vadd.f32 %v1232_v48, %v891_v59 }
  0xf2   : > { %v893_v60 = vpop.f32.mrf.mxu0  ;;  %v1244_v33 = vpop.f32.mrf.mxu1 }
  0xf3   : > { %v7816_v57 = vadd.f32 %v1234_v11, %v893_v60 }
  0xf4   : > { %v895_v21 = vpop.f32.mrf.mxu0  ;;  %v1246_v28 = vpop.f32.mrf.mxu1 }
  0xf5   : > { %v7818_v5 = vadd.f32 %v1236_v26, %v895_v21 }
  0xf6   : > { %v899_v20 = vpop.f32.mrf.mxu0  ;;  %6043 = vmatmul.mubr.msk.bf16.gmra.mxu0 %vm796_vm1, %v7567_v49  ;;  %v1250_v18 = vpop.f32.mrf.mxu1  ;;  %6069 = vmatmul.mubr.msk.bf16.gmra.mxu1 %vm796_vm1, %v7565_v15 }
  0xf7   : > { %v7824_v23 = vadd.f32 %v1240_v30, %v899_v20  ;;  %1773 = vmatprep.mubr.bf16.mxu0 %v10141_v55  ;;  %2073 = vmatprep.mubr.bf16.mxu1 %v10141_v55 }
  0xf8   : > { %v901_v50 = vpop.f32.mrf.mxu0  ;;  %v1252_v1 = vpop.f32.mrf.mxu1 }
  0xf9   : > { %v7828_v48 = vadd.f32 %v1242_v0, %v901_v50 }
  0xfa   : > { %v903_v9 = vpop.f32.mrf.mxu0  ;;  %v1254_v11 = vpop.f32.mrf.mxu1 }
  0xfb   : > { %v7830_v35 = vadd.f32 %v1244_v33, %v903_v9 }
  0xfc   : > { %v905_v26 = vpop.f32.mrf.mxu0  ;;  %v1256_v52 = vpop.f32.mrf.mxu1 }
  0xfd   : > { %v7832_v59 = vadd.f32 %v1246_v28, %v905_v26 }
  0xfe   : > { %v909_v60 = vpop.f32.mrf.mxu0  ;;  %6044 = vmatmul.mubr.msk.bf16.gmra.mxu0 %vm796_vm1, %v7573_v34  ;;  %v1260_v30 = vpop.f32.mrf.mxu1  ;;  %6070 = vmatmul.mubr.msk.bf16.gmra.mxu1 %vm796_vm1, %v7597_v8 }
  0xff   : > { %v7838_v21 = vadd.f32 %v1250_v18, %v909_v60  ;;  %1783 = vmatprep.mubr.bf16.mxu0 %v10141_v55  ;;  %2083 = vmatprep.mubr.bf16.mxu1 %v10141_v55 }
 0x100   : > { %v911_v0 = vpop.f32.mrf.mxu0  ;;  %v1262_v33 = vpop.f32.mrf.mxu1 }
 0x101   : > { %v7842_v20 = vadd.f32 %v1252_v1, %v911_v0 }
 0x102   : > { %v913_v28 = vpop.f32.mrf.mxu0  ;;  %v1264_v50 = vpop.f32.mrf.mxu1 }
 0x103   : > { %v7844_v9 = vadd.f32 %v1254_v11, %v913_v28 }
 0x104   : > { %v915_v26 = vpop.f32.mrf.mxu0  ;;  %v1266_v15 = vpop.f32.mrf.mxu1 }
 0x105   : > { %v7846_v51 = vadd.f32 %v1256_v52, %v915_v26 }
 0x106   : > { %v919_v39 = vpop.f32.mrf.mxu0  ;;  %6045 = vmatmul.mubr.msk.bf16.gmra.mxu0 %vm796_vm1, %v7605_v42  ;;  %v1270_v18 = vpop.f32.mrf.mxu1  ;;  %6071 = vmatmul.mubr.msk.bf16.gmra.mxu1 %vm796_vm1, %v7629_v61 }
 0x107   : > { %v7852_v60 = vadd.f32 %v1260_v30, %v919_v39  ;;  %1793 = vmatprep.mubr.bf16.mxu0 %v10141_v55  ;;  %2093 = vmatprep.mubr.bf16.mxu1 %v10141_v55 }
 0x108   : > { %v921_v1 = vpop.f32.mrf.mxu0  ;;  %v1272_v11 = vpop.f32.mrf.mxu1 }
 0x109   : > { %v7856_v52 = vadd.f32 %v1262_v33, %v921_v1  ;;  %v7871_v33 = vld [vmem:[%s6941_s19 + $0xc0] sm:$0xf] }
 0x10a   : > { %v923_v0 = vpop.f32.mrf.mxu0  ;;  %v1274_v28 = vpop.f32.mrf.mxu1 }
 0x10b   : > { %v7858_v26 = vadd.f32 %v1264_v50, %v923_v0  ;;  %v7874_v50 = vld [vmem:[%s6941_s19 + $0xc4] sm:$0xf] }
 0x10c   : > { %v925_v8 = vpop.f32.mrf.mxu0  ;;  %v1276_v43 = vpop.f32.mrf.mxu1  ;;  %v7880_v46 = vcombine.low %v7871_v33, %v7874_v50 }
 0x10d   : > { %v7860_v58 = vadd.f32 %v1266_v15, %v925_v8 }
 0x10e   : > { %v929_v39 = vpop.f32.mrf.mxu0  ;;  %6046 = vmatmul.mubr.msk.bf16.gmra.mxu0 %vm796_vm1, %v7637_v13  ;;  %v1280_v30 = vpop.f32.mrf.mxu1  ;;  %6072 = vmatmul.mubr.msk.bf16.gmra.mxu1 %vm796_vm1, %v7663_v37  ;;  %10207 = vst [vmem:[#allocation45_spill] sm:$0xff] %v7880_v46 }
 0x10f   : > { %v7866_v61 = vadd.f32 %v1270_v18, %v929_v39  ;;  %1803 = vmatprep.mubr.bf16.mxu0 %v10141_v55  ;;  %2103 = vmatprep.mubr.bf16.mxu1 %v10141_v55 }
 0x110   : > { %v931_v15 = vpop.f32.mrf.mxu0  ;;  %v1282_v8 = vpop.f32.mrf.mxu1 }
 0x111   : > { %v7876_v1 = vadd.f32 %v1272_v11, %v931_v15 }
 0x112   : > { %v933_v0 = vpop.f32.mrf.mxu0  ;;  %v1284_v56 = vpop.f32.mrf.mxu1 }
 0x113   : > { %v7882_v18 = vadd.f32 %v1274_v28, %v933_v0  ;;  %v6644_v28 = vld [vmem:[%s10020_s1 + $0xd4] ss:$8 sps:$4 sm:$0xff]  }
 0x114   : > { %v935_v39 = vpop.f32.mrf.mxu0  ;;  %v1286_v37 = vpop.f32.mrf.mxu1  ;;  %2831 = vmatprep.subr.bf16.mxu0 %v6644_v28 }
 0x115   : > { %v7884_v31 = vadd.f32 %v1276_v43, %v935_v39 }
 0x116   : > { %v939_v38 = vpop.f32.mrf.mxu0  ;;  %6047 = vmatmul.mubr.msk.bf16.gmra.mxu0 %vm796_vm1, %v7671_v3  ;;  %v1290_v53 = vpop.f32.mrf.mxu1  ;;  %6073 = vmatmul.mubr.msk.bf16.gmra.mxu1 %vm796_vm1, %v7880_v46 }
 0x117   : > { %v7890_v11 = vadd.f32 %v1280_v30, %v939_v38  ;;  %1813 = vmatprep.mubr.bf16.mxu0 %v10141_v55  ;;  %2561 = vmatprep.mubr.bf16.mxu1 %v10141_v55 }
 0x118   : > { %v941_v43 = vpop.f32.mrf.mxu0  ;;  %v1292_v15 = vpop.f32.mrf.mxu1 }
 0x119   : > { %10208 = vst [vmem:[#allocation46_spill] sm:$0xff] %v7890_v11  ;;  %v7897_v0 = vadd.f32 %v1282_v8, %v941_v43  ;;  %v6647_v8 = vld [vmem:[%s10020_s1 + $0xf4] ss:$8 sps:$4 sm:$0xff]  }
 0x11a   : > { %v943_v39 = vpop.f32.mrf.mxu0  ;;  %v1294_v17 = vpop.f32.mrf.mxu1  ;;  %3143 = vmatprep.subr.bf16.mxu1 %v6647_v8 }
 0x11b   : > { %10209 = vst [vmem:[#allocation47_spill] sm:$0xff] %v7897_v0  ;;  %v7899_v36 = vadd.f32 %v1284_v56, %v943_v39  ;;  %v10221_v0 = vld [vmem:[#allocation9_spill] sm:$0xff] }
 0x11c   : > { %v945_v46 = vpop.f32.mrf.mxu0  ;;  %v1296_v38 = vpop.f32.mrf.mxu1 }
 0x11d   : > { %10210 = vst [vmem:[#allocation48_spill] sm:$0xff] %v7899_v36  ;;  %v7901_v30 = vadd.f32 %v1286_v37, %v945_v46  ;;  %v6645_v37 = vld [vmem:[%s10020_s1 + $0xf0] ss:$8 sps:$4 sm:$0xff]  }
 0x11e   : > { %v949_v11 = vpop.f32.mrf.mxu0  ;;  %6048 = vmatmul.mubr.msk.bf16.gmra.mxu0 %vm796_vm1, %v7695_v14  ;;  %v1300_v27 = vpop.f32.mrf.mxu1  ;;  %6109 = vmatmul.mubr.msk.bf16.vlgmr.msra.gmra.mxu1 %vm796_vm1, %v7740_v22 }
 0x11f   : > { %10211 = vst [vmem:[#allocation49_spill] sm:$0xff] %v7901_v30  ;;  %v7910_v28 = vadd.f32 %v1290_v53, %v949_v11  ;;  %2265 = vmatprep.mubr.bf16.mxu0 %v10141_v55  ;;  %2571 = vmatprep.mubr.bf16.mxu1 %v10141_v55  ;;  %v6653_v53 = vld [vmem:[%s10020_s1 + $0xe4] ss:$8 sps:$4 sm:$0xff]  }
 0x120   : > { %v951_v46 = vpop.f32.mrf.mxu0  ;;  %v1302_v56 = vpop.f32.mrf.mxu1  ;;  %3144 = vmatpush1.bf16.msra.mxu1 %v6645_v37  ;;  %v6650_v37 = vld [vmem:[%s10020_s1 + $0xc4] ss:$8 sps:$4 sm:$0xff]  }
 0x121   : > { %10212 = vst [vmem:[#allocation50_spill] sm:$0xff] %v7910_v28  ;;  %v7917_v43 = vadd.f32 %v1292_v15, %v951_v46  ;;  %v6651_v28 = vld [vmem:[%s10020_s1 + $0xe0] ss:$8 sps:$4 sm:$0xff]   ;;  %v6642_v15 = vld [vmem:[%s10020_s1 + $0xd0] ss:$8 sps:$4 sm:$0xff]   ;;  %3145 = vmatprep.subr.bf16.mxu1 %v6653_v53 }
 0x122   : > { %v953_v22 = vpop.f32.mrf.mxu0  ;;  %v1304_v39 = vpop.f32.mrf.mxu1  ;;  %v10216_v46 = vld [vmem:[#allocation7_spill] sm:$0xff] }
 0x123   : > { %10213 = vst [vmem:[#allocation51_spill] sm:$0xff] %v7917_v43  ;;  %v7922_v11 = vadd.f32 %v1294_v17, %v953_v22 }
 0x124   : > { %v955_v30 = vpop.f32.mrf.mxu0  ;;  %v1306_v36 = vpop.f32.mrf.mxu1  ;;  %3146 = vmatpush1.bf16.msra.mxu1 %v6651_v28  ;;  %v6648_v28 = vld [vmem:[%s10020_s1 + $0xc0] ss:$8 sps:$4 sm:$0xff]  }
 0x125   : > { %10214 = vst [vmem:[#allocation52_spill] sm:$0xff] %v7922_v11  ;;  %v7930_v8 = vadd.f32 %v1296_v38, %v955_v30 }
 0x126   : > { %v959_v17 = vpop.f32.mrf.mxu0  ;;  %6083 = vmatmul.mubr.msk.bf16.vlgmr.msra.gmra.mxu0 %vm796_vm1, %v10216_v46  ;;  %v1310_v22 = vpop.f32.mrf.mxu1  ;;  %6110 = vmatmul.mubr.msk.bf16.gmra.mxu1 %vm796_vm1, %v7754_v44 }
 0x127   : > { %10215 = vst [vmem:[#allocation53_spill] sm:$0xff] %v7930_v8  ;;  %v7939_v11 = vadd.f32 %v1300_v27, %v959_v17  ;;  %2275 = vmatprep.mubr.bf16.mxu0 %v10141_v55  ;;  %2581 = vmatprep.mubr.bf16.mxu1 %v10141_v55 }
 0x128   : > { %v961_v38 = vpop.f32.mrf.mxu0  ;;  %v1312_v30 = vpop.f32.mrf.mxu1  ;;  %2832 = vmatpush1.bf16.msra.mxu0 %v6642_v15 }
 0x129   : > { %10217 = vst [vmem:[#allocation7_spill] sm:$0xff] %v7939_v11  ;;  %v7946_v53 = vadd.f32 %v1302_v56, %v961_v38  ;;  %2833 = vmatprep.subr.bf16.mxu0 %v6650_v37 }
 0x12a   : > { %v963_v46 = vpop.f32.mrf.mxu0  ;;  %v1314_v8 = vpop.f32.mrf.mxu1 }
 0x12b   : > { %10218 = vst [vmem:[#allocation54_spill] sm:$0xff] %v7946_v53  ;;  %v7948_v43 = vadd.f32 %v1304_v39, %v963_v46 }
 0x12c   : > { %v965_v27 = vpop.f32.mrf.mxu0  ;;  %v1316_v17 = vpop.f32.mrf.mxu1  ;;  %2834 = vmatpush1.bf16.msra.mxu0 %v6648_v28 }
 0x12d   : > { %10219 = vst [vmem:[#allocation55_spill] sm:$0xff] %v7948_v43  ;;  %v7950_v44 = vadd.f32 %v1306_v36, %v965_v27 }
 0x12e   : > { %v969_v11 = vpop.f32.mrf.mxu0  ;;  %6084 = vmatmul.mubr.msk.bf16.gmra.mxu0 %vm796_vm1, %v10221_v0  ;;  %v1320_v15 = vpop.f32.mrf.mxu1  ;;  %6111 = vmatmul.mubr.msk.bf16.gmra.mxu1 %vm796_vm1, %v7481_v19  ;;  %v10226_v19 = vld [vmem:[#allocation14_spill] sm:$0xff] }
 0x12f   : > { %10220 = vst [vmem:[#allocation56_spill] sm:$0xff] %v7950_v44  ;;  %v7956_v56 = vadd.f32 %v1310_v22, %v969_v11  ;;  %2285 = vmatprep.mubr.bf16.mxu0 %v10141_v55  ;;  %2591 = vmatprep.mubr.bf16.mxu1 %v10141_v55 }
 0x130   : > { %v971_v39 = vpop.f32.mrf.mxu0  ;;  %v1322_v37 = vpop.f32.mrf.mxu1 }
 0x131   : > { %10222 = vst [vmem:[#allocation9_spill] sm:$0xff] %v7956_v56  ;;  %v7960_v38 = vadd.f32 %v1312_v30, %v971_v39 }
 0x132   : > { %v973_v36 = vpop.f32.mrf.mxu0  ;;  %v1324_v28 = vpop.f32.mrf.mxu1 }
 0x133   : > { %10223 = vst [vmem:[#allocation57_spill] sm:$0xff] %v7960_v38  ;;  %v7962_v46 = vadd.f32 %v1314_v8, %v973_v36 }
 0x134   : > { %v975_v27 = vpop.f32.mrf.mxu0  ;;  %v1326_v44 = vpop.f32.mrf.mxu1 }
 0x135   : > { %10224 = vst [vmem:[#allocation58_spill] sm:$0xff] %v7962_v46  ;;  %v7964_v43 = vadd.f32 %v1316_v17, %v975_v27 }
 0x136   : > { %v979_v53 = vpop.f32.mrf.mxu0  ;;  %6085 = vmatmul.mubr.msk.bf16.gmra.mxu0 %vm796_vm1, %v10226_v19  ;;  %v1330_v11 = vpop.f32.mrf.mxu1  ;;  %6112 = vmatmul.mubr.msk.bf16.gmra.mxu1 %vm796_vm1, %v7497_v62  ;;  %v10231_v62 = vld [vmem:[#allocation21_spill] sm:$0xff] }
 0x137   : > { %10225 = vst [vmem:[#allocation59_spill] sm:$0xff] %v7964_v43  ;;  %v7970_v22 = vadd.f32 %v1320_v15, %v979_v53  ;;  %2295 = vmatprep.mubr.bf16.mxu0 %v10141_v55  ;;  %2601 = vmatprep.mubr.bf16.mxu1 %v10141_v55 }
 0x138   : > { %v981_v8 = vpop.f32.mrf.mxu0  ;;  %v1332_v30 = vpop.f32.mrf.mxu1 }
 0x139   : > { %10227 = vst [vmem:[#allocation14_spill] sm:$0xff] %v7970_v22  ;;  %v7974_v39 = vadd.f32 %v1322_v37, %v981_v8 }
 0x13a   : > { %v983_v17 = vpop.f32.mrf.mxu0  ;;  %v1334_v36 = vpop.f32.mrf.mxu1 }
 0x13b   : > { %10228 = vst [vmem:[#allocation60_spill] sm:$0xff] %v7974_v39  ;;  %v7976_v27 = vadd.f32 %v1324_v28, %v983_v17 }
 0x13c   : > { %v985_v43 = vpop.f32.mrf.mxu0  ;;  %v1336_v46 = vpop.f32.mrf.mxu1 }
 0x13d   : > { %10229 = vst [vmem:[#allocation61_spill] sm:$0xff] %v7976_v27  ;;  %v7978_v38 = vadd.f32 %v1326_v44, %v985_v43 }
 0x13e   : > { %v989_v56 = vpop.f32.mrf.mxu0  ;;  %6086 = vmatmul.mubr.msk.bf16.gmra.mxu0 %vm796_vm1, %v10231_v62  ;;  %v1340_v53 = vpop.f32.mrf.mxu1  ;;  %6113 = vmatmul.mubr.msk.bf16.gmra.mxu1 %vm796_vm1, %v7503_v6  ;;  %v10236_v6 = vld [vmem:[#allocation23_spill] sm:$0xff] }
 0x13f   : > { %10230 = vst [vmem:[#allocation62_spill] sm:$0xff] %v7978_v38  ;;  %v7984_v15 = vadd.f32 %v1330_v11, %v989_v56  ;;  %2305 = vmatprep.mubr.bf16.mxu0 %v10141_v55  ;;  %2611 = vmatprep.mubr.bf16.mxu1 %v10141_v55 }
 0x140   : > { %v991_v37 = vpop.f32.mrf.mxu0  ;;  %v1342_v28 = vpop.f32.mrf.mxu1 }
 0x141   : > { %10232 = vst [vmem:[#allocation21_spill] sm:$0xff] %v7984_v15  ;;  %v7988_v8 = vadd.f32 %v1332_v30, %v991_v37 }
 0x142   : > { %v993_v44 = vpop.f32.mrf.mxu0  ;;  %v1344_v43 = vpop.f32.mrf.mxu1 }
 0x143   : > { %10233 = vst [vmem:[#allocation63_spill] sm:$0xff] %v7988_v8  ;;  %v7990_v17 = vadd.f32 %v1334_v36, %v993_v44 }
 0x144   : > { %v995_v38 = vpop.f32.mrf.mxu0  ;;  %v1346_v27 = vpop.f32.mrf.mxu1 }
 0x145   : > { %10234 = vst [vmem:[#allocation64_spill] sm:$0xff] %v7990_v17  ;;  %v7992_v39 = vadd.f32 %v1336_v46, %v995_v38 }
 0x146   : > { %v999_v22 = vpop.f32.mrf.mxu0  ;;  %6087 = vmatmul.mubr.msk.bf16.gmra.mxu0 %vm796_vm1, %v10236_v6  ;;  %v1350_v56 = vpop.f32.mrf.mxu1  ;;  %6114 = vmatmul.mubr.msk.bf16.gmra.mxu1 %vm796_vm1, %v7517_v7  ;;  %v10241_v7 = vld [vmem:[#allocation28_spill] sm:$0xff] }
 0x147   : > { %10235 = vst [vmem:[#allocation65_spill] sm:$0xff] %v7992_v39  ;;  %v7998_v11 = vadd.f32 %v1340_v53, %v999_v22  ;;  %2315 = vmatprep.mubr.bf16.mxu0 %v10141_v55  ;;  %2621 = vmatprep.mubr.bf16.mxu1 %v10141_v55 }
 0x148   : > { %v1001_v30 = vpop.f32.mrf.mxu0  ;;  %v1352_v36 = vpop.f32.mrf.mxu1 }
 0x149   : > { %10237 = vst [vmem:[#allocation23_spill] sm:$0xff] %v7998_v11  ;;  %v8002_v37 = vadd.f32 %v1342_v28, %v1001_v30 }
 0x14a   : > { %v1003_v38 = vpop.f32.mrf.mxu0  ;;  %v1354_v46 = vpop.f32.mrf.mxu1 }
 0x14b   : > { %10238 = vst [vmem:[#allocation66_spill] sm:$0xff] %v8002_v37  ;;  %v8004_v44 = vadd.f32 %v1344_v43, %v1003_v38 }
 0x14c   : > { %v1005_v39 = vpop.f32.mrf.mxu0  ;;  %v1356_v17 = vpop.f32.mrf.mxu1 }
 0x14d   : > { %10239 = vst [vmem:[#allocation67_spill] sm:$0xff] %v8004_v44  ;;  %v8006_v8 = vadd.f32 %v1346_v27, %v1005_v39 }
 0x14e   : > { %v1009_v15 = vpop.f32.mrf.mxu0  ;;  %6088 = vmatmul.mubr.msk.bf16.gmra.mxu0 %vm796_vm1, %v10241_v7  ;;  %v1360_v22 = vpop.f32.mrf.mxu1  ;;  %6115 = vmatmul.mubr.msk.bf16.gmra.mxu1 %vm796_vm1, %v7523_v32  ;;  %v10246_v32 = vld [vmem:[#allocation35_spill] sm:$0xff] }
 0x14f   : > { %10240 = vst [vmem:[#allocation68_spill] sm:$0xff] %v8006_v8  ;;  %v8012_v53 = vadd.f32 %v1350_v56, %v1009_v15  ;;  %2325 = vmatprep.mubr.bf16.mxu0 %v10141_v55  ;;  %2631 = vmatprep.mubr.bf16.mxu1 %v10141_v55 }
 0x150   : > { %v1011_v28 = vpop.f32.mrf.mxu0  ;;  %v1362_v43 = vpop.f32.mrf.mxu1 }
 0x151   : > { %10242 = vst [vmem:[#allocation28_spill] sm:$0xff] %v8012_v53  ;;  %v8016_v30 = vadd.f32 %v1352_v36, %v1011_v28 }
 0x152   : > { %v1013_v39 = vpop.f32.mrf.mxu0  ;;  %v1364_v27 = vpop.f32.mrf.mxu1 }
 0x153   : > { %10243 = vst [vmem:[#allocation69_spill] sm:$0xff] %v8016_v30  ;;  %v8018_v38 = vadd.f32 %v1354_v46, %v1013_v39 }
 0x154   : > { %v1015_v8 = vpop.f32.mrf.mxu0  ;;  %v1366_v44 = vpop.f32.mrf.mxu1 }
 0x155   : > { %10244 = vst [vmem:[#allocation70_spill] sm:$0xff] %v8018_v38  ;;  %v8020_v37 = vadd.f32 %v1356_v17, %v1015_v8 }
 0x156   : > { %v1019_v11 = vpop.f32.mrf.mxu0  ;;  %6089 = vmatmul.mubr.msk.bf16.gmra.mxu0 %vm796_vm1, %v10246_v32  ;;  %v1370_v15 = vpop.f32.mrf.mxu1  ;;  %6116 = vmatmul.mubr.msk.bf16.gmra.mxu1 %vm796_vm1, %v7541_v12  ;;  %v10251_v12 = vld [vmem:[#allocation37_spill] sm:$0xff] }
 0x157   : > { %10245 = vst [vmem:[#allocation71_spill] sm:$0xff] %v8020_v37  ;;  %v8026_v56 = vadd.f32 %v1360_v22, %v1019_v11  ;;  %2335 = vmatprep.mubr.bf16.mxu0 %v10141_v55  ;;  %2641 = vmatprep.mubr.bf16.mxu1 %v10141_v55 }
 0x158   : > { %v1021_v36 = vpop.f32.mrf.mxu0  ;;  %v1372_v46 = vpop.f32.mrf.mxu1 }
 0x159   : > { %10247 = vst [vmem:[#allocation35_spill] sm:$0xff] %v8026_v56  ;;  %v8030_v28 = vadd.f32 %v1362_v43, %v1021_v36 }
 0x15a   : > { %v1023_v8 = vpop.f32.mrf.mxu0  ;;  %v1374_v17 = vpop.f32.mrf.mxu1 }
 0x15b   : > { %10248 = vst [vmem:[#allocation72_spill] sm:$0xff] %v8030_v28  ;;  %v8032_v39 = vadd.f32 %v1364_v27, %v1023_v8 }
 0x15c   : > { %v1025_v37 = vpop.f32.mrf.mxu0  ;;  %v1376_v38 = vpop.f32.mrf.mxu1 }
 0x15d   : > { %10249 = vst [vmem:[#allocation73_spill] sm:$0xff] %v8032_v39  ;;  %v8034_v30 = vadd.f32 %v1366_v44, %v1025_v37 }
 0x15e   : > { %v1029_v53 = vpop.f32.mrf.mxu0  ;;  %6090 = vmatmul.mubr.msk.bf16.gmra.mxu0 %vm796_vm1, %v10251_v12  ;;  %v1955_v11 = vpop.f32.mrf.mxu1  ;;  %6117 = vmatmul.mubr.msk.bf16.gmra.mxu1 %vm796_vm1, %v7547_v45  ;;  %v10256_v45 = vld [vmem:[#allocation40_spill] sm:$0xff] }
 0x15f   : > { %10250 = vst [vmem:[#allocation74_spill] sm:$0xff] %v8034_v30  ;;  %v8040_v22 = vadd.f32 %v1370_v15, %v1029_v53  ;;  %2345 = vmatprep.mubr.bf16.mxu0 %v10141_v55  ;;  %2651 = vmatprep.mubr.bf16.mxu1 %v10141_v55 }
 0x160   : > { %v1031_v43 = vpop.f32.mrf.mxu0  ;;  %v1957_v27 = vpop.f32.mrf.mxu1 }
 0x161   : > { %10252 = vst [vmem:[#allocation37_spill] sm:$0xff] %v8040_v22  ;;  %v8044_v36 = vadd.f32 %v1372_v46, %v1031_v43 }
 0x162   : > { %v1033_v37 = vpop.f32.mrf.mxu0  ;;  %v1959_v44 = vpop.f32.mrf.mxu1 }
 0x163   : > { %10253 = vst [vmem:[#allocation75_spill] sm:$0xff] %v8044_v36  ;;  %v8046_v8 = vadd.f32 %v1374_v17, %v1033_v37 }
 0x164   : > { %v1035_v30 = vpop.f32.mrf.mxu0  ;;  %v1961_v39 = vpop.f32.mrf.mxu1 }
 0x165   : > { %10254 = vst [vmem:[#allocation76_spill] sm:$0xff] %v8046_v8  ;;  %v8048_v28 = vadd.f32 %v1376_v38, %v1035_v30 }
 0x166   : > { %v1665_v56 = vpop.f32.mrf.mxu0  ;;  %6091 = vmatmul.mubr.msk.bf16.gmra.mxu0 %vm796_vm1, %v10256_v45  ;;  %v1965_v53 = vpop.f32.mrf.mxu1  ;;  %6118 = vmatmul.mubr.msk.bf16.gmra.mxu1 %vm796_vm1, %v7567_v49 }
 0x167   : > { %10255 = vst [vmem:[#allocation77_spill] sm:$0xff] %v8048_v28  ;;  %v1824_v15 = vadd.f32 %v1665_v56, %v7796_v41  ;;  %2355 = vmatprep.mubr.bf16.mxu0 %v10141_v55  ;;  %2661 = vmatprep.mubr.bf16.mxu1 %v10141_v55 }
 0x168   : > { %v1667_v46 = vpop.f32.mrf.mxu0  ;;  %v1967_v17 = vpop.f32.mrf.mxu1 }
 0x169   : > { %v1825_v43 = vadd.f32 %v1667_v46, %v7800_v10  ;;  %v8058_v30 = vadd.f32 %v1955_v11, %v1824_v15 }
 0x16a   : > { %v1669_v38 = vpop.f32.mrf.mxu0  ;;  %v1969_v37 = vpop.f32.mrf.mxu1 }
 0x16b   : > { %v1826_v28 = vadd.f32 %v1669_v38, %v7802_v2  ;;  %v8061_v8 = vadd.f32 %v1957_v27, %v1825_v43 }
 0x16c   : > { %v1671_v36 = vpop.f32.mrf.mxu0  ;;  %v1971_v49 = vpop.f32.mrf.mxu1 }
 0x16d   : > { %v1827_v41 = vadd.f32 %v1671_v36, %v7804_v24  ;;  %v8064_v56 = vadd.f32 %v1959_v44, %v1826_v28 }
 0x16e   : > { %v1675_v22 = vpop.f32.mrf.mxu0  ;;  %6092 = vmatmul.mubr.msk.bf16.gmra.mxu0 %vm796_vm1, %v7457_v29  ;;  %v1975_v45 = vpop.f32.mrf.mxu1  ;;  %6119 = vmatmul.mubr.msk.bf16.gmra.mxu1 %vm796_vm1, %v7573_v34 }
 0x16f   : > { %v1828_v10 = vadd.f32 %v1675_v22, %v7810_v47  ;;  %v8071_v11 = vadd.f32 %v1961_v39, %v1827_v41  ;;  %2365 = vmatprep.mubr.bf16.mxu0 %v10141_v55  ;;  %2671 = vmatprep.mubr.bf16.mxu1 %v10141_v55 }
 0x170   : > { %v1677_v2 = vpop.f32.mrf.mxu0  ;;  %v1977_v24 = vpop.f32.mrf.mxu1 }
 0x171   : > { %v1829_v28 = vadd.f32 %v1677_v2, %v7814_v4  ;;  %v8076_v27 = vadd.f32 %v1965_v53, %v1828_v10 }
 0x172   : > { %v1679_v36 = vpop.f32.mrf.mxu0  ;;  %v1979_v44 = vpop.f32.mrf.mxu1 }
 0x173   : > { %v1830_v15 = vadd.f32 %v1679_v36, %v7816_v57  ;;  %v8079_v46 = vadd.f32 %v1967_v17, %v1829_v28 }
 0x174   : > { %v1681_v43 = vpop.f32.mrf.mxu0  ;;  %v1981_v47 = vpop.f32.mrf.mxu1 }
 0x175   : > { %v1831_v39 = vadd.f32 %v1681_v43, %v7818_v5  ;;  %v8082_v22 = vadd.f32 %v1969_v37, %v1830_v15 }
 0x176   : > { %v1685_v38 = vpop.f32.mrf.mxu0  ;;  %6093 = vmatmul.mubr.msk.bf16.gmra.mxu0 %vm796_vm1, %v7561_v54  ;;  %v1985_v41 = vpop.f32.mrf.mxu1  ;;  %6120 = vmatmul.mubr.msk.bf16.gmra.mxu1 %vm796_vm1, %v7605_v42  ;;  %v328_v42 = vld [vmem:[%s6941_s19 + $0xc8] sm:$0x1] }
 0x177   : > { %v1832_v4 = vadd.f32 %v1685_v38, %v7824_v23  ;;  %v8089_v53 = vadd.f32 %v1971_v49, %v1831_v39  ;;  %2375 = vmatprep.mubr.bf16.mxu0 %v10141_v55  ;;  %2681 = vmatprep.mubr.bf16.mxu1 %v10141_v55 }
 0x178   : > { %v1687_v57 = vpop.f32.mrf.mxu0  ;;  %v1987_v5 = vpop.f32.mrf.mxu1 }
 0x179   : > { %v1833_v17 = vadd.f32 %v1687_v57, %v7828_v48  ;;  %v8094_v37 = vadd.f32 %v1975_v45, %v1832_v4 }
 0x17a   : > { %v1689_v10 = vpop.f32.mrf.mxu0  ;;  %v1989_v2 = vpop.f32.mrf.mxu1 }
 0x17b   : > { %v1834_v28 = vadd.f32 %v1689_v10, %v7830_v35  ;;  %v8097_v36 = vadd.f32 %v1977_v24, %v1833_v17 }
 0x17c   : > { %v1691_v15 = vpop.f32.mrf.mxu0  ;;  %v1991_v23 = vpop.f32.mrf.mxu1 }
 0x17d   : > { %v1835_v49 = vadd.f32 %v1691_v15, %v7832_v59  ;;  %v8100_v43 = vadd.f32 %v1979_v44, %v1834_v28 }
 0x17e   : > { %v1695_v39 = vpop.f32.mrf.mxu0  ;;  %6094 = vmatmul.mubr.msk.bf16.gmra.mxu0 %vm796_vm1, %v7593_v16  ;;  %v1995_v38 = vpop.f32.mrf.mxu1  ;;  %6121 = vmatmul.mubr.msk.bf16.gmra.mxu1 %vm796_vm1, %v7637_v13 }
 0x17f   : > { %v1836_v45 = vadd.f32 %v1695_v39, %v7838_v21  ;;  %v8107_v48 = vadd.f32 %v1981_v47, %v1835_v49  ;;  %2385 = vmatprep.mubr.bf16.mxu0 %v10141_v55  ;;  %2691 = vmatprep.mubr.bf16.mxu1 %v10141_v55  ;;  %v2179_v47 = vshrl.u32 %v7871_v33, 16  ;;  %v2182_v39 = vshll.u32 %v7871_v33, 16 }
 0x180   : > { %v1697_v35 = vpop.f32.mrf.mxu0  ;;  %v1997_v59 = vpop.f32.mrf.mxu1 }
 0x181   : > { %v1837_v24 = vadd.f32 %v1697_v35, %v7842_v20  ;;  %v8112_v44 = vadd.f32 %v1985_v41, %v1836_v45  ;;  %v2192_v20 = vshrl.u32 %v7874_v50, 16  ;;  %v2184_v34 = vrot.slane %v2182_v39, 5 }
 0x182   : > { %v1699_v4 = vpop.f32.mrf.mxu0  ;;  %v1999_v57 = vpop.f32.mrf.mxu1 }
 0x183   : > { %10257 = vst [vmem:[#allocation78_spill] sm:$0xff] %v8112_v44  ;;  %v1838_v17 = vadd.f32 %v1699_v4, %v7844_v9  ;;  %v8115_v10 = vadd.f32 %v1987_v5, %v1837_v24  ;;  %v2188_v5 = vshll.u32 %v7874_v50, 16 }
 0x184   : > { %v1701_v28 = vpop.f32.mrf.mxu0  ;;  %v2001_v21 = vpop.f32.mrf.mxu1 }
 0x185   : > { %10258 = vst [vmem:[#allocation79_spill] sm:$0xff] %v8115_v10  ;;  %v1839_v15 = vadd.f32 %v1701_v28, %v7846_v51  ;;  %v8119_v49 = vadd.f32 %v1989_v2, %v1838_v17  ;;  %v2493_v2 = vrot.slane %v7874_v50, 5  ;;  %v2181_v28 = vrot.slane %v2179_v47, 4 }
 0x186   : > { %v1705_v41 = vpop.f32.mrf.mxu0  ;;  %6095 = vmatmul.mubr.msk.bf16.gmra.mxu0 %vm796_vm1, %v7625_v63  ;;  %v2005_v9 = vpop.f32.mrf.mxu1  ;;  %6122 = vmatmul.mubr.msk.bf16.gmra.mxu1 %vm796_vm1, %v7671_v3 }
 0x187   : > { %10259 = vst [vmem:[#allocation80_spill] sm:$0xff] %v8119_v49  ;;  %v1840_v45 = vadd.f32 %v1705_v41, %v7852_v60  ;;  %v8129_v51 = vadd.f32 %v1991_v23, %v1839_v15  ;;  %2395 = vmatprep.mubr.bf16.mxu0 %v10141_v55  ;;  %2701 = vmatprep.mubr.bf16.mxu1 %v10141_v55  ;;  %v2190_v60 = vrot.slane %v2188_v5, 5  ;;  %v2194_v23 = vrot.slane %v2192_v20, 4 }
 0x188   : > { %v1707_v35 = vpop.f32.mrf.mxu0  ;;  %v2007_v24 = vpop.f32.mrf.mxu1  ;;  %v6099_v15 = vrot.slane %v7871_v33, 9  ;;  %v2495_v50 = vrot.slane %v2493_v2, 4  ;;  %v2496_v49 = vrot.slane %v328_v42, 5  ;;  %v2185_v33 = vor.u32 %v2184_v34, %v2181_v28 }
 0x189   : > { %10260 = vst [vmem:[#allocation81_spill] sm:$0xff] %v8129_v51  ;;  %v1841_v4 = vadd.f32 %v1707_v35, %v7856_v52  ;;  %v8135_v17 = vadd.f32 %v1995_v38, %v1840_v45 }
 0x18a   : > { %v1709_v3 = vpop.f32.mrf.mxu0  ;;  %v2009_v13 = vpop.f32.mrf.mxu1 }
 0x18b   : > { %v1842_v41 = vadd.f32 %v1709_v3, %v7858_v26  ;;  %v8140_v51 = vadd.f32 %v1997_v59, %v1841_v4  ;;  %v2195_v3 = vor.u32 %v2194_v23, %v2190_v60  ;;  %v2494_v26 = vsel %vm7407_vm6, %v6099_v15, %v2493_v2 }
 0x18c   : > { %v1711_v10 = vpop.f32.mrf.mxu0  ;;  %v2011_v44 = vpop.f32.mrf.mxu1  ;;  %v2186_v4 = vrot.slane %v2185_v33, 4 }
 0x18d   : > { %v1843_v52 = vadd.f32 %v1711_v10, %v7860_v58  ;;  %v8143_v38 = vadd.f32 %v1999_v57, %v1842_v41  ;;  %v2198_v58 = vshll.u32 %v328_v42, 16  ;;  %v2497_v57 = vsel %vm7407_vm6, %v2495_v50, %v2496_v49 }
 0x18e   : > { %v1715_v47 = vpop.f32.mrf.mxu0  ;;  %6096 = vmatmul.mubr.msk.bf16.gmra.mxu0 %vm796_vm1, %v7657_v40  ;;  %v2015_v39 = vpop.f32.mrf.mxu1  ;;  %6123 = vmatmul.mubr.msk.bf16.gmra.mxu1 %vm796_vm1, %v7695_v14  ;;  %v2196_v42 = vrot.slane %v2195_v3, 4  ;;  %v10279_v14 = vld [vmem:[#allocation56_spill] sm:$0xff] }
 0x18f   : > { %v1844_v59 = vadd.f32 %v1715_v47, %v7866_v61  ;;  %v8152_v20 = vadd.f32 %v2001_v21, %v1843_v52  ;;  %2405 = vmatprep.mubr.bf16.mxu0 %v10141_v55  ;;  %2711 = vmatprep.mubr.bf16.mxu1 %v10141_v55  ;;  %v8161_v61 = vcombine.low %v2494_v26, %v2497_v57  ;;  %v2200_v23 = vrot.slane %v2198_v58, 5 }
 0x190   : > { %v1717_v10 = vpop.f32.mrf.mxu0  ;;  %v2017_v5 = vpop.f32.mrf.mxu1  ;;  %v2191_v47 = vsel %vm6971_vm3, %v2186_v4, %v2190_v60 }
 0x191   : > { %v1845_v34 = vadd.f32 %v1717_v10, %v7876_v1  ;;  %v8159_v45 = vadd.f32 %v2005_v9, %v1844_v59  ;;  %10261 = vst [vmem:[#allocation82_spill] sm:$0xff] %v8161_v61  ;;  %v10262_v9 = vld [vmem:[#allocation43_spill] sm:$0xff] }
 0x192   : > { %v1719_v35 = vpop.f32.mrf.mxu0  ;;  %v2019_v2 = vpop.f32.mrf.mxu1  ;;  %v10265_v59 = vld [vmem:[#allocation47_spill] sm:$0xff] }
 0x193   : > { %v1846_v21 = vadd.f32 %v1719_v35, %v7882_v18  ;;  %v8164_v28 = vadd.f32 %v2007_v24, %v1845_v34  ;;  %v10264_v18 = vld [vmem:[#allocation46_spill] sm:$0xff]  ;;  %v10266_v35 = vld [vmem:[#allocation48_spill] sm:$0xff] }
 0x194   : > { %v1721_v15 = vpop.f32.mrf.mxu0  ;;  %v2021_v41 = vpop.f32.mrf.mxu1 }
 0x195   : > { %v1847_v49 = vadd.f32 %v1721_v15, %v7884_v31  ;;  %v8167_v50 = vadd.f32 %v2009_v13, %v1846_v21  ;;  %v2201_v13 = vsel %vm6971_vm3, %v2196_v42, %v2200_v23  ;;  %v6656_v31 = vld [vmem:[%s10020_s1 + $0x114] ss:$8 sps:$4 sm:$0xff]   ;;  %v10267_v15 = vld [vmem:[#allocation49_spill] sm:$0xff] }
 0x196   : > { %v1725_v1 = vpop.f32.mrf.mxu0  ;;  %6097 = vmatmul.mubr.msk.bf16.gmra.mxu0 %vm796_vm1, %v10262_v9  ;;  %v2025_v33 = vpop.f32.mrf.mxu1  ;;  %6124 = vmatmul.mubr.msk.bf16.gmra.mxu1 %vm796_vm1, %v8161_v61  ;;  %v8188_v10 = vcombine.low %v2191_v47, %v2201_v13  ;;  %v10268_v47 = vld [vmem:[#allocation50_spill] sm:$0xff] }
 0x197   : > { %v1848_v24 = vadd.f32 %v1725_v1, %v10264_v18  ;;  %v8176_v3 = vadd.f32 %v2011_v44, %v1847_v49  ;;  %2415 = vmatprep.mubr.bf16.mxu0 %v10141_v55  ;;  %3163 = vmatprep.mubr.bf16.mxu1 %v10141_v55 }
 0x198   : > { %v1727_v60 = vpop.f32.mrf.mxu0  ;;  %v2027_v26 = vpop.f32.mrf.mxu1  ;;  %3439 = vmatprep.subr.bf16.mxu0 %v6656_v31 }
 0x199   : > { %v1849_v58 = vadd.f32 %v1727_v60, %v10265_v59  ;;  %v8186_v57 = vadd.f32 %v2015_v39, %v1848_v24 }
 0x19a   : > { %v1729_v44 = vpop.f32.mrf.mxu0  ;;  %v2029_v34 = vpop.f32.mrf.mxu1 }
 0x19b   : > { %v1850_v4 = vadd.f32 %v1729_v44, %v10266_v35  ;;  %v8191_v21 = vadd.f32 %v2017_v5, %v1849_v58  ;;  %v10270_v35 = vld [vmem:[#allocation52_spill] sm:$0xff] }
 0x19c   : > { %v1731_v42 = vpop.f32.mrf.mxu0  ;;  %v2031_v23 = vpop.f32.mrf.mxu1 }
 0x19d   : > { %v1851_v49 = vadd.f32 %v1731_v42, %v10267_v15  ;;  %v8194_v1 = vadd.f32 %v2019_v2, %v1850_v4  ;;  %v10269_v2 = vld [vmem:[#allocation51_spill] sm:$0xff] }
 0x19e   : > { %v1735_v18 = vpop.f32.mrf.mxu0  ;;  %6098 = vmatmul.mubr.msk.bf16.gmra.mxu0 %vm796_vm1, %v8188_v10  ;;  %v2035_v39 = vpop.f32.mrf.mxu1  ;;  %6159 = vmatmul.mubr.msk.bf16.vlgmr.msra.gmra.mxu1 %vm796_vm1, %v10221_v0 }
 0x19f   : > { %v1852_v24 = vadd.f32 %v1735_v18, %v10268_v47  ;;  %v8201_v13 = vadd.f32 %v2021_v41, %v1851_v49  ;;  %2851 = vmatprep.mubr.bf16.mxu0 %v10141_v55  ;;  %3173 = vmatprep.mubr.bf16.mxu1 %v10141_v55  ;;  %v6654_v41 = vld [vmem:[%s10020_s1 + $0x110] ss:$8 sps:$4 sm:$0xff]   ;;  %v10272_v49 = vld [vmem:[#allocation53_spill] sm:$0xff] }
 0x1a0   : > { %v1737_v5 = vpop.f32.mrf.mxu0  ;;  %v2037_v31 = vpop.f32.mrf.mxu1 }
 0x1a1   : > { %v1853_v60 = vadd.f32 %v1737_v5, %v10269_v2  ;;  %v8206_v59 = vadd.f32 %v2025_v33, %v1852_v24  ;;  %v6660_v33 = vld [vmem:[%s10020_s1 + $0x104] ss:$8 sps:$4 sm:$0xff]   ;;  %v10274_v5 = vld [vmem:[#allocation8_spill] sm:$0xff]  ;;  %v10275_v2 = vld [vmem:[#allocation7_spill] sm:$0xff] }
 0x1a2   : > { %v1739_v58 = vpop.f32.mrf.mxu0  ;;  %v2039_v44 = vpop.f32.mrf.mxu1 }
 0x1a3   : > { %v1854_v4 = vadd.f32 %v1739_v58, %v10270_v35  ;;  %v8209_v42 = vadd.f32 %v2027_v26, %v1853_v60 }
 0x1a4   : > { %v1741_v0 = vpop.f32.mrf.mxu0  ;;  %v2041_v15 = vpop.f32.mrf.mxu1 }
 0x1a5   : > { %10271 = vst [vmem:[#allocation43_spill] sm:$0xff] %v8209_v42  ;;  %v1855_v18 = vadd.f32 %v1741_v0, %v10272_v49  ;;  %v8215_v47 = vadd.f32 %v2029_v34, %v1854_v4  ;;  %v6658_v4 = vld [vmem:[%s10020_s1 + $0x100] ss:$8 sps:$4 sm:$0xff]  }
 0x1a6   : > { %v1745_v24 = vpop.f32.mrf.mxu0  ;;  %6134 = vmatmul.mubr.msk.bf16.vlgmr.msra.gmra.mxu0 %vm796_vm1, %v10274_v5  ;;  %v2045_v26 = vpop.f32.mrf.mxu1  ;;  %6160 = vmatmul.mubr.msk.bf16.gmra.mxu1 %vm796_vm1, %v10226_v19  ;;  %v10277_v0 = vld [vmem:[#allocation54_spill] sm:$0xff] }
 0x1a7   : > { %10273 = vst [vmem:[#allocation5_spill] sm:$0xff] %v8215_v47  ;;  %v1856_v60 = vadd.f32 %v1745_v24, %v10275_v2  ;;  %v8225_v58 = vadd.f32 %v2031_v23, %v1855_v18  ;;  %2861 = vmatprep.mubr.bf16.mxu0 %v10141_v55  ;;  %3183 = vmatprep.mubr.bf16.mxu1 %v10141_v55  ;;  %v10278_v23 = vld [vmem:[#allocation55_spill] sm:$0xff]  ;;  %v10281_v42 = vld [vmem:[#allocation10_spill] sm:$0xff] }
 0x1a8   : > { %v1747_v34 = vpop.f32.mrf.mxu0  ;;  %v2047_v35 = vpop.f32.mrf.mxu1  ;;  %3440 = vmatpush1.bf16.msra.mxu0 %v6654_v41 }
 0x1a9   : > { %10276 = vst [vmem:[#allocation46_spill] sm:$0xff] %v8225_v58  ;;  %v1857_v49 = vadd.f32 %v1747_v34, %v10277_v0  ;;  %v8233_v5 = vadd.f32 %v2035_v39, %v1856_v60  ;;  %3441 = vmatprep.subr.bf16.mxu0 %v6660_v33  ;;  %v10282_v33 = vld [vmem:[#allocation9_spill] sm:$0xff] }
 0x1aa   : > { %v1749_v19 = vpop.f32.mrf.mxu0  ;;  %v2049_v24 = vpop.f32.mrf.mxu1 }
 0x1ab   : > { %v1858_v18 = vadd.f32 %v1749_v19, %v10278_v23  ;;  %v8236_v2 = vadd.f32 %v2037_v31, %v1857_v49  ;;  %v10285_v49 = vld [vmem:[#allocation58_spill] sm:$0xff] }
 0x1ac   : > { %v1751_v25 = vpop.f32.mrf.mxu0  ;;  %v2051_v61 = vpop.f32.mrf.mxu1  ;;  %3442 = vmatpush1.bf16.msra.mxu0 %v6658_v4 }
 0x1ad   : > { %v1859_v41 = vadd.f32 %v1751_v25, %v10279_v14  ;;  %v8239_v58 = vadd.f32 %v2039_v44, %v1858_v18  ;;  %v10284_v14 = vld [vmem:[#allocation57_spill] sm:$0xff] }
 0x1ae   : > { %v1755_v47 = vpop.f32.mrf.mxu0  ;;  %6135 = vmatmul.mubr.msk.bf16.gmra.mxu0 %vm796_vm1, %v10281_v42  ;;  %v2055_v39 = vpop.f32.mrf.mxu1  ;;  %6161 = vmatmul.mubr.msk.bf16.gmra.mxu1 %vm796_vm1, %v10231_v62 }
 0x1af   : > { %10280 = vst [vmem:[#allocation47_spill] sm:$0xff] %v8239_v58  ;;  %v1860_v60 = vadd.f32 %v1755_v47, %v10282_v33  ;;  %v8246_v34 = vadd.f32 %v2041_v15, %v1859_v41  ;;  %2871 = vmatprep.mubr.bf16.mxu0 %v10141_v55  ;;  %3193 = vmatprep.mubr.bf16.mxu1 %v10141_v55  ;;  %v10287_v15 = vld [vmem:[#allocation59_spill] sm:$0xff] }
 0x1b0   : > { %v1757_v31 = vpop.f32.mrf.mxu0  ;;  %v2057_v25 = vpop.f32.mrf.mxu1 }
 0x1b1   : > { %10283 = vst [vmem:[#allocation48_spill] sm:$0xff] %v8246_v34  ;;  %v1861_v44 = vadd.f32 %v1757_v31, %v10284_v14  ;;  %v8251_v4 = vadd.f32 %v2045_v26, %v1860_v60  ;;  %v10289_v34 = vld [vmem:[#allocation12_spill] sm:$0xff]  ;;  %v10290_v26 = vld [vmem:[#allocation14_spill] sm:$0xff] }
 0x1b2   : > { %v1759_v0 = vpop.f32.mrf.mxu0  ;;  %v2059_v42 = vpop.f32.mrf.mxu1 }
 0x1b3   : > { %v1862_v19 = vadd.f32 %v1759_v0, %v10285_v49  ;;  %v8254_v23 = vadd.f32 %v2047_v35, %v1861_v44 }
 0x1b4   : > { %v1761_v62 = vpop.f32.mrf.mxu0  ;;  %v2061_v47 = vpop.f32.mrf.mxu1 }
 0x1b5   : > { %10286 = vst [vmem:[#allocation49_spill] sm:$0xff] %v8254_v23  ;;  %v1863_v18 = vadd.f32 %v1761_v62, %v10287_v15  ;;  %v8257_v41 = vadd.f32 %v2049_v24, %v1862_v19  ;;  %v10292_v24 = vld [vmem:[#allocation60_spill] sm:$0xff]  ;;  %v10293_v19 = vld [vmem:[#allocation61_spill] sm:$0xff] }
 0x1b6   : > { %v1765_v33 = vpop.f32.mrf.mxu0  ;;  %6136 = vmatmul.mubr.msk.bf16.gmra.mxu0 %vm796_vm1, %v10289_v34  ;;  %v2065_v58 = vpop.f32.mrf.mxu1  ;;  %6162 = vmatmul.mubr.msk.bf16.gmra.mxu1 %vm796_vm1, %v10236_v6 }
 0x1b7   : > { %10288 = vst [vmem:[#allocation50_spill] sm:$0xff] %v8257_v41  ;;  %v1864_v60 = vadd.f32 %v1765_v33, %v10290_v26  ;;  %v8264_v31 = vadd.f32 %v2051_v61, %v1863_v18  ;;  %2881 = vmatprep.mubr.bf16.mxu0 %v10141_v55  ;;  %3203 = vmatprep.mubr.bf16.mxu1 %v10141_v55  ;;  %v10295_v61 = vld [vmem:[#allocation62_spill] sm:$0xff]  ;;  %v10297_v41 = vld [vmem:[#allocation20_spill] sm:$0xff] }
 0x1b8   : > { %v1767_v35 = vpop.f32.mrf.mxu0  ;;  %v2067_v14 = vpop.f32.mrf.mxu1 }
 0x1b9   : > { %10291 = vst [vmem:[#allocation51_spill] sm:$0xff] %v8264_v31  ;;  %v1865_v44 = vadd.f32 %v1767_v35, %v10292_v24  ;;  %v8269_v0 = vadd.f32 %v2055_v39, %v1864_v60  ;;  %v10298_v39 = vld [vmem:[#allocation21_spill] sm:$0xff] }
 0x1ba   : > { %v1769_v49 = vpop.f32.mrf.mxu0  ;;  %v2069_v34 = vpop.f32.mrf.mxu1 }
 0x1bb   : > { %v1866_v62 = vadd.f32 %v1769_v49, %v10293_v19  ;;  %v8272_v15 = vadd.f32 %v2057_v25, %v1865_v44 }
 0x1bc   : > { %v1771_v6 = vpop.f32.mrf.mxu0  ;;  %v2071_v33 = vpop.f32.mrf.mxu1 }
 0x1bd   : > { %10294 = vst [vmem:[#allocation52_spill] sm:$0xff] %v8272_v15  ;;  %v1867_v18 = vadd.f32 %v1771_v6, %v10295_v61  ;;  %v8275_v26 = vadd.f32 %v2059_v42, %v1866_v62  ;;  %v10300_v42 = vld [vmem:[#allocation63_spill] sm:$0xff]  ;;  %v10301_v62 = vld [vmem:[#allocation64_spill] sm:$0xff] }
 0x1be   : > { %v1775_v31 = vpop.f32.mrf.mxu0  ;;  %6137 = vmatmul.mubr.msk.bf16.gmra.mxu0 %vm796_vm1, %v10297_v41  ;;  %v2075_v23 = vpop.f32.mrf.mxu1  ;;  %6163 = vmatmul.mubr.msk.bf16.gmra.mxu1 %vm796_vm1, %v10241_v7 }
 0x1bf   : > { %10296 = vst [vmem:[#allocation53_spill] sm:$0xff] %v8275_v26  ;;  %v1868_v60 = vadd.f32 %v1775_v31, %v10298_v39  ;;  %v8282_v35 = vadd.f32 %v2061_v47, %v1867_v18  ;;  %2891 = vmatprep.mubr.bf16.mxu0 %v10141_v55  ;;  %3213 = vmatprep.mubr.bf16.mxu1 %v10141_v55  ;;  %v10303_v47 = vld [vmem:[#allocation65_spill] sm:$0xff]  ;;  %v10305_v26 = vld [vmem:[#allocation24_spill] sm:$0xff] }
 0x1c0   : > { %v1777_v25 = vpop.f32.mrf.mxu0  ;;  %v2077_v24 = vpop.f32.mrf.mxu1 }
 0x1c1   : > { %10299 = vst [vmem:[#allocation8_spill] sm:$0xff] %v8282_v35  ;;  %v1869_v44 = vadd.f32 %v1777_v25, %v10300_v42  ;;  %v8287_v49 = vadd.f32 %v2065_v58, %v1868_v60  ;;  %v10306_v58 = vld [vmem:[#allocation23_spill] sm:$0xff] }
 0x1c2   : > { %v1779_v19 = vpop.f32.mrf.mxu0  ;;  %v2079_v41 = vpop.f32.mrf.mxu1 }
 0x1c3   : > { %v1870_v6 = vadd.f32 %v1779_v19, %v10301_v62  ;;  %v8290_v61 = vadd.f32 %v2067_v14, %v1869_v44 }
 0x1c4   : > { %v1781_v7 = vpop.f32.mrf.mxu0  ;;  %v2081_v31 = vpop.f32.mrf.mxu1 }
 0x1c5   : > { %10302 = vst [vmem:[#allocation7_spill] sm:$0xff] %v8290_v61  ;;  %v1871_v18 = vadd.f32 %v1781_v7, %v10303_v47  ;;  %v8293_v39 = vadd.f32 %v2069_v34, %v1870_v6  ;;  %v10308_v34 = vld [vmem:[#allocation66_spill] sm:$0xff]  ;;  %v10309_v6 = vld [vmem:[#allocation67_spill] sm:$0xff] }
 0x1c6   : > { %v1785_v35 = vpop.f32.mrf.mxu0  ;;  %6138 = vmatmul.mubr.msk.bf16.gmra.mxu0 %vm796_vm1, %v10305_v26  ;;  %v2085_v15 = vpop.f32.mrf.mxu1  ;;  %6164 = vmatmul.mubr.msk.bf16.gmra.mxu1 %vm796_vm1, %v10246_v32 }
 0x1c7   : > { %10304 = vst [vmem:[#allocation54_spill] sm:$0xff] %v8293_v39  ;;  %v1872_v60 = vadd.f32 %v1785_v35, %v10306_v58  ;;  %v8300_v25 = vadd.f32 %v2071_v33, %v1871_v18  ;;  %2901 = vmatprep.mubr.bf16.mxu0 %v10141_v55  ;;  %3223 = vmatprep.mubr.bf16.mxu1 %v10141_v55  ;;  %v10311_v33 = vld [vmem:[#allocation68_spill] sm:$0xff]  ;;  %v10313_v39 = vld [vmem:[#allocation27_spill] sm:$0xff] }
 0x1c8   : > { %v1787_v14 = vpop.f32.mrf.mxu0  ;;  %v2087_v42 = vpop.f32.mrf.mxu1 }
 0x1c9   : > { %10307 = vst [vmem:[#allocation55_spill] sm:$0xff] %v8300_v25  ;;  %v1873_v44 = vadd.f32 %v1787_v14, %v10308_v34  ;;  %v8305_v19 = vadd.f32 %v2075_v23, %v1872_v60  ;;  %v10314_v23 = vld [vmem:[#allocation28_spill] sm:$0xff] }
 0x1ca   : > { %v1789_v62 = vpop.f32.mrf.mxu0  ;;  %v2089_v26 = vpop.f32.mrf.mxu1 }
 0x1cb   : > { %v1874_v7 = vadd.f32 %v1789_v62, %v10309_v6  ;;  %v8308_v47 = vadd.f32 %v2077_v24, %v1873_v44 }
 0x1cc   : > { %v1791_v32 = vpop.f32.mrf.mxu0  ;;  %v2091_v35 = vpop.f32.mrf.mxu1 }
 0x1cd   : > { %10310 = vst [vmem:[#allocation56_spill] sm:$0xff] %v8308_v47  ;;  %v1875_v18 = vadd.f32 %v1791_v32, %v10311_v33  ;;  %v8311_v58 = vadd.f32 %v2079_v41, %v1874_v7  ;;  %v10316_v41 = vld [vmem:[#allocation69_spill] sm:$0xff]  ;;  %v10318_v7 = vld [vmem:[#allocation70_spill] sm:$0xff] }
 0x1ce   : > { %v1795_v25 = vpop.f32.mrf.mxu0  ;;  %6139 = vmatmul.mubr.msk.bf16.gmra.mxu0 %vm796_vm1, %v10313_v39  ;;  %v2095_v61 = vpop.f32.mrf.mxu1  ;;  %6165 = vmatmul.mubr.msk.bf16.gmra.mxu1 %vm796_vm1, %v10251_v12 }
 0x1cf   : > { %10312 = vst [vmem:[#allocation10_spill] sm:$0xff] %v8311_v58  ;;  %v1876_v60 = vadd.f32 %v1795_v25, %v10314_v23  ;;  %v8318_v14 = vadd.f32 %v2081_v31, %v1875_v18  ;;  %2911 = vmatprep.mubr.bf16.mxu0 %v10141_v55  ;;  %3233 = vmatprep.mubr.bf16.mxu1 %v10141_v55  ;;  %v10320_v31 = vld [vmem:[#allocation71_spill] sm:$0xff]  ;;  %v10322_v58 = vld [vmem:[#allocation29_spill] sm:$0xff] }
 0x1d0   : > { %v1797_v24 = vpop.f32.mrf.mxu0  ;;  %v2097_v34 = vpop.f32.mrf.mxu1 }
 0x1d1   : > { %10315 = vst [vmem:[#allocation9_spill] sm:$0xff] %v8318_v14  ;;  %v1877_v44 = vadd.f32 %v1797_v24, %v10316_v41  ;;  %v8323_v62 = vadd.f32 %v2085_v15, %v1876_v60  ;;  %v10323_v24 = vld [vmem:[#allocation40_spill] sm:$0xff]  ;;  %v10324_v15 = vld [vmem:[#allocation35_spill] sm:$0xff] }
 0x1d2   : > { %v1799_v6 = vpop.f32.mrf.mxu0  ;;  %v2099_v39 = vpop.f32.mrf.mxu1 }
 0x1d3   : > { %10317 = vst [vmem:[#allocation57_spill] sm:$0xff] %v8323_v62  ;;  %v1878_v32 = vadd.f32 %v1799_v6, %v10318_v7  ;;  %v8326_v33 = vadd.f32 %v2087_v42, %v1877_v44 }
 0x1d4   : > { %v1801_v12 = vpop.f32.mrf.mxu0  ;;  %v2101_v25 = vpop.f32.mrf.mxu1 }
 0x1d5   : > { %10319 = vst [vmem:[#allocation58_spill] sm:$0xff] %v8326_v33  ;;  %v1879_v18 = vadd.f32 %v1801_v12, %v10320_v31  ;;  %v8329_v23 = vadd.f32 %v2089_v26, %v1878_v32  ;;  %v10326_v26 = vld [vmem:[#allocation72_spill] sm:$0xff]  ;;  %v10327_v12 = vld [vmem:[#allocation73_spill] sm:$0xff] }
 0x1d6   : > { %v1805_v14 = vpop.f32.mrf.mxu0  ;;  %6140 = vmatmul.mubr.msk.bf16.gmra.mxu0 %vm796_vm1, %v10322_v58  ;;  %v2105_v47 = vpop.f32.mrf.mxu1  ;;  %6166 = vmatmul.mubr.msk.bf16.gmra.mxu1 %vm796_vm1, %v10323_v24  ;;  %v10331_v33 = vld [vmem:[#allocation36_spill] sm:$0xff] }
 0x1d7   : > { %10321 = vst [vmem:[#allocation59_spill] sm:$0xff] %v8329_v23  ;;  %v1880_v60 = vadd.f32 %v1805_v14, %v10324_v15  ;;  %v8336_v41 = vadd.f32 %v2091_v35, %v1879_v18  ;;  %2921 = vmatprep.mubr.bf16.mxu0 %v10141_v55  ;;  %3243 = vmatprep.mubr.bf16.mxu1 %v10141_v55  ;;  %v10329_v35 = vld [vmem:[#allocation74_spill] sm:$0xff] }
 0x1d8   : > { %v1807_v42 = vpop.f32.mrf.mxu0  ;;  %v2107_v44 = vpop.f32.mrf.mxu1 }
 0x1d9   : > { %10325 = vst [vmem:[#allocation12_spill] sm:$0xff] %v8336_v41  ;;  %v1881_v6 = vadd.f32 %v1807_v42, %v10326_v26  ;;  %v8341_v7 = vadd.f32 %v2095_v61, %v1880_v60  ;;  %v10332_v61 = vld [vmem:[#allocation37_spill] sm:$0xff] }
 0x1da   : > { %v1809_v32 = vpop.f32.mrf.mxu0  ;;  %v2109_v58 = vpop.f32.mrf.mxu1 }
 0x1db   : > { %v1882_v31 = vadd.f32 %v1809_v32, %v10327_v12  ;;  %v8344_v23 = vadd.f32 %v2097_v34, %v1881_v6 }
 0x1dc   : > { %v1811_v24 = vpop.f32.mrf.mxu0  ;;  %v2111_v14 = vpop.f32.mrf.mxu1 }
 0x1dd   : > { %10328 = vst [vmem:[#allocation14_spill] sm:$0xff] %v8344_v23  ;;  %v1883_v18 = vadd.f32 %v1811_v24, %v10329_v35  ;;  %v8347_v15 = vadd.f32 %v2099_v39, %v1882_v31  ;;  %v10334_v39 = vld [vmem:[#allocation75_spill] sm:$0xff]  ;;  %v10335_v31 = vld [vmem:[#allocation76_spill] sm:$0xff] }
 0x1de   : > { %v1815_v41 = vpop.f32.mrf.mxu0  ;;  %6141 = vmatmul.mubr.msk.bf16.gmra.mxu0 %vm796_vm1, %v10331_v33  ;;  %v2563_v62 = vpop.f32.mrf.mxu1  ;;  %6167 = vmatmul.mubr.msk.bf16.gmra.mxu1 %vm796_vm1, %v7457_v29 }
 0x1df   : > { %10330 = vst [vmem:[#allocation60_spill] sm:$0xff] %v8347_v15  ;;  %v1884_v60 = vadd.f32 %v1815_v41, %v10332_v61  ;;  %v8354_v42 = vadd.f32 %v2101_v25, %v1883_v18  ;;  %2931 = vmatprep.mubr.bf16.mxu0 %v10141_v55  ;;  %3253 = vmatprep.mubr.bf16.mxu1 %v10141_v55  ;;  %v10336_v25 = vld [vmem:[#allocation77_spill] sm:$0xff]  ;;  %v10337_v15 = vld [vmem:[#allocation39_spill] sm:$0xff] }
 0x1e0   : > { %v1817_v34 = vpop.f32.mrf.mxu0  ;;  %v2565_v26 = vpop.f32.mrf.mxu1 }
 0x1e1   : > { %10333 = vst [vmem:[#allocation61_spill] sm:$0xff] %v8354_v42  ;;  %v1885_v6 = vadd.f32 %v1817_v34, %v10334_v39  ;;  %v8359_v32 = vadd.f32 %v2105_v47, %v1884_v60 }
 0x1e2   : > { %v1819_v12 = vpop.f32.mrf.mxu0  ;;  %v2567_v33 = vpop.f32.mrf.mxu1 }
 0x1e3   : > { %v1886_v24 = vadd.f32 %v1819_v12, %v10335_v31  ;;  %v8362_v35 = vadd.f32 %v2107_v44, %v1885_v6 }
 0x1e4   : > { %v1821_v29 = vpop.f32.mrf.mxu0  ;;  %v2569_v41 = vpop.f32.mrf.mxu1 }
 0x1e5   : > { %v1887_v18 = vadd.f32 %v1821_v29, %v10336_v25  ;;  %v8365_v61 = vadd.f32 %v2109_v58, %v1886_v24  ;;  %v10338_v29 = vld [vmem:[#allocation41_spill] sm:$0xff] }
 0x1e6   : > { %v2267_v42 = vpop.f32.mrf.mxu0  ;;  %6142 = vmatmul.mubr.msk.bf16.gmra.mxu0 %vm796_vm1, %v10337_v15  ;;  %v2573_v23 = vpop.f32.mrf.mxu1  ;;  %6168 = vmatmul.mubr.msk.bf16.gmra.mxu1 %vm796_vm1, %v7561_v54 }
 0x1e7   : > { %v8371_v47 = vadd.f32 %v2111_v14, %v1887_v18  ;;  %v2426_v60 = vadd.f32 %v2267_v42, %v8058_v30  ;;  %2941 = vmatprep.mubr.bf16.mxu0 %v10141_v55  ;;  %3263 = vmatprep.mubr.bf16.mxu1 %v10141_v55 }
 0x1e8   : > { %v2269_v44 = vpop.f32.mrf.mxu0  ;;  %v2575_v34 = vpop.f32.mrf.mxu1 }
 0x1e9   : > { %v2427_v58 = vadd.f32 %v2269_v44, %v8061_v8  ;;  %v8377_v39 = vadd.f32 %v2563_v62, %v2426_v60 }
 0x1ea   : > { %v2271_v6 = vpop.f32.mrf.mxu0  ;;  %v2577_v15 = vpop.f32.mrf.mxu1 }
 0x1eb   : > { %v2428_v12 = vadd.f32 %v2271_v6, %v8064_v56  ;;  %v8380_v31 = vadd.f32 %v2565_v26, %v2427_v58 }
 0x1ec   : > { %v2273_v54 = vpop.f32.mrf.mxu0  ;;  %v2579_v14 = vpop.f32.mrf.mxu1 }
 0x1ed   : > { %v2429_v30 = vadd.f32 %v2273_v54, %v8071_v11  ;;  %v8383_v42 = vadd.f32 %v2567_v33, %v2428_v12  ;;  %v10341_v54 = vld [vmem:[#allocation19_spill] sm:$0xff] }
 0x1ee   : > { %v2277_v24 = vpop.f32.mrf.mxu0  ;;  %6143 = vmatmul.mubr.msk.bf16.gmra.mxu0 %vm796_vm1, %v10338_v29  ;;  %v2583_v25 = vpop.f32.mrf.mxu1  ;;  %6169 = vmatmul.mubr.msk.bf16.gmra.mxu1 %vm796_vm1, %v7593_v16 }
 0x1ef   : > { %v2430_v8 = vadd.f32 %v2277_v24, %v8076_v27  ;;  %v8390_v62 = vadd.f32 %v2569_v41, %v2429_v30  ;;  %2951 = vmatprep.mubr.bf16.mxu0 %v10141_v55  ;;  %3273 = vmatprep.mubr.bf16.mxu1 %v10141_v55 }
 0x1f0   : > { %v2279_v56 = vpop.f32.mrf.mxu0  ;;  %v2585_v11 = vpop.f32.mrf.mxu1 }
 0x1f1   : > { %v2431_v26 = vadd.f32 %v2279_v56, %v8079_v46  ;;  %v8395_v33 = vadd.f32 %v2573_v23, %v2430_v8  ;;  %v8419_v56 = vld [vmem:[%s6941_s19 + $0xcc] sm:$0xf] }
 0x1f2   : > { %v2281_v18 = vpop.f32.mrf.mxu0  ;;  %v2587_v60 = vpop.f32.mrf.mxu1 }
 0x1f3   : > { %v2432_v44 = vadd.f32 %v2281_v18, %v8082_v22  ;;  %v8398_v58 = vadd.f32 %v2575_v34, %v2431_v26  ;;  %v8422_v26 = vld [vmem:[%s6941_s19 + $0xd0] sm:$0xf] }
 0x1f4   : > { %v2283_v16 = vpop.f32.mrf.mxu0  ;;  %v2589_v27 = vpop.f32.mrf.mxu1 }
 0x1f5   : > { %10339 = vst [vmem:[#allocation62_spill] sm:$0xff] %v8398_v58  ;;  %v2433_v41 = vadd.f32 %v2283_v16, %v8089_v53  ;;  %v8401_v6 = vadd.f32 %v2577_v15, %v2432_v44 }
 0x1f6   : > { %v2287_v12 = vpop.f32.mrf.mxu0  ;;  %6144 = vmatmul.mubr.msk.bf16.gmra.mxu0 %vm796_vm1, %v10341_v54  ;;  %v2593_v46 = vpop.f32.mrf.mxu1  ;;  %6170 = vmatmul.mubr.msk.bf16.gmra.mxu1 %vm796_vm1, %v7625_v63 }
 0x1f7   : > { %10340 = vst [vmem:[#allocation20_spill] sm:$0xff] %v8401_v6  ;;  %v2434_v22 = vadd.f32 %v2287_v12, %v8094_v37  ;;  %v8408_v23 = vadd.f32 %v2579_v14, %v2433_v41  ;;  %2961 = vmatprep.mubr.bf16.mxu0 %v10141_v55  ;;  %3283 = vmatprep.mubr.bf16.mxu1 %v10141_v55  ;;  %v10347_v41 = vld [vmem:[#allocation78_spill] sm:$0xff]  ;;  %v10352_v6 = vld [vmem:[#allocation81_spill] sm:$0xff] }
 0x1f8   : > { %v2289_v53 = vpop.f32.mrf.mxu0  ;;  %v2595_v34 = vpop.f32.mrf.mxu1 }
 0x1f9   : > { %10342 = vst [vmem:[#allocation21_spill] sm:$0xff] %v8408_v23  ;;  %v2435_v15 = vadd.f32 %v2289_v53, %v8097_v36  ;;  %v8413_v30 = vadd.f32 %v2583_v25, %v2434_v22  ;;  %v10346_v36 = vld [vmem:[#allocation26_spill] sm:$0xff]  ;;  %v8449_v23 = vld [vmem:[%s6941_s19 + $0xd4] sm:$0x1]  ;;  %s6811_s19 = smov 28  }
 0x1fa   : > { %v2291_v24 = vpop.f32.mrf.mxu0  ;;  %v2597_v29 = vpop.f32.mrf.mxu1 }
 0x1fb   : > { %10343 = vst [vmem:[#allocation63_spill] sm:$0xff] %v8413_v30  ;;  %v2436_v8 = vadd.f32 %v2291_v24, %v8100_v43  ;;  %v8416_v63 = vadd.f32 %v2585_v11, %v2435_v15  ;;  %v3077_v43 = vshrl.u32 %v8419_v56, 16  ;;  %v3080_v11 = vshll.u32 %v8419_v56, 16 }
 0x1fc   : > { %v2293_v37 = vpop.f32.mrf.mxu0  ;;  %v2599_v14 = vpop.f32.mrf.mxu1 }
 0x1fd   : > { %10344 = vst [vmem:[#allocation64_spill] sm:$0xff] %v8416_v63  ;;  %v2437_v18 = vadd.f32 %v2293_v37, %v8107_v48  ;;  %v8425_v44 = vadd.f32 %v2587_v60, %v2436_v8  ;;  %v3090_v48 = vshrl.u32 %v8422_v26, 16  ;;  %v3086_v60 = vshll.u32 %v8422_v26, 16 }
 0x1fe   : > { %v2297_v16 = vpop.f32.mrf.mxu0  ;;  %6145 = vmatmul.mubr.msk.bf16.gmra.mxu0 %vm796_vm1, %v10346_v36  ;;  %v2603_v25 = vpop.f32.mrf.mxu1  ;;  %6171 = vmatmul.mubr.msk.bf16.gmra.mxu1 %vm796_vm1, %v7657_v40  ;;  %v10349_v40 = vld [vmem:[#allocation79_spill] sm:$0xff] }
 0x1ff   : > { %10345 = vst [vmem:[#allocation65_spill] sm:$0xff] %v8425_v44  ;;  %v2438_v12 = vadd.f32 %v2297_v16, %v10347_v41  ;;  %v8434_v54 = vadd.f32 %v2589_v27, %v2437_v18  ;;  %2971 = vmatprep.mubr.bf16.mxu0 %v10141_v55  ;;  %3293 = vmatprep.mubr.bf16.mxu1 %v10141_v55  ;;  %v3079_v16 = vrot.slane %v3077_v43, 4  ;;  %v3082_v27 = vrot.slane %v3080_v11, 5  ;;  %v10350_v18 = vld [vmem:[#allocation80_spill] sm:$0xff] }
 0x200   : > { %v2299_v22 = vpop.f32.mrf.mxu0  ;;  %v2605_v53 = vpop.f32.mrf.mxu1  ;;  %v3092_v44 = vrot.slane %v3090_v48, 4 }
 0x201   : > { %10348 = vst [vmem:[#allocation24_spill] sm:$0xff] %v8434_v54  ;;  %v2439_v15 = vadd.f32 %v2299_v22, %v10349_v40  ;;  %v8441_v24 = vadd.f32 %v2593_v46, %v2438_v12  ;;  %v3088_v54 = vrot.slane %v3086_v60, 5  ;;  %v10353_v12 = vld [vmem:[#allocation31_spill] sm:$0xff] }
 0x202   : > { %v2301_v8 = vpop.f32.mrf.mxu0  ;;  %v2607_v37 = vpop.f32.mrf.mxu1 }
 0x203   : > { %v2440_v36 = vadd.f32 %v2301_v8, %v10350_v18  ;;  %v8444_v41 = vadd.f32 %v2595_v34, %v2439_v15  ;;  %v3083_v34 = vor.u32 %v3082_v27, %v3079_v16 }
 0x204   : > { %v2303_v63 = vpop.f32.mrf.mxu0  ;;  %v8446_v30 = vpop.f32.mrf.mxu1 }
 0x205   : > { %10351 = vst [vmem:[#allocation23_spill] sm:$0xff] %v8446_v30  ;;  %v2441_v58 = vadd.f32 %v2303_v63, %v10352_v6  ;;  %v8452_v22 = vadd.f32 %v2597_v29, %v2440_v36  ;;  %v3093_v6 = vor.u32 %v3092_v44, %v3088_v54  ;;  %v3096_v29 = vshll.u32 %v8449_v23, 16 }
 0x206   : > { %v2307_v46 = vpop.f32.mrf.mxu0  ;;  %6146 = vmatmul.mubr.msk.bf16.gmra.mxu0 %vm796_vm1, %v10353_v12  ;;  %v2613_v43 = vpop.f32.mrf.mxu1  ;;  %6172 = vmatmul.mubr.msk.bf16.gmra.mxu1 %vm796_vm1, %v10262_v9  ;;  %v3084_v16 = vrot.slane %v3083_v34, 4 }
 0x207   : > { %v2442_v11 = vadd.f32 %v2307_v46, %v8135_v17  ;;  %v8459_v48 = vadd.f32 %v2599_v14, %v2441_v58  ;;  %2981 = vmatprep.mubr.bf16.mxu0 %v10141_v55  ;;  %3303 = vmatprep.mubr.bf16.mxu1 %v10141_v55  ;;  %v3094_v14 = vrot.slane %v3093_v6, 4  ;;  %v3098_v27 = vrot.slane %v3096_v29, 5 }
 0x208   : > { %v2309_v63 = vpop.f32.mrf.mxu0  ;;  %v2615_v60 = vpop.f32.mrf.mxu1 }
 0x209   : > { %v2443_v40 = vadd.f32 %v2309_v63, %v8140_v51  ;;  %v8465_v15 = vadd.f32 %v2603_v25, %v2442_v11  ;;  %v10356_v25 = vld [vmem:[#allocation34_spill] sm:$0xff] }
 0x20a   : > { %v2311_v8 = vpop.f32.mrf.mxu0  ;;  %v2617_v9 = vpop.f32.mrf.mxu1 }
 0x20b   : > { %v2444_v17 = vadd.f32 %v2311_v8, %v8143_v38  ;;  %v8468_v58 = vadd.f32 %v2605_v53, %v2443_v40  ;;  %v3099_v53 = vsel %vm6971_vm3, %v3094_v14, %v3098_v27  ;;  %v10359_v14 = vld [vmem:[#allocation45_spill] sm:$0xff] }
 0x20c   : > { %v2313_v18 = vpop.f32.mrf.mxu0  ;;  %v8470_v36 = vpop.f32.mrf.mxu1 }
 0x20d   : > { %10354 = vst [vmem:[#allocation66_spill] sm:$0xff] %v8470_v36  ;;  %v8473_v44 = vadd.f32 %v2313_v18, %v8152_v20  ;;  %v8475_v46 = vadd.f32 %v2607_v37, %v2444_v17  ;;  %v3089_v20 = vsel %vm6971_vm3, %v3084_v16, %v3088_v54  ;;  %vm4307_vm3 = vcmask 424960  }
 0x20e   : > { %v2317_v51 = vpop.f32.mrf.mxu0  ;;  %6147 = vmatmul.mubr.msk.bf16.gmra.mxu0 %vm796_vm1, %v10356_v25  ;;  %v2623_v12 = vpop.f32.mrf.mxu1  ;;  %6173 = vmatmul.mubr.msk.bf16.gmra.mxu1 %vm796_vm1, %v8188_v10  ;;  %v6154_v63 = vcombine.low %v3089_v20, %v3099_v53 }
 0x20f   : > { %10355 = vst [vmem:[#allocation67_spill] sm:$0xff] %v8473_v44  ;;  %v2446_v38 = vadd.f32 %v2317_v51, %v8159_v45  ;;  %2991 = vmatprep.mubr.bf16.mxu0 %v10141_v55  ;;  %3313 = vmatprep.mubr.bf16.mxu1 %v10141_v55  ;;  %v10398_v44 = vld [vmem:[#allocation16_spill] sm:$0xff] }
 0x210   : > { %v2319_v37 = vpop.f32.mrf.mxu0  ;;  %v2625_v34 = vpop.f32.mrf.mxu1 }
 0x211   : > { %v2447_v11 = vadd.f32 %v2319_v37, %v8164_v28  ;;  %v8489_v6 = vadd.f32 %v2613_v43, %v2446_v38 }
 0x212   : > { %v2321_v29 = vpop.f32.mrf.mxu0  ;;  %v2627_v10 = vpop.f32.mrf.mxu1 }
 0x213   : > { %v2448_v45 = vadd.f32 %v2321_v29, %v8167_v50  ;;  %v8492_v40 = vadd.f32 %v2615_v60, %v2447_v11 }
 0x214   : > { %v2323_v8 = vpop.f32.mrf.mxu0  ;;  %v8494_v17 = vpop.f32.mrf.mxu1 }
 0x215   : > { %10357 = vst [vmem:[#allocation68_spill] sm:$0xff] %v8494_v17  ;;  %v8497_v54 = vadd.f32 %v2323_v8, %v8176_v3  ;;  %v8499_v52 = vadd.f32 %v2617_v9, %v2448_v45  ;;  %v6129_v9 = vcombine.low %v8419_v56, %v8422_v26 }
 0x216   : > { %v2327_v16 = vpop.f32.mrf.mxu0  ;;  %6148 = vmatmul.mubr.msk.bf16.gmra.mxu0 %vm796_vm1, %v10359_v14  ;;  %v2633_v28 = vpop.f32.mrf.mxu1  ;;  %6174 = vmatmul.mubr.msk.bf16.gmra.mxu1 %vm796_vm1, %v6154_v63 }
 0x217   : > { %10358 = vst [vmem:[#allocation27_spill] sm:$0xff] %v8497_v54  ;;  %v2450_v43 = vadd.f32 %v2327_v16, %v8186_v57  ;;  %3001 = vmatprep.mubr.bf16.mxu0 %v10141_v55  ;;  %v10390_v54 = vld [vmem:[#allocation13_spill] sm:$0xff] }
 0x218   : > { %v2329_v50 = vpop.f32.mrf.mxu0  ;;  %v2635_v60 = vpop.f32.mrf.mxu1 }
 0x219   : > { %v2451_v27 = vadd.f32 %v2329_v50, %v8191_v21  ;;  %v8507_v18 = vadd.f32 %v2623_v12, %v2450_v43 }
 0x21a   : > { %v2331_v3 = vpop.f32.mrf.mxu0  ;;  %v2637_v51 = vpop.f32.mrf.mxu1 }
 0x21b   : > { %v2452_v25 = vadd.f32 %v2331_v3, %v8194_v1  ;;  %v8512_v38 = vadd.f32 %v2625_v34, %v2451_v27  ;;  %v10362_v34 = vld [vmem:[#allocation43_spill] sm:$0xff]  ;;  %v10365_v27 = vld [vmem:[#allocation46_spill] sm:$0xff] }
 0x21c   : > { %v2333_v20 = vpop.f32.mrf.mxu0  ;;  %v8514_v53 = vpop.f32.mrf.mxu1 }
 0x21d   : > { %10360 = vst [vmem:[#allocation28_spill] sm:$0xff] %v8514_v53  ;;  %v8517_v57 = vadd.f32 %v2333_v20, %v8201_v13  ;;  %v8519_v37 = vadd.f32 %v2627_v10, %v2452_v25  ;;  %v10363_v13 = vld [vmem:[#allocation5_spill] sm:$0xff]  ;;  %v10367_v25 = vld [vmem:[#allocation6_spill] sm:$0xff] }
 0x21e   : > { %v2337_v21 = vpop.f32.mrf.mxu0  ;;  %6149 = vmatmul.mubr.msk.bf16.gmra.mxu0 %vm796_vm1, %v6129_v9  ;;  %v2643_v12 = vpop.f32.mrf.mxu1 }
 0x21f   : > { %10361 = vst [vmem:[#allocation69_spill] sm:$0xff] %v8517_v57  ;;  %v2454_v11 = vadd.f32 %v2337_v21, %v8206_v59  ;;  %3459 = vmatprep.mubr.bf16.mxu0 %v10141_v55  ;;  %v10384_v57 = vld [vmem:[#allocation15_spill] sm:$0xff] }
 0x220   : > { %v2339_v29 = vpop.f32.mrf.mxu0  ;;  %v2645_v1 = vpop.f32.mrf.mxu1 }
 0x221   : > { %v2455_v63 = vadd.f32 %v2339_v29, %v10362_v34  ;;  %v8525_v45 = vadd.f32 %v2633_v28, %v2454_v11 }
 0x222   : > { %v2341_v8 = vpop.f32.mrf.mxu0  ;;  %v2647_v16 = vpop.f32.mrf.mxu1 }
 0x223   : > { %v2456_v14 = vadd.f32 %v2341_v8, %v10363_v13  ;;  %v8528_v10 = vadd.f32 %v2635_v60, %v2455_v63  ;;  %v10368_v8 = vld [vmem:[#allocation47_spill] sm:$0xff] }
 0x224   : > { %v2343_v43 = vpop.f32.mrf.mxu0  ;;  %v8530_v50 = vpop.f32.mrf.mxu1 }
 0x225   : > { %10364 = vst [vmem:[#allocation70_spill] sm:$0xff] %v8530_v50  ;;  %v8533_v3 = vadd.f32 %v2343_v43, %v10365_v27  ;;  %v8535_v59 = vadd.f32 %v2637_v51, %v2456_v14  ;;  %v10370_v27 = vld [vmem:[#allocation48_spill] sm:$0xff]  ;;  %v10372_v50 = vld [vmem:[#allocation42_spill] sm:$0xff] }
 0x226   : > { %v2347_v9 = vpop.f32.mrf.mxu0  ;;  %6185 = vmatmul.mubr.msk.bf16.vlgmr.msra.gmra.mxu0 %vm796_vm1, %v10367_v25  ;;  %v2653_v28 = vpop.f32.mrf.mxu1 }
 0x227   : > { %10366 = vst [vmem:[#allocation71_spill] sm:$0xff] %v8533_v3  ;;  %v2458_v20 = vadd.f32 %v2347_v9, %v8233_v5  ;;  %3469 = vmatprep.mubr.bf16.mxu0 %v10141_v55  ;;  %v10378_v3 = vld [vmem:[#allocation11_spill] sm:$0xff] }
 0x228   : > { %v2349_v21 = vpop.f32.mrf.mxu0  ;;  %v2655_v60 = vpop.f32.mrf.mxu1 }
 0x229   : > { %v2459_v11 = vadd.f32 %v2349_v21, %v8236_v2  ;;  %v8542_v29 = vadd.f32 %v2643_v12, %v2458_v20  ;;  %v10373_v21 = vld [vmem:[#allocation49_spill] sm:$0xff] }
 0x22a   : > { %v2351_v34 = vpop.f32.mrf.mxu0  ;;  %v2657_v63 = vpop.f32.mrf.mxu1 }
 0x22b   : > { %v2460_v51 = vadd.f32 %v2351_v34, %v10368_v8  ;;  %v8545_v13 = vadd.f32 %v2645_v1, %v2459_v11 }
 0x22c   : > { %v2353_v14 = vpop.f32.mrf.mxu0  ;;  %v8547_v43 = vpop.f32.mrf.mxu1 }
 0x22d   : > { %10369 = vst [vmem:[#allocation29_spill] sm:$0xff] %v8547_v43  ;;  %v8550_v25 = vadd.f32 %v2353_v14, %v10370_v27  ;;  %v8552_v5 = vadd.f32 %v2647_v16, %v2460_v51  ;;  %v10374_v27 = vld [vmem:[#allocation50_spill] sm:$0xff] }
 0x22e   : > { %v2357_v9 = vpop.f32.mrf.mxu0  ;;  %6186 = vmatmul.mubr.msk.bf16.gmra.mxu0 %vm796_vm1, %v10372_v50  ;;  %v2663_v2 = vpop.f32.mrf.mxu1  ;;  %v10376_v50 = vld [vmem:[#allocation51_spill] sm:$0xff] }
 0x22f   : > { %10371 = vst [vmem:[#allocation40_spill] sm:$0xff] %v8550_v25  ;;  %v2462_v12 = vadd.f32 %v2357_v9, %v8251_v4  ;;  %3479 = vmatprep.mubr.bf16.mxu0 %v10141_v55 }
 0x230   : > { %v2359_v20 = vpop.f32.mrf.mxu0  ;;  %v2665_v1 = vpop.f32.mrf.mxu1 }
 0x231   : > { %v2463_v11 = vadd.f32 %v2359_v20, %v10373_v21  ;;  %v8559_v34 = vadd.f32 %v2653_v28, %v2462_v12  ;;  %v10379_v21 = vld [vmem:[#allocation52_spill] sm:$0xff] }
 0x232   : > { %v2361_v8 = vpop.f32.mrf.mxu0  ;;  %v2667_v14 = vpop.f32.mrf.mxu1 }
 0x233   : > { %v2464_v16 = vadd.f32 %v2361_v8, %v10374_v27  ;;  %v8562_v51 = vadd.f32 %v2655_v60, %v2463_v11 }
 0x234   : > { %v2363_v43 = vpop.f32.mrf.mxu0  ;;  %v8564_v25 = vpop.f32.mrf.mxu1 }
 0x235   : > { %10375 = vst [vmem:[#allocation35_spill] sm:$0xff] %v8564_v25  ;;  %v8567_v53 = vadd.f32 %v2363_v43, %v10376_v50  ;;  %v8569_v4 = vadd.f32 %v2657_v63, %v2464_v16  ;;  %v10380_v50 = vld [vmem:[#allocation53_spill] sm:$0xff] }
 0x236   : > { %v2367_v9 = vpop.f32.mrf.mxu0  ;;  %6187 = vmatmul.mubr.msk.bf16.gmra.mxu0 %vm796_vm1, %v10378_v3  ;;  %v2673_v28 = vpop.f32.mrf.mxu1  ;;  %v10382_v3 = vld [vmem:[#allocation8_spill] sm:$0xff] }
 0x237   : > { %10377 = vst [vmem:[#allocation72_spill] sm:$0xff] %v8567_v53  ;;  %v2466_v12 = vadd.f32 %v2367_v9, %v8269_v0  ;;  %3489 = vmatprep.mubr.bf16.mxu0 %v10141_v55 }
 0x238   : > { %v2369_v20 = vpop.f32.mrf.mxu0  ;;  %v2675_v60 = vpop.f32.mrf.mxu1 }
 0x239   : > { %v2467_v11 = vadd.f32 %v2369_v20, %v10379_v21  ;;  %v8576_v8 = vadd.f32 %v2663_v2, %v2466_v12  ;;  %v10385_v21 = vld [vmem:[#allocation7_spill] sm:$0xff] }
 0x23a   : > { %v2371_v27 = vpop.f32.mrf.mxu0  ;;  %v2677_v43 = vpop.f32.mrf.mxu1 }
 0x23b   : > { %v2468_v63 = vadd.f32 %v2371_v27, %v10380_v50  ;;  %v8579_v16 = vadd.f32 %v2665_v1, %v2467_v11 }
 0x23c   : > { %v2373_v25 = vpop.f32.mrf.mxu0  ;;  %v8581_v53 = vpop.f32.mrf.mxu1 }
 0x23d   : > { %10381 = vst [vmem:[#allocation73_spill] sm:$0xff] %v8581_v53  ;;  %v8584_v17 = vadd.f32 %v2373_v25, %v10382_v3  ;;  %v8586_v0 = vadd.f32 %v2667_v14, %v2468_v63  ;;  %v10386_v3 = vld [vmem:[#allocation54_spill] sm:$0xff] }
 0x23e   : > { %v2377_v9 = vpop.f32.mrf.mxu0  ;;  %6188 = vmatmul.mubr.msk.bf16.gmra.mxu0 %vm796_vm1, %v10384_v57  ;;  %v2683_v2 = vpop.f32.mrf.mxu1  ;;  %v10388_v57 = vld [vmem:[#allocation55_spill] sm:$0xff] }
 0x23f   : > { %10383 = vst [vmem:[#allocation74_spill] sm:$0xff] %v8584_v17  ;;  %v2470_v12 = vadd.f32 %v2377_v9, %v8287_v49  ;;  %3499 = vmatprep.mubr.bf16.mxu0 %v10141_v55 }
 0x240   : > { %v2379_v20 = vpop.f32.mrf.mxu0  ;;  %v2685_v1 = vpop.f32.mrf.mxu1 }
 0x241   : > { %v2471_v11 = vadd.f32 %v2379_v20, %v10385_v21  ;;  %v8593_v27 = vadd.f32 %v2673_v28, %v2470_v12  ;;  %v10391_v21 = vld [vmem:[#allocation56_spill] sm:$0xff] }
 0x242   : > { %v2381_v50 = vpop.f32.mrf.mxu0  ;;  %v2687_v25 = vpop.f32.mrf.mxu1 }
 0x243   : > { %v2472_v14 = vadd.f32 %v2381_v50, %v10386_v3  ;;  %v8596_v63 = vadd.f32 %v2675_v60, %v2471_v11 }
 0x244   : > { %v2383_v53 = vpop.f32.mrf.mxu0  ;;  %v8598_v17 = vpop.f32.mrf.mxu1 }
 0x245   : > { %10387 = vst [vmem:[#allocation36_spill] sm:$0xff] %v8598_v17  ;;  %v8601_v36 = vadd.f32 %v2383_v53, %v10388_v57  ;;  %v8603_v49 = vadd.f32 %v2677_v43, %v2472_v14  ;;  %v10392_v57 = vld [vmem:[#allocation10_spill] sm:$0xff] }
 0x246   : > { %v2387_v9 = vpop.f32.mrf.mxu0  ;;  %6189 = vmatmul.mubr.msk.bf16.gmra.mxu0 %vm796_vm1, %v10390_v54  ;;  %v2693_v28 = vpop.f32.mrf.mxu1  ;;  %v10395_v54 = vld [vmem:[#allocation9_spill] sm:$0xff] }
 0x247   : > { %10389 = vst [vmem:[#allocation37_spill] sm:$0xff] %v8601_v36  ;;  %v2474_v12 = vadd.f32 %v2387_v9, %v8305_v19  ;;  %3509 = vmatprep.mubr.bf16.mxu0 %v10141_v55 }
 0x248   : > { %v2389_v20 = vpop.f32.mrf.mxu0  ;;  %v2695_v60 = vpop.f32.mrf.mxu1 }
 0x249   : > { %v2475_v11 = vadd.f32 %v2389_v20, %v10391_v21  ;;  %v8610_v50 = vadd.f32 %v2683_v2, %v2474_v12  ;;  %v10399_v12 = vld [vmem:[#allocation57_spill] sm:$0xff] }
 0x24a   : > { %v2391_v3 = vpop.f32.mrf.mxu0  ;;  %v2697_v53 = vpop.f32.mrf.mxu1 }
 0x24b   : > { %v2476_v43 = vadd.f32 %v2391_v3, %v10392_v57  ;;  %v8613_v14 = vadd.f32 %v2685_v1, %v2475_v11  ;;  %v10400_v11 = vld [vmem:[#allocation58_spill] sm:$0xff] }
 0x24c   : > { %v2393_v17 = vpop.f32.mrf.mxu0  ;;  %v8615_v36 = vpop.f32.mrf.mxu1 }
 0x24d   : > { %10393 = vst [vmem:[#allocation75_spill] sm:$0xff] %v8613_v14  ;;  %10394 = vst [vmem:[#allocation76_spill] sm:$0xff] %v8615_v36  ;;  %v8618_v30 = vadd.f32 %v2393_v17, %v10395_v54  ;;  %v8620_v19 = vadd.f32 %v2687_v25, %v2476_v43  ;;  %v10401_v54 = vld [vmem:[#allocation59_spill] sm:$0xff] }
 0x24e   : > { %v2397_v9 = vpop.f32.mrf.mxu0  ;;  %6190 = vmatmul.mubr.msk.bf16.gmra.mxu0 %vm796_vm1, %v10398_v44  ;;  %v2703_v2 = vpop.f32.mrf.mxu1  ;;  %v6661_v44 = vld [vmem:[%s10022_s3 + $0x78] sm:$0xff]  }
 0x24f   : > { %10396 = vst [vmem:[#allocation77_spill] sm:$0xff] %v8618_v30  ;;  %10397 = vst [vmem:[#allocation39_spill] sm:$0xff] %v8620_v19  ;;  %v2478_v20 = vadd.f32 %v2397_v9, %v10399_v12  ;;  %3519 = vmatprep.mubr.bf16.mxu0 %v10141_v55  ;;  %v10403_v9 = vld [vmem:[#allocation12_spill] sm:$0xff]  ;;  %6339 = vmatprep.subr.bf16.mxu1 %v6661_v44 }
 0x250   : > { %v2399_v21 = vpop.f32.mrf.mxu0  ;;  %v2705_v1 = vpop.f32.mrf.mxu1 }
 0x251   : > { %v2479_v3 = vadd.f32 %v2399_v21, %v10400_v11  ;;  %v8627_v57 = vadd.f32 %v2693_v28, %v2478_v20  ;;  %v6662_v28 = vld [vmem:[%s10022_s3 + $0x38] sm:$0xff]  }
 0x252   : > { %v2401_v36 = vpop.f32.mrf.mxu0  ;;  %v2707_v17 = vpop.f32.mrf.mxu1  ;;  %6340 = vmatpush3.bf16.msra.mxu1 %v6662_v28 }
 0x253   : > { %v2480_v25 = vadd.f32 %v2401_v36, %v10401_v54  ;;  %v8630_v43 = vadd.f32 %v2695_v60, %v2479_v3  ;;  %v10405_v36 = vld [vmem:[#allocation18_spill] sm:$0xff] }
 0x254   : > { %v2403_v30 = vpop.f32.mrf.mxu0  ;;  %v8632_v19 = vpop.f32.mrf.mxu1  ;;  %v10406_v3 = vld [vmem:[#allocation14_spill] sm:$0xff] }
 0x255   : > { %10402 = vst [vmem:[#allocation41_spill] sm:$0xff] %v8632_v19  ;;  %v8638_v12 = vadd.f32 %v2403_v30, %v10403_v9  ;;  %v8640_v14 = vadd.f32 %v2697_v53, %v2480_v25  ;;  %v6663_v53 = vld [vmem:[%s10022_s3 + $0x70] sm:$0xff]  }
 0x256   : > { %v2407_v20 = vpop.f32.mrf.mxu0  ;;  %6191 = vmatmul.mubr.msk.bf16.gmra.mxu0 %vm796_vm1, %v10405_v36  ;;  %v2713_v60 = vpop.f32.mrf.mxu1  ;;  %v6664_v9 = vld [vmem:[%s10022_s3 + $0x30] sm:$0xff]   ;;  %6341 = vmatprep.subr.bf16.mxu1 %v6663_v53  ;;  %v6666_v53 = vld [vmem:[%s10022_s3 + $0x28] sm:$0xff]  }
 0x257   : > { %10404 = vst [vmem:[#allocation19_spill] sm:$0xff] %v8638_v12  ;;  %v2482_v21 = vadd.f32 %v2407_v20, %v8341_v7  ;;  %3529 = vmatprep.mubr.bf16.mxu0 %v10141_v55  ;;  %v10407_v7 = vld [vmem:[#allocation60_spill] sm:$0xff]  ;;  %6342 = vmatpush3.bf16.msra.mxu1 %v6664_v9  ;;  %v6665_v12 = vld [vmem:[%s10022_s3 + $0x68] sm:$0xff]  }
 0x258   : > { %v2409_v11 = vpop.f32.mrf.mxu0  ;;  %v2715_v30 = vpop.f32.mrf.mxu1  ;;  %6343 = vmatprep.subr.bf16.mxu1 %v6665_v12  ;;  %v6668_v12 = vld [vmem:[%s10022_s3 + $0x20] sm:$0xff]  }
 0x259   : > { %v2483_v54 = vadd.f32 %v2409_v11, %v10406_v3  ;;  %v8653_v25 = vadd.f32 %v2703_v2, %v2482_v21  ;;  %v10408_v11 = vld [vmem:[#allocation61_spill] sm:$0xff] }
 0x25a   : > { %v2411_v44 = vpop.f32.mrf.mxu0  ;;  %v2717_v19 = vpop.f32.mrf.mxu1 }
 0x25b   : > { %v2484_v20 = vadd.f32 %v2411_v44, %v10407_v7  ;;  %v8659_v36 = vadd.f32 %v2705_v1, %v2483_v54  ;;  %v10410_v44 = vld [vmem:[#allocation17_spill] sm:$0xff]  ;;  %6344 = vmatpush3.bf16.msra.mxu1 %v6666_v53 }
 0x25c   : > { %v2413_v28 = vpop.f32.mrf.mxu0  ;;  %v8676_v9 = vpop.f32.mrf.mxu1 }
 0x25d   : > { %v8665_v2 = vadd.f32 %v2413_v28, %v10408_v11  ;;  %v8667_v21 = vadd.f32 %v2707_v17, %v2484_v20  ;;  %10411 = vst [vmem:[#allocation78_spill] sm:$0xff] %v8676_v9  ;;  %v6667_v17 = vld [vmem:[%s10022_s3 + $0x60] sm:$0xff]  }
 0x25e   : > { %v2417_v3 = vpop.f32.mrf.mxu0  ;;  %6192 = vmatmul.mubr.msk.bf16.gmra.mxu0 %vm796_vm1, %v10410_v44  ;;  %6345 = vmatprep.subr.bf16.mxu1 %v6667_v17  ;;  %v10421_v9 = vld [vmem:[#allocation21_spill] sm:$0xff] }
 0x25f   : > { %10409 = vst [vmem:[#allocation26_spill] sm:$0xff] %v8665_v2  ;;  %v2486_v1 = vadd.f32 %v2417_v3, %v8359_v32  ;;  %3539 = vmatprep.mubr.bf16.mxu0 %v10141_v55  ;;  %6346 = vmatpush3.bf16.msra.mxu1 %v6668_v12  ;;  %v8690_v3 = vpop.f32.mrf.mxu1  ;;  %v6672_v12 = vld [vmem:[%s10022_s3 + $0x10] sm:$0xff]  }
 0x260   : > { %v2419_v54 = vpop.f32.mrf.mxu0 }
 0x261   : > { %v2487_v7 = vadd.f32 %v2419_v54, %v8362_v35  ;;  %v8682_v20 = vadd.f32 %v2713_v60, %v2486_v1  ;;  %v6669_v35 = vld [vmem:[%s10022_s3 + $0x58] sm:$0xff]  }
 0x262   : > { %v2421_v28 = vpop.f32.mrf.mxu0  ;;  %v6670_v1 = vld [vmem:[%s10022_s3 + $0x18] sm:$0xff]   ;;  %6347 = vmatprep.subr.bf16.mxu1 %v6669_v35  ;;  %v6673_v35 = vld [vmem:[%s10022_s3 + $0x48] sm:$0xff]  }
 0x263   : > { %v2488_v32 = vadd.f32 %v2421_v28, %v8365_v61  ;;  %v8688_v11 = vadd.f32 %v2715_v30, %v2487_v7  ;;  %v10413_v30 = vld [vmem:[#allocation22_spill] sm:$0xff]  ;;  %6348 = vmatpush3.bf16.msra.mxu1 %v6670_v1 }
 0x264   : > { %v2423_v53 = vpop.f32.mrf.mxu0  ;;  %v6674_v1 = vld [vmem:[%s10022_s3 + $0x8] sm:$0xff]  }
 0x265   : > { %v8696_v60 = vadd.f32 %v2423_v53, %v8371_v47  ;;  %v8698_v44 = vadd.f32 %v2717_v19, %v2488_v32  ;;  %v8709_v47 = vpop.f32.mrf.mxu1  ;;  %v6671_v19 = vld [vmem:[%s10022_s3 + $0x50] sm:$0xff]  }
 0x266   : > { %v2853_v61 = vpop.f32.mrf.mxu0  ;;  %6193 = vmatmul.mubr.msk.bf16.gmra.mxu0 %vm796_vm1, %v10413_v30  ;;  %6349 = vmatprep.subr.bf16.mxu1 %v6671_v19  ;;  %v10414_v30 = vld [vmem:[#allocation25_spill] sm:$0xff] }
 0x267   : > { %10412 = vst [vmem:[#allocation79_spill] sm:$0xff] %v8696_v60  ;;  %v8706_v54 = vadd.f32 %v2853_v61, %v8377_v39  ;;  %3549 = vmatprep.mubr.bf16.mxu0 %v10141_v55  ;;  %6350 = vmatpush3.bf16.msra.mxu1 %v6672_v12  ;;  %v8723_v53 = vpop.f32.mrf.mxu1  ;;  %v10416_v12 = vld [vmem:[#allocation62_spill] sm:$0xff] }
 0x268   : > { %v2855_v17 = vpop.f32.mrf.mxu0  ;;  %6351 = vmatprep.subr.bf16.mxu1 %v6673_v35 }
 0x269   : > { %v8715_v7 = vadd.f32 %v2855_v17, %v8380_v31  ;;  %v8740_v17 = vpop.f32.mrf.mxu1 }
 0x26a   : > { %v2857_v28 = vpop.f32.mrf.mxu0 }
 0x26b   : > { %v8721_v39 = vadd.f32 %v2857_v28, %v8383_v42  ;;  %6352 = vmatpush3.bf16.msra.mxu1 %v6674_v1  ;;  %v8754_v1 = vpop.f32.mrf.mxu1 }
 0x26c   : > { %v2859_v32 = vpop.f32.mrf.mxu0  ;;  %10420 = vst [vmem:[#allocation34_spill] sm:$0xff] %v8754_v1 }
 0x26d   : > { %v8729_v31 = vadd.f32 %v2859_v32, %v8390_v62  ;;  %v6675_v62 = vld [vmem:[%s10022_s3 + $0x40] sm:$0xff]  }
 0x26e   : > { %v2863_v61 = vpop.f32.mrf.mxu0  ;;  %6194 = vmatmul.mubr.msk.bf16.gmra.mxu0 %vm796_vm1, %v10414_v30  ;;  %v6676_v32 = vld [vmem:[%s10022_s3] sm:$0xff]   ;;  %6353 = vmatprep.subr.bf16.mxu1 %v6675_v62  ;;  %v8765_v62 = vpop.f32.mrf.mxu1 }
 0x26f   : > { %v8737_v42 = vadd.f32 %v2863_v61, %v8395_v33  ;;  %3559 = vmatprep.mubr.bf16.mxu0 %v10141_v55  ;;  %v10418_v33 = vld [vmem:[#allocation20_spill] sm:$0xff]  ;;  %6354 = vmatpush3.bf16.msra.mxu1 %v6676_v32 }
 0x270   : > { %v2865_v19 = vpop.f32.mrf.mxu0 }
 0x271   : > { %10415 = vst [vmem:[#allocation80_spill] sm:$0xff] %v8737_v42  ;;  %v8746_v28 = vadd.f32 %v2865_v19, %v10416_v12  ;;  %v10423_v42 = vld [vmem:[#allocation32_spill] sm:$0xff]  ;;  %v10424_v19 = vld [vmem:[#allocation63_spill] sm:$0xff] }
 0x272   : > { %v2867_v35 = vpop.f32.mrf.mxu0 }
 0x273   : > { %10417 = vst [vmem:[#allocation81_spill] sm:$0xff] %v8746_v28  ;;  %v8752_v61 = vadd.f32 %v2867_v35, %v10418_v33  ;;  %v10426_v33 = vld [vmem:[#allocation64_spill] sm:$0xff]  ;;  %v10427_v28 = vld [vmem:[#allocation65_spill] sm:$0xff] }
 0x274   : > { %v2869_v30 = vpop.f32.mrf.mxu0 }
 0x275   : > { %10419 = vst [vmem:[#allocation31_spill] sm:$0xff] %v8752_v61  ;;  %v8757_v60 = vadd.f32 %v2869_v30, %v10421_v9  ;;  %v8773_v9 = vpop.f32.mrf.mxu1 }
 0x276   : > { %v2873_v2 = vpop.f32.mrf.mxu0  ;;  %6195 = vmatmul.mubr.msk.bf16.gmra.mxu0 %vm796_vm1, %v10423_v42 }
 0x277   : > { %10422 = vst [vmem:[#allocation45_spill] sm:$0xff] %v8757_v60  ;;  %v8762_v12 = vadd.f32 %v2873_v2, %v10424_v19  ;;  %3569 = vmatprep.mubr.bf16.mxu0 %v10141_v55  ;;  %v10429_v60 = vld [vmem:[#allocation24_spill] sm:$0xff]  ;;  %v10430_v19 = vld [vmem:[#allocation30_spill] sm:$0xff] }
 0x278   : > { %v2875_v35 = vpop.f32.mrf.mxu0 }
 0x279   : > { %10425 = vst [vmem:[#allocation43_spill] sm:$0xff] %v8762_v12  ;;  %v8768_v32 = vadd.f32 %v2875_v35, %v10426_v33  ;;  %v8784_v35 = vpop.f32.mrf.mxu1 }
 0x27a   : > { %v2877_v61 = vpop.f32.mrf.mxu0 }
 0x27b   : > { %v8771_v1 = vadd.f32 %v2877_v61, %v10427_v28 }
 0x27c   : > { %v2879_v30 = vpop.f32.mrf.mxu0 }
 0x27d   : > { %10428 = vst [vmem:[#allocation5_spill] sm:$0xff] %v8771_v1  ;;  %v8776_v42 = vadd.f32 %v2879_v30, %v10429_v60  ;;  %v8792_v60 = vpop.f32.mrf.mxu1 }
 0x27e   : > { %v2883_v2 = vpop.f32.mrf.mxu0  ;;  %6196 = vmatmul.mubr.msk.bf16.gmra.mxu0 %vm796_vm1, %v10430_v19 }
 0x27f   : > { %v8781_v12 = vadd.f32 %v2883_v2, %v8441_v24  ;;  %3579 = vmatprep.mubr.bf16.mxu0 %v10141_v55  ;;  %v10434_v2 = vld [vmem:[#allocation33_spill] sm:$0xff] }
 0x280   : > { %v2885_v33 = vpop.f32.mrf.mxu0 }
 0x281   : > { %10431 = vst [vmem:[#allocation46_spill] sm:$0xff] %v8781_v12  ;;  %v8787_v28 = vadd.f32 %v2885_v33, %v8444_v41  ;;  %v8803_v41 = vpop.f32.mrf.mxu1 }
 0x282   : > { %v2887_v61 = vpop.f32.mrf.mxu0 }
 0x283   : > { %v8790_v1 = vadd.f32 %v2887_v61, %v8452_v22 }
 0x284   : > { %v2889_v30 = vpop.f32.mrf.mxu0 }
 0x285   : > { %10432 = vst [vmem:[#allocation6_spill] sm:$0xff] %v8790_v1  ;;  %v8795_v19 = vadd.f32 %v2889_v30, %v8459_v48  ;;  %v8811_v48 = vpop.f32.mrf.mxu1 }
 0x286   : > { %v2893_v24 = vpop.f32.mrf.mxu0  ;;  %6197 = vmatmul.mubr.msk.bf16.gmra.mxu0 %vm796_vm1, %v10434_v2 }
 0x287   : > { %10433 = vst [vmem:[#allocation47_spill] sm:$0xff] %v8795_v19  ;;  %v8800_v12 = vadd.f32 %v2893_v24, %v8465_v15  ;;  %3589 = vmatprep.mubr.bf16.mxu0 %v10141_v55  ;;  %v10438_v19 = vld [vmem:[#allocation44_spill] sm:$0xff]  ;;  %v8822_v24 = vpop.f32.mrf.mxu1 }
 0x288   : > { %v2895_v33 = vpop.f32.mrf.mxu0 }
 0x289   : > { %v8806_v22 = vadd.f32 %v2895_v33, %v8468_v58  ;;  %v3391_v58 = vrot.slane %v8422_v26, 5 }
 0x28a   : > { %v2897_v61 = vpop.f32.mrf.mxu0 }
 0x28b   : > { %10435 = vst [vmem:[#allocation48_spill] sm:$0xff] %v8806_v22  ;;  %v8809_v1 = vadd.f32 %v2897_v61, %v8475_v46  ;;  %v10443_v22 = vld [vmem:[#allocation82_spill] sm:$0xff] }
 0x28c   : > { %v8813_v30 = vpop.f32.mrf.mxu0 }
 0x28d   : > { %10436 = vst [vmem:[#allocation42_spill] sm:$0xff] %v8809_v1  ;;  %10437 = vst [vmem:[#allocation49_spill] sm:$0xff] %v8813_v30  ;;  %v6175_v30 = vrot.slane %v8419_v56, 9 }
 0x28e   : > { %v2903_v2 = vpop.f32.mrf.mxu0  ;;  %6198 = vmatmul.mubr.msk.bf16.gmra.mxu0 %vm796_vm1, %v10438_v19  ;;  %v3393_v19 = vrot.slane %v3391_v58, 4 }
 0x28f   : > { %v8818_v15 = vadd.f32 %v2903_v2, %v8489_v6  ;;  %3599 = vmatprep.mubr.bf16.mxu0 %v10141_v55  ;;  %v3394_v6 = vrot.slane %v8449_v23, 5  ;;  %v8832_v2 = vpop.f32.mrf.mxu1 }
 0x290   : > { %v2905_v33 = vpop.f32.mrf.mxu0 }
 0x291   : > { %10439 = vst [vmem:[#allocation50_spill] sm:$0xff] %v8818_v15  ;;  %v8825_v46 = vadd.f32 %v2905_v33, %v8492_v40  ;;  %v3392_v33 = vsel %vm7407_vm6, %v6175_v30, %v3391_v58  ;;  %v3395_v56 = vsel %vm7407_vm6, %v3393_v19, %v3394_v6  ;;  %v8846_v23 = vpop.f32.mrf.mxu1  ;;  %vm5612_vm6 = vcmask 785408  }
 0x292   : > { %v2907_v61 = vpop.f32.mrf.mxu0 }
 0x293   : > { %10440 = vst [vmem:[#allocation51_spill] sm:$0xff] %v8825_v46  ;;  %v8828_v1 = vadd.f32 %v2907_v61, %v8499_v52  ;;  %v6180_v46 = vcombine.low %v3392_v33, %v3395_v56 }
 0x294   : > { %v8834_v15 = vpop.f32.mrf.mxu0 }
 0x295   : > { %10441 = vst [vmem:[#allocation11_spill] sm:$0xff] %v8828_v1  ;;  %10442 = vst [vmem:[#allocation52_spill] sm:$0xff] %v8834_v15 }
 0x296   : > { %v2913_v26 = vpop.f32.mrf.mxu0  ;;  %6199 = vmatmul.mubr.msk.bf16.gmra.mxu0 %vm796_vm1, %v10443_v22 }
 0x297   : > { %v8839_v40 = vadd.f32 %v2913_v26, %v8507_v18  ;;  %3609 = vmatprep.mubr.bf16.mxu0 %v10141_v55  ;;  %v8854_v18 = vpop.f32.mrf.mxu1 }
 0x298   : > { %v2915_v61 = vpop.f32.mrf.mxu0 }
 0x299   : > { %10444 = vst [vmem:[#allocation53_spill] sm:$0xff] %v8839_v40  ;;  %v8849_v1 = vadd.f32 %v2915_v61, %v8512_v38  ;;  %v8863_v58 = vpop.f32.mrf.mxu1 }
 0x29a   : > { %v2917_v15 = vpop.f32.mrf.mxu0 }
 0x29b   : > { %v8852_v22 = vadd.f32 %v2917_v15, %v8519_v37  ;;  %v8871_v6 = vpop.f32.mrf.mxu1 }
 0x29c   : > { %v8856_v26 = vpop.f32.mrf.mxu0 }
 0x29e   : > { %v2923_v40 = vpop.f32.mrf.mxu0  ;;  %6200 = vmatmul.mubr.msk.bf16.gmra.mxu0 %vm796_vm1, %v6180_v46 }
 0x29f   : > { %v8860_v30 = vadd.f32 %v2923_v40, %v8525_v45  ;;  %4408 = vmatprep.mubr.bf16.mxu0 %v10141_v55  ;;  %v8878_v40 = vpop.f32.mrf.mxu1 }
 0x2a0   : > { %v2925_v38 = vpop.f32.mrf.mxu0 }
 0x2a1   : > { %v8866_v19 = vadd.f32 %v2925_v38, %v8528_v10 }
 0x2a2   : > { %v2927_v37 = vpop.f32.mrf.mxu0 }
 0x2a3   : > { %v8869_v15 = vadd.f32 %v2927_v37, %v8535_v59  ;;  %v8886_v59 = vpop.f32.mrf.mxu1 }
 0x2a4   : > { %v8873_v52 = vpop.f32.mrf.mxu0 }
 0x2a6   : > { %v2933_v46 = vpop.f32.mrf.mxu0 }
 0x2a7   : > { %v8876_v45 = vadd.f32 %v2933_v46, %v8542_v29  ;;  %v8893_v29 = vpop.f32.mrf.mxu1 }
 0x2a8   : > { %v2935_v33 = vpop.f32.mrf.mxu0 }
 0x2a9   : > { %10446 = vst [vmem:[#allocation8_spill] sm:$0xff] %v8876_v45  ;;  %v8881_v56 = vadd.f32 %v2935_v33, %v8545_v13 }
 0x2aa   : > { %v2937_v10 = vpop.f32.mrf.mxu0 }
 0x2ab   : > { %v8884_v61 = vadd.f32 %v2937_v10, %v8552_v5  ;;  %v8901_v5 = vpop.f32.mrf.mxu1 }
 0x2ac   : > { %v8888_v38 = vpop.f32.mrf.mxu0 }
 0x2ad   : > { %10447 = vst [vmem:[#allocation15_spill] sm:$0xff] %v8884_v61  ;;  %10448 = vst [vmem:[#allocation7_spill] sm:$0xff] %v8888_v38 }
 0x2ae   : > { %v2943_v37 = vpop.f32.mrf.mxu0 }
 0x2af   : > { %v8891_v55 = vadd.f32 %v2943_v37, %v8559_v34  ;;  %v8908_v34 = vpop.f32.mrf.mxu1 }
 0x2b0   : > { %v2945_v46 = vpop.f32.mrf.mxu0 }
 0x2b1   : > { %10449 = vst [vmem:[#allocation54_spill] sm:$0xff] %v8891_v55  ;;  %v8896_v45 = vadd.f32 %v2945_v46, %v8562_v51 }
 0x2b2   : > { %v2947_v13 = vpop.f32.mrf.mxu0 }
 0x2b3   : > { %10450 = vst [vmem:[#allocation55_spill] sm:$0xff] %v8896_v45  ;;  %v8899_v33 = vadd.f32 %v2947_v13, %v8569_v4  ;;  %v8916_v4 = vpop.f32.mrf.mxu1 }
 0x2b4   : > { %v8903_v10 = vpop.f32.mrf.mxu0 }
 0x2b5   : > { %10451 = vst [vmem:[#allocation13_spill] sm:$0xff] %v8899_v33  ;;  %10452 = vst [vmem:[#allocation56_spill] sm:$0xff] %v8903_v10 }
 0x2b6   : > { %v2953_v61 = vpop.f32.mrf.mxu0 }
 0x2b7   : > { %v8906_v38 = vadd.f32 %v2953_v61, %v8576_v8  ;;  %v8923_v8 = vpop.f32.mrf.mxu1 }
 0x2b8   : > { %v2955_v37 = vpop.f32.mrf.mxu0 }
 0x2b9   : > { %10453 = vst [vmem:[#allocation10_spill] sm:$0xff] %v8906_v38  ;;  %v8911_v55 = vadd.f32 %v2955_v37, %v8579_v16 }
 0x2ba   : > { %v2957_v51 = vpop.f32.mrf.mxu0 }
 0x2bb   : > { %10454 = vst [vmem:[#allocation9_spill] sm:$0xff] %v8911_v55  ;;  %v8914_v46 = vadd.f32 %v2957_v51, %v8586_v0  ;;  %v8931_v0 = vpop.f32.mrf.mxu1 }
 0x2bc   : > { %v8918_v13 = vpop.f32.mrf.mxu0 }
 0x2bd   : > { %10455 = vst [vmem:[#allocation16_spill] sm:$0xff] %v8914_v46  ;;  %10456 = vst [vmem:[#allocation57_spill] sm:$0xff] %v8918_v13 }
 0x2be   : > { %v2963_v33 = vpop.f32.mrf.mxu0 }
 0x2bf   : > { %v8921_v10 = vadd.f32 %v2963_v33, %v8593_v27  ;;  %v8938_v27 = vpop.f32.mrf.mxu1 }
 0x2c0   : > { %v2965_v61 = vpop.f32.mrf.mxu0 }
 0x2c1   : > { %10457 = vst [vmem:[#allocation58_spill] sm:$0xff] %v8921_v10  ;;  %v8926_v38 = vadd.f32 %v2965_v61, %v8596_v63  ;;  %v10462_v10 = vld [vmem:[#allocation75_spill] sm:$0xff] }
 0x2c2   : > { %v2967_v16 = vpop.f32.mrf.mxu0  ;;  %v10464_v61 = vld [vmem:[#allocation39_spill] sm:$0xff] }
 0x2c3   : > { %10458 = vst [vmem:[#allocation59_spill] sm:$0xff] %v8926_v38  ;;  %v8929_v37 = vadd.f32 %v2967_v16, %v8603_v49  ;;  %v8946_v49 = vpop.f32.mrf.mxu1 }
 0x2c4   : > { %v8933_v51 = vpop.f32.mrf.mxu0 }
 0x2c5   : > { %10459 = vst [vmem:[#allocation12_spill] sm:$0xff] %v8929_v37  ;;  %10460 = vst [vmem:[#allocation18_spill] sm:$0xff] %v8933_v51 }
 0x2c6   : > { %v2973_v46 = vpop.f32.mrf.mxu0 }
 0x2c7   : > { %v8936_v13 = vadd.f32 %v2973_v46, %v8610_v50  ;;  %v8953_v50 = vpop.f32.mrf.mxu1 }
 0x2c8   : > { %v2975_v33 = vpop.f32.mrf.mxu0 }
 0x2c9   : > { %10461 = vst [vmem:[#allocation14_spill] sm:$0xff] %v8936_v13  ;;  %v8941_v55 = vadd.f32 %v2975_v33, %v10462_v10 }
 0x2ca   : > { %v2977_v63 = vpop.f32.mrf.mxu0 }
 0x2cb   : > { %10463 = vst [vmem:[#allocation60_spill] sm:$0xff] %v8941_v55  ;;  %v8944_v38 = vadd.f32 %v2977_v63, %v10464_v61  ;;  %v8961_v63 = vpop.f32.mrf.mxu1 }
 0x2cc   : > { %v8948_v16 = vpop.f32.mrf.mxu0 }
 0x2cd   : > { %10465 = vst [vmem:[#allocation61_spill] sm:$0xff] %v8944_v38  ;;  %10466 = vst [vmem:[#allocation17_spill] sm:$0xff] %v8948_v16 }
 0x2ce   : > { %v2983_v37 = vpop.f32.mrf.mxu0 }
 0x2cf   : > { %v8951_v51 = vadd.f32 %v2983_v37, %v8627_v57  ;;  %v8968_v57 = vpop.f32.mrf.mxu1 }
 0x2d0   : > { %v2985_v46 = vpop.f32.mrf.mxu0 }
 0x2d1   : > { %10467 = vst [vmem:[#allocation22_spill] sm:$0xff] %v8951_v51  ;;  %v8956_v13 = vadd.f32 %v2985_v46, %v8630_v43 }
 0x2d2   : > { %v2987_v10 = vpop.f32.mrf.mxu0 }
 0x2d3   : > { %10468 = vst [vmem:[#allocation25_spill] sm:$0xff] %v8956_v13  ;;  %v8959_v33 = vadd.f32 %v2987_v10, %v8640_v14  ;;  %v3686_v14 = vlaneseq  ;;  %v8976_v10 = vpop.f32.mrf.mxu1 }
 0x2d4   : > { %v8963_v61 = vpop.f32.mrf.mxu0 }
 0x2d5   : > { %10469 = vst [vmem:[#allocation62_spill] sm:$0xff] %v8959_v33  ;;  %10470 = vst [vmem:[#allocation20_spill] sm:$0xff] %v8963_v61 }
 0x2d6   : > { %v2993_v38 = vpop.f32.mrf.mxu0 }
 0x2d7   : > { %v8966_v16 = vadd.f32 %v2993_v38, %v8653_v25  ;;  %v3687_v25 = vshrl.u32 %v3686_v14, 7  ;;  %v8983_v38 = vpop.f32.mrf.mxu1 }
 0x2d8   : > { %v2995_v37 = vpop.f32.mrf.mxu0 }
 0x2d9   : > { %10471 = vst [vmem:[#allocation21_spill] sm:$0xff] %v8966_v16  ;;  %v8971_v51 = vadd.f32 %v2995_v37, %v8659_v36  ;;  %v3692_v14 = vsub.s32 1, %v3687_v25 }
 0x2da   : > { %v2997_v43 = vpop.f32.mrf.mxu0 }
 0x2db   : > { %10472 = vst [vmem:[#allocation32_spill] sm:$0xff] %v8971_v51  ;;  %v8974_v46 = vadd.f32 %v2997_v43, %v8667_v21  ;;  %v3688_v43 = vsub.s32 0, %v3687_v25 }
 0x2dc   : > { %v8978_v33 = vpop.f32.mrf.mxu0 }
 0x2dd   : > { %10473 = vst [vmem:[#allocation63_spill] sm:$0xff] %v8974_v46  ;;  %10474 = vst [vmem:[#allocation64_spill] sm:$0xff] %v8978_v33  ;;  %v8991_v46 = vpop.f32.mrf.mxu1 }
 0x2de   : > { %v3003_v61 = vpop.f32.mrf.mxu0 }
 0x2df   : > { %v8981_v13 = vadd.f32 %v3003_v61, %v8682_v20  ;;  %v3684_v20 = vld [vmem:[%s10021_s2] sm:$0x3]  ;;  %v3324_v61 = vadd.f32 %v8690_v3, %v8706_v54  ;;  %v3327_v3 = vadd.f32 %v8740_v17, %v8729_v31 }
 0x2e0   : > { %v3005_v16 = vpop.f32.mrf.mxu0  ;;  %v9008_v33 = vrot.slane %v3684_v20, %v3692_v14 }
 0x2e1   : > { %10475 = vst [vmem:[#allocation65_spill] sm:$0xff] %v8981_v13  ;;  %v8986_v36 = vadd.f32 %v3005_v16, %v8688_v11  ;;  %v3325_v11 = vadd.f32 %v8709_v47, %v8715_v7 }
 0x2e2   : > { %v3007_v37 = vpop.f32.mrf.mxu0 }
 0x2e3   : > { %10476 = vst [vmem:[#allocation24_spill] sm:$0xff] %v8986_v36  ;;  %v8989_v21 = vadd.f32 %v3007_v37, %v8698_v44  ;;  %v9002_v44 = vrot.slane %v3684_v20, %v3688_v43  ;;  %v9004_v37 = vpop.f32.mrf.mxu1  ;;  %v10482_v43 = vld [vmem:[#allocation34_spill] sm:$0xff] }
 0x2e4   : > { %v8993_v51 = vpop.f32.mrf.mxu0  ;;  %10479 = vst [vmem:[#allocation44_spill] sm:$0xff] %v9004_v37 }
 0x2e5   : > { %10477 = vst [vmem:[#allocation30_spill] sm:$0xff] %v8989_v21  ;;  %10478 = vst [vmem:[#allocation33_spill] sm:$0xff] %v8993_v51  ;;  %v3326_v51 = vadd.f32 %v8723_v53, %v8721_v39  ;;  %v9013_v47 = vpop.f32.mrf.mxu1 }
 0x2e6   : > { %v3461_v13 = vpop.f32.mrf.mxu0  ;;  %10480 = vst [vmem:[#allocation82_spill] sm:$0xff] %v9013_v47 }
 0x2e7   : > { %v3620_v16 = vadd.f32 %v3461_v13, %v3324_v61  ;;  %v10481_v13 = vld [vmem:[#allocation80_spill] sm:$0xff]  ;;  %v9024_v47 = vpop.f32.mrf.mxu1 }
 0x2e8   : > { %v3463_v21 = vpop.f32.mrf.mxu0  ;;  %v3328_v61 = vadd.f32 %v10482_v43, %v10481_v13 }
 0x2e9   : > { %v3621_v36 = vadd.f32 %v3463_v21, %v3325_v11  ;;  %v3696_v54 = vadd.f32 %v9002_v44, %v3620_v16  ;;  %v10483_v21 = vld [vmem:[#allocation81_spill] sm:$0xff] }
 0x2ea   : > { %v3465_v55 = vpop.f32.mrf.mxu0  ;;  %v3329_v20 = vadd.f32 %v8765_v62, %v10483_v21 }
 0x2eb   : > { %v3622_v25 = vadd.f32 %v3465_v55, %v3326_v51  ;;  %v3697_v45 = vadd.f32 %v9008_v33, %v3621_v36  ;;  %v3760_v11 = vmax.f32 %v3696_v54, 0.0  ;;  %v10484_v51 = vld [vmem:[#allocation31_spill] sm:$0xff] }
 0x2ec   : > { %v3467_v7 = vpop.f32.mrf.mxu0  ;;  %v3330_v16 = vadd.f32 %v8773_v9, %v10484_v51 }
 0x2ed   : > { %v3698_v39 = vadd.f32 %v9002_v44, %v3622_v25  ;;  %v3623_v53 = vadd.f32 %v3467_v7, %v3327_v3  ;;  %v3761_v43 = vmax.f32 %v3697_v45, 0.0  ;;  %v10485_v7 = vld [vmem:[#allocation45_spill] sm:$0xff] }
 0x2ee   : > { %v3471_v14 = vpop.f32.mrf.mxu0  ;;  %v3331_v62 = vadd.f32 %v8784_v35, %v10485_v7 }
 0x2ef   : > { %v3762_v31 = vmax.f32 %v3698_v39, 0.0  ;;  %v3699_v17 = vadd.f32 %v9008_v33, %v3623_v53  ;;  %v3624_v55 = vadd.f32 %v3471_v14, %v3328_v61  ;;  %v9029_v53 = vpop.f32.mrf.mxu1  ;;  %v10486_v14 = vld [vmem:[#allocation43_spill] sm:$0xff] }
 0x2f0   : > { %v3473_v13 = vpop.f32.mrf.mxu0  ;;  %v3332_v9 = vadd.f32 %v8792_v60, %v10486_v14  ;;  %v10488_v14 = vld [vmem:[#allocation46_spill] sm:$0xff] }
 0x2f1   : > { %v3824_v36 = vpack.c.bf16 %v3762_v31, %v3760_v11  ;;  %v3763_v37 = vmax.f32 %v3699_v17, 0.0  ;;  %v3625_v25 = vadd.f32 %v3473_v13, %v3329_v20  ;;  %v3700_v54 = vadd.f32 %v9002_v44, %v3624_v55  ;;  %v9040_v60 = vpop.f32.mrf.mxu1 }
 0x2f2   : > { %v3475_v3 = vpop.f32.mrf.mxu0  ;;  %v3333_v20 = vadd.f32 %v8803_v41, %v8768_v32  ;;  %v3335_v32 = vadd.f32 %v8822_v24, %v8776_v42 }
 0x2f3   : > { %v3626_v39 = vadd.f32 %v3475_v3, %v3330_v16  ;;  %v3825_v21 = vpack.c.bf16 %v3763_v37, %v3761_v43  ;;  %v3701_v51 = vadd.f32 %v9008_v33, %v3625_v25  ;;  %v3764_v31 = vmax.f32 %v3700_v54, 0.0  ;;  %v10487_v16 = vld [vmem:[#allocation5_spill] sm:$0xff] }
 0x2f4   : > { %v3477_v61 = vpop.f32.mrf.mxu0  ;;  %v3334_v13 = vadd.f32 %v8811_v48, %v10487_v16  ;;  %v3336_v48 = vadd.f32 %v8832_v2, %v10488_v14 }
 0x2f5   : > { %v3702_v45 = vadd.f32 %v9002_v44, %v3626_v39  ;;  %v3627_v11 = vadd.f32 %v3477_v61, %v3331_v62  ;;  %4023 = vmatprep.mubr.bf16.mxu1 %v3825_v21  ;;  %v3765_v25 = vmax.f32 %v3701_v51, 0.0  ;;  %v9045_v21 = vpop.f32.mrf.mxu1 }
 0x2f6   : > { %v3481_v35 = vpop.f32.mrf.mxu0  ;;  %4024 = vmatmul.mubr.bf16.vlgmr.msra.gmra.mxu1 %v3824_v36 }
 0x2f7   : > { %v3766_v17 = vmax.f32 %v3702_v45, 0.0  ;;  %v3703_v37 = vadd.f32 %v9008_v33, %v3627_v11  ;;  %v3628_v55 = vadd.f32 %v3481_v35, %v3332_v9  ;;  %v3337_v11 = vadd.f32 %v8846_v23, %v8787_v28  ;;  %v9056_v2 = vpop.f32.mrf.mxu1 }
 0x2f8   : > { %v3483_v43 = vpop.f32.mrf.mxu0 }
 0x2f9   : > { %v3826_v3 = vpack.c.bf16 %v3766_v17, %v3764_v31  ;;  %v3767_v7 = vmax.f32 %v3703_v37, 0.0  ;;  %v3629_v62 = vadd.f32 %v3483_v43, %v3333_v20  ;;  %v3704_v41 = vadd.f32 %v9002_v44, %v3628_v55  ;;  %v10489_v17 = vld [vmem:[#allocation6_spill] sm:$0xff] }
 0x2fa   : > { %v3485_v39 = vpop.f32.mrf.mxu0  ;;  %v3338_v37 = vadd.f32 %v8854_v18, %v10489_v17  ;;  %v10495_v17 = vld [vmem:[#allocation42_spill] sm:$0xff] }
 0x2fb   : > { %v3630_v36 = vadd.f32 %v3485_v39, %v3334_v13  ;;  %v3827_v54 = vpack.c.bf16 %v3767_v7, %v3765_v25  ;;  %v3705_v9 = vadd.f32 %v9008_v33, %v3629_v62  ;;  %v3768_v24 = vmax.f32 %v3704_v41, 0.0  ;;  %v10490_v62 = vld [vmem:[#allocation47_spill] sm:$0xff] }
 0x2fc   : > { %v3487_v61 = vpop.f32.mrf.mxu0  ;;  %v3339_v28 = vadd.f32 %v8863_v58, %v10490_v62  ;;  %v10492_v41 = vld [vmem:[#allocation23_spill] sm:$0xff]  ;;  %v10493_v58 = vld [vmem:[#allocation48_spill] sm:$0xff] }
 0x2fd   : > { %v3706_v51 = vadd.f32 %v9002_v44, %v3630_v36  ;;  %v3631_v45 = vadd.f32 %v3487_v61, %v3335_v32  ;;  %4031 = vmatprep.mubr.bf16.mxu1 %v3827_v54  ;;  %v3769_v16 = vmax.f32 %v3705_v9, 0.0  ;;  %v10491_v32 = vld [vmem:[#allocation67_spill] sm:$0xff]  ;;  %v9063_v54 = vpop.f32.mrf.mxu1  ;;  %v3340_v61 = vadd.f32 %v8871_v6, %v8800_v12 }
 0x2fe   : > { %v3491_v42 = vpop.f32.mrf.mxu0  ;;  %4032 = vmatmul.mubr.bf16.gmra.mxu1 %v3826_v3  ;;  %v2741_v36 = vadd.f32 %v10492_v41, %v10491_v32  ;;  %v3342_v12 = vadd.f32 %v8886_v59, %v10495_v17  ;;  %v10498_v41 = vld [vmem:[#allocation50_spill] sm:$0xff] }
 0x2ff   : > { %v3770_v20 = vmax.f32 %v3706_v51, 0.0  ;;  %v3707_v35 = vadd.f32 %v9008_v33, %v3631_v45  ;;  %v3632_v31 = vadd.f32 %v3491_v42, %v3336_v48  ;;  %v3341_v51 = vadd.f32 %v8878_v40, %v10493_v58  ;;  %v10494_v45 = vld [vmem:[#allocation49_spill] sm:$0xff]  ;;  %v9075_v6 = vpop.f32.mrf.mxu1 }
 0x300   : > { %v3493_v55 = vpop.f32.mrf.mxu0 }
 0x301   : > { %v3828_v13 = vpack.c.bf16 %v3770_v20, %v3768_v24  ;;  %v3771_v43 = vmax.f32 %v3707_v35, 0.0  ;;  %v3633_v25 = vadd.f32 %v3493_v55, %v3337_v11  ;;  %v3708_v23 = vadd.f32 %v9002_v44, %v3632_v31  ;;  %v9081_v32 = vpop.f32.mrf.mxu1 }
 0x302   : > { %v3495_v7 = vpop.f32.mrf.mxu0  ;;  %v3031_v11 = vadd.f32 %v10494_v45, %v2741_v36  ;;  %v3344_v36 = vadd.f32 %v8901_v5, %v10498_v41 }
 0x303   : > { %v3634_v3 = vadd.f32 %v3495_v7, %v3338_v37  ;;  %v3829_v39 = vpack.c.bf16 %v3771_v43, %v3769_v16  ;;  %v3709_v14 = vadd.f32 %v9008_v33, %v3633_v25  ;;  %v3772_v24 = vmax.f32 %v3708_v23, 0.0  ;;  %v10496_v23 = vld [vmem:[#allocation27_spill] sm:$0xff] }
 0x304   : > { %v3497_v18 = vpop.f32.mrf.mxu0  ;;  %v3343_v7 = vadd.f32 %v8893_v29, %v3031_v11  ;;  %v10499_v29 = vld [vmem:[#allocation51_spill] sm:$0xff] }
 0x305   : > { %v3710_v48 = vadd.f32 %v9002_v44, %v3634_v3  ;;  %v3635_v9 = vadd.f32 %v3497_v18, %v3339_v28  ;;  %4039 = vmatprep.mubr.bf16.mxu1 %v3829_v39  ;;  %v3773_v55 = vmax.f32 %v3709_v14, 0.0  ;;  %v10497_v3 = vld [vmem:[#allocation66_spill] sm:$0xff] }
 0x306   : > { %v3501_v42 = vpop.f32.mrf.mxu0  ;;  %4040 = vmatmul.mubr.bf16.gmra.mxu1 %v3828_v13  ;;  %v2745_v39 = vadd.f32 %v10497_v3, %v10496_v23  ;;  %v10504_v23 = vld [vmem:[#allocation53_spill] sm:$0xff] }
 0x307   : > { %v3774_v20 = vmax.f32 %v3710_v48, 0.0  ;;  %v3711_v35 = vadd.f32 %v9008_v33, %v3635_v9  ;;  %v3636_v31 = vadd.f32 %v3501_v42, %v3340_v61  ;;  %v3345_v48 = vadd.f32 %v8908_v34, %v10499_v29  ;;  %v10500_v9 = vld [vmem:[#allocation52_spill] sm:$0xff] }
 0x308   : > { %v3503_v37 = vpop.f32.mrf.mxu0  ;;  %v3035_v58 = vadd.f32 %v10500_v9, %v2745_v39  ;;  %v3348_v3 = vadd.f32 %v8931_v0, %v10504_v23  ;;  %v3350_v0 = vadd.f32 %v8946_v49, %v8852_v22  ;;  %v3352_v49 = vadd.f32 %v8961_v63, %v8860_v30 }
 0x309   : > { %v3830_v16 = vpack.c.bf16 %v3774_v20, %v3772_v24  ;;  %v3775_v43 = vmax.f32 %v3711_v35, 0.0  ;;  %v3637_v25 = vadd.f32 %v3503_v37, %v3341_v51  ;;  %v3712_v13 = vadd.f32 %v9002_v44, %v3636_v31  ;;  %v10501_v20 = vld [vmem:[#allocation11_spill] sm:$0xff]  ;;  %v9093_v35 = vpop.f32.mrf.mxu1 }
 0x30a   : > { %v3505_v40 = vpop.f32.mrf.mxu0  ;;  %v3346_v5 = vadd.f32 %v8916_v4, %v10501_v20  ;;  %v3354_v30 = vadd.f32 %v8976_v10, %v8869_v15  ;;  %v10509_v10 = vld [vmem:[#allocation8_spill] sm:$0xff] }
 0x30b   : > { %v3638_v62 = vadd.f32 %v3505_v40, %v3342_v12  ;;  %v3831_v28 = vpack.c.bf16 %v3775_v43, %v3773_v55  ;;  %v3713_v18 = vadd.f32 %v9008_v33, %v3637_v25  ;;  %v3776_v45 = vmax.f32 %v3712_v13, 0.0  ;;  %v10503_v13 = vld [vmem:[#allocation68_spill] sm:$0xff] }
 0x30c   : > { %v3507_v59 = vpop.f32.mrf.mxu0  ;;  %v3347_v43 = vadd.f32 %v8923_v8, %v3035_v58  ;;  %v3349_v8 = vadd.f32 %v8938_v27, %v8849_v1 }
 0x30d   : > { %v3714_v61 = vadd.f32 %v9002_v44, %v3638_v62  ;;  %v3639_v14 = vadd.f32 %v3507_v59, %v3343_v7  ;;  %4047 = vmatprep.mubr.bf16.mxu1 %v3831_v28  ;;  %v3777_v17 = vmax.f32 %v3713_v18, 0.0  ;;  %v10502_v7 = vld [vmem:[#allocation69_spill] sm:$0xff]  ;;  %v9099_v28 = vpop.f32.mrf.mxu1 }
 0x30e   : > { %v3511_v51 = vpop.f32.mrf.mxu0  ;;  %4048 = vmatmul.mubr.bf16.gmra.mxu1 %v3830_v16  ;;  %v2749_v62 = vadd.f32 %v10503_v13, %v10502_v7 }
 0x30f   : > { %v3778_v11 = vmax.f32 %v3714_v61, 0.0  ;;  %v3715_v42 = vadd.f32 %v9008_v33, %v3639_v14  ;;  %v3640_v24 = vadd.f32 %v3511_v51, %v3344_v36  ;;  %v9111_v9 = vpop.f32.mrf.mxu1 }
 0x310   : > { %v3513_v31 = vpop.f32.mrf.mxu0  ;;  %v3039_v36 = vadd.f32 %v8856_v26, %v2749_v62 }
 0x311   : > { %v3832_v12 = vpack.c.bf16 %v3778_v11, %v3776_v45  ;;  %v3779_v37 = vmax.f32 %v3715_v42, 0.0  ;;  %v3641_v55 = vadd.f32 %v3513_v31, %v3345_v48  ;;  %v3716_v16 = vadd.f32 %v9002_v44, %v3640_v24  ;;  %v10506_v31 = vld [vmem:[#allocation28_spill] sm:$0xff] }
 0x312   : > { %v3515_v34 = vpop.f32.mrf.mxu0  ;;  %v3351_v26 = vadd.f32 %v8953_v50, %v3039_v36  ;;  %v3353_v50 = vadd.f32 %v8968_v57, %v8866_v19  ;;  %v10508_v36 = vld [vmem:[#allocation70_spill] sm:$0xff] }
 0x313   : > { %v3642_v25 = vadd.f32 %v3515_v34, %v3346_v5  ;;  %v3833_v40 = vpack.c.bf16 %v3779_v37, %v3777_v17  ;;  %v3717_v39 = vadd.f32 %v9008_v33, %v3641_v55  ;;  %v3780_v61 = vmax.f32 %v3716_v16, 0.0  ;;  %v10505_v5 = vld [vmem:[#allocation71_spill] sm:$0xff] }
 0x314   : > { %v3517_v4 = vpop.f32.mrf.mxu0  ;;  %v2753_v17 = vadd.f32 %v10506_v31, %v10505_v5 }
 0x315   : > { %v3718_v59 = vadd.f32 %v9002_v44, %v3642_v25  ;;  %v3643_v41 = vadd.f32 %v3517_v4, %v3347_v43  ;;  %4055 = vmatprep.mubr.bf16.mxu1 %v3833_v40  ;;  %v3781_v51 = vmax.f32 %v3717_v39, 0.0 }
 0x316   : > { %v3521_v18 = vpop.f32.mrf.mxu0  ;;  %4056 = vmatmul.mubr.bf16.gmra.mxu1 %v3832_v12  ;;  %v9117_v12 = vpop.f32.mrf.mxu1  ;;  %v3043_v43 = vadd.f32 %v8873_v52, %v2753_v17 }
 0x317   : > { %v3782_v14 = vmax.f32 %v3718_v59, 0.0  ;;  %v3719_v29 = vadd.f32 %v9008_v33, %v3643_v41  ;;  %v3644_v48 = vadd.f32 %v3521_v18, %v3348_v3 }
 0x318   : > { %v3523_v58 = vpop.f32.mrf.mxu0  ;;  %v9129_v63 = vpop.f32.mrf.mxu1  ;;  %v3355_v52 = vadd.f32 %v8983_v38, %v3043_v43  ;;  %v10510_v38 = vld [vmem:[#allocation44_spill] sm:$0xff] }
 0x319   : > { %v3834_v45 = vpack.c.bf16 %v3782_v14, %v3780_v61  ;;  %v3783_v11 = vmax.f32 %v3719_v29, 0.0  ;;  %v3645_v42 = vadd.f32 %v3523_v58, %v3349_v8  ;;  %v3720_v27 = vadd.f32 %v9002_v44, %v3644_v48  ;;  %v10507_v8 = vld [vmem:[#allocation40_spill] sm:$0xff] }
 0x31a   : > { %v3525_v1 = vpop.f32.mrf.mxu0  ;;  %v2757_v18 = vadd.f32 %v10508_v36, %v10507_v8  ;;  %v9135_v61 = vpop.f32.mrf.mxu1  ;;  %v3356_v14 = vadd.f32 %v8991_v46, %v10509_v10  ;;  %v3357_v58 = vadd.f32 %v10510_v38, %v8881_v56  ;;  %v10513_v46 = vld [vmem:[#allocation82_spill] sm:$0xff] }
 0x31b   : > { %v3646_v24 = vadd.f32 %v3525_v1, %v3350_v0  ;;  %v3835_v20 = vpack.c.bf16 %v3783_v11, %v3781_v51  ;;  %v3721_v37 = vadd.f32 %v9008_v33, %v3645_v42  ;;  %v3784_v25 = vmax.f32 %v3720_v27, 0.0  ;;  %v10511_v51 = vld [vmem:[#allocation7_spill] sm:$0xff] }
 0x31c   : > { %v3527_v22 = vpop.f32.mrf.mxu0  ;;  %v9147_v5 = vpop.f32.mrf.mxu1 }
 0x31d   : > { %v3722_v55 = vadd.f32 %v9002_v44, %v3646_v24  ;;  %v3647_v34 = vadd.f32 %v3527_v22, %v3351_v26  ;;  %4063 = vmatprep.mubr.bf16.mxu1 %v3835_v20  ;;  %v3785_v4 = vmax.f32 %v3721_v37, 0.0  ;;  %v10512_v24 = vld [vmem:[#allocation15_spill] sm:$0xff] }
 0x31e   : > { %v3531_v16 = vpop.f32.mrf.mxu0  ;;  %4064 = vmatmul.mubr.bf16.gmra.mxu1 %v3834_v45  ;;  %v3047_v45 = vadd.f32 %v10511_v51, %v2757_v18  ;;  %v3358_v20 = vadd.f32 %v10513_v46, %v10512_v24  ;;  %v10519_v18 = vld [vmem:[#allocation13_spill] sm:$0xff] }
 0x31f   : > { %v3786_v40 = vmax.f32 %v3722_v55, 0.0  ;;  %v3723_v7 = vadd.f32 %v9008_v33, %v3647_v34  ;;  %v3648_v13 = vadd.f32 %v3531_v16, %v3352_v49  ;;  %v10514_v16 = vld [vmem:[#allocation72_spill] sm:$0xff] }
 0x320   : > { %v3533_v62 = vpop.f32.mrf.mxu0  ;;  %v3359_v55 = vadd.f32 %v9024_v47, %v3047_v45  ;;  %v10517_v47 = vld [vmem:[#allocation55_spill] sm:$0xff] }
 0x321   : > { %v3836_v23 = vpack.c.bf16 %v3786_v40, %v3784_v25  ;;  %v3787_v3 = vmax.f32 %v3723_v7, 0.0  ;;  %v3649_v39 = vadd.f32 %v3533_v62, %v3353_v50  ;;  %v3724_v57 = vadd.f32 %v9002_v44, %v3648_v13  ;;  %v10515_v25 = vld [vmem:[#allocation29_spill] sm:$0xff]  ;;  %v9153_v7 = vpop.f32.mrf.mxu1 }
 0x322   : > { %v3535_v19 = vpop.f32.mrf.mxu0  ;;  %v2761_v40 = vadd.f32 %v10515_v25, %v10514_v16 }
 0x323   : > { %v3650_v59 = vadd.f32 %v3535_v19, %v3354_v30  ;;  %v3837_v41 = vpack.c.bf16 %v3787_v3, %v3785_v4  ;;  %v3725_v29 = vadd.f32 %v9008_v33, %v3649_v39  ;;  %v3788_v42 = vmax.f32 %v3724_v57, 0.0  ;;  %v10516_v30 = vld [vmem:[#allocation54_spill] sm:$0xff]  ;;  %v10518_v19 = vld [vmem:[#allocation56_spill] sm:$0xff] }
 0x324   : > { %v3537_v15 = vpop.f32.mrf.mxu0  ;;  %v3360_v62 = vadd.f32 %v9029_v53, %v10516_v30  ;;  %v3361_v39 = vadd.f32 %v9040_v60, %v10517_v47  ;;  %v3362_v53 = vadd.f32 %v9045_v21, %v10519_v18 }
 0x325   : > { %v3726_v48 = vadd.f32 %v9002_v44, %v3650_v59  ;;  %v3651_v0 = vadd.f32 %v3537_v15, %v3355_v52  ;;  %4071 = vmatprep.mubr.bf16.mxu1 %v3837_v41  ;;  %v3789_v17 = vmax.f32 %v3725_v29, 0.0  ;;  %v3051_v52 = vadd.f32 %v10518_v19, %v2761_v40  ;;  %v9165_v15 = vpop.f32.mrf.mxu1  ;;  %v10527_v19 = vld [vmem:[#allocation73_spill] sm:$0xff] }
 0x326   : > { %v3541_v11 = vpop.f32.mrf.mxu0  ;;  %4072 = vmatmul.mubr.bf16.gmra.mxu1 %v3836_v23 }
 0x327   : > { %v3790_v1 = vmax.f32 %v3726_v48, 0.0  ;;  %v3727_v26 = vadd.f32 %v9008_v33, %v3651_v0  ;;  %v3652_v27 = vadd.f32 %v3541_v11, %v3356_v14  ;;  %v3363_v38 = vadd.f32 %v9056_v2, %v3051_v52  ;;  %v10520_v11 = vld [vmem:[#allocation74_spill] sm:$0xff]  ;;  %v10523_v2 = vld [vmem:[#allocation9_spill] sm:$0xff] }
 0x328   : > { %v3543_v31 = vpop.f32.mrf.mxu0 }
 0x329   : > { %v3838_v22 = vpack.c.bf16 %v3790_v1, %v3788_v42  ;;  %v3791_v49 = vmax.f32 %v3727_v26, 0.0  ;;  %v3653_v37 = vadd.f32 %v3543_v31, %v3357_v58  ;;  %v3728_v34 = vadd.f32 %v9002_v44, %v3652_v27  ;;  %v10521_v42 = vld [vmem:[#allocation35_spill] sm:$0xff]  ;;  %v9171_v26 = vpop.f32.mrf.mxu1  ;;  %v10522_v27 = vld [vmem:[#allocation10_spill] sm:$0xff] }
 0x32a   : > { %v3545_v56 = vpop.f32.mrf.mxu0  ;;  %v2765_v1 = vadd.f32 %v10521_v42, %v10520_v11  ;;  %v3364_v24 = vadd.f32 %v9063_v54, %v10522_v27 }
 0x32b   : > { %v3654_v50 = vadd.f32 %v3545_v56, %v3358_v20  ;;  %v3839_v43 = vpack.c.bf16 %v3791_v49, %v3789_v17  ;;  %v3729_v4 = vadd.f32 %v9008_v33, %v3653_v37  ;;  %v3792_v59 = vmax.f32 %v3728_v34, 0.0  ;;  %v9183_v16 = vpop.f32.mrf.mxu1 }
 0x32c   : > { %v3547_v13 = vpop.f32.mrf.mxu0  ;;  %v3365_v17 = vadd.f32 %v9075_v6, %v10523_v2  ;;  %v10533_v2 = vld [vmem:[#allocation36_spill] sm:$0xff] }
 0x32d   : > { %v3730_v23 = vadd.f32 %v9002_v44, %v3654_v50  ;;  %v3655_v3 = vadd.f32 %v3547_v13, %v3359_v55  ;;  %4079 = vmatprep.mubr.bf16.mxu1 %v3839_v43  ;;  %v3793_v14 = vmax.f32 %v3729_v4, 0.0  ;;  %v10525_v43 = vld [vmem:[#allocation16_spill] sm:$0xff] }
 0x32e   : > { %v3551_v57 = vpop.f32.mrf.mxu0  ;;  %4080 = vmatmul.mubr.bf16.gmra.mxu1 %v3838_v22  ;;  %v10524_v22 = vld [vmem:[#allocation57_spill] sm:$0xff]  ;;  %v3366_v54 = vadd.f32 %v9081_v32, %v10525_v43 }
 0x32f   : > { %v3794_v41 = vmax.f32 %v3730_v23, 0.0  ;;  %v3731_v8 = vadd.f32 %v9008_v33, %v3655_v3  ;;  %v3656_v36 = vadd.f32 %v3551_v57, %v3360_v62  ;;  %v3055_v49 = vadd.f32 %v10524_v22, %v2765_v1  ;;  %v9189_v57 = vpop.f32.mrf.mxu1  ;;  %v10536_v43 = vld [vmem:[#allocation17_spill] sm:$0xff] }
 0x330   : > { %v3553_v10 = vpop.f32.mrf.mxu0 }
 0x331   : > { %v3840_v29 = vpack.c.bf16 %v3794_v41, %v3792_v59  ;;  %v3795_v48 = vmax.f32 %v3731_v8, 0.0  ;;  %v3657_v0 = vadd.f32 %v3553_v10, %v3361_v39  ;;  %v3732_v58 = vadd.f32 %v9002_v44, %v3656_v36  ;;  %v10526_v39 = vld [vmem:[#allocation37_spill] sm:$0xff]  ;;  %v10528_v59 = vld [vmem:[#allocation58_spill] sm:$0xff] }
 0x332   : > { %v3555_v60 = vpop.f32.mrf.mxu0  ;;  %v3367_v4 = vadd.f32 %v9093_v35, %v3055_v49  ;;  %v2769_v52 = vadd.f32 %v10527_v19, %v10526_v39  ;;  %v3368_v41 = vadd.f32 %v9099_v28, %v10528_v59  ;;  %v10529_v35 = vld [vmem:[#allocation59_spill] sm:$0xff]  ;;  %v10530_v10 = vld [vmem:[#allocation18_spill] sm:$0xff] }
 0x333   : > { %v3658_v51 = vadd.f32 %v3555_v60, %v3362_v53  ;;  %v3841_v45 = vpack.c.bf16 %v3795_v48, %v3793_v14  ;;  %v3733_v46 = vadd.f32 %v9008_v33, %v3657_v0  ;;  %v3796_v56 = vmax.f32 %v3732_v58, 0.0  ;;  %v10531_v58 = vld [vmem:[#allocation12_spill] sm:$0xff] }
 0x334   : > { %v3557_v21 = vpop.f32.mrf.mxu0  ;;  %v3369_v53 = vadd.f32 %v9111_v9, %v10529_v35  ;;  %v3059_v14 = vadd.f32 %v10530_v10, %v2769_v52  ;;  %v3370_v28 = vadd.f32 %v9117_v12, %v10531_v58  ;;  %v10534_v12 = vld [vmem:[#allocation14_spill] sm:$0xff] }
 0x335   : > { %v3734_v20 = vadd.f32 %v9002_v44, %v3658_v51  ;;  %v3659_v31 = vadd.f32 %v3557_v21, %v3363_v38  ;;  %4087 = vmatprep.mubr.bf16.mxu1 %v3841_v45  ;;  %v3797_v40 = vmax.f32 %v3733_v46, 0.0  ;;  %v9201_v51 = vpop.f32.mrf.mxu1  ;;  %v10540_v10 = vld [vmem:[#allocation22_spill] sm:$0xff] }
 0x336   : > { %v3561_v37 = vpop.f32.mrf.mxu0  ;;  %4088 = vmatmul.mubr.bf16.gmra.mxu1 %v3840_v29  ;;  %v3371_v27 = vadd.f32 %v9129_v63, %v3059_v14 }
 0x337   : > { %v3798_v55 = vmax.f32 %v3734_v20, 0.0  ;;  %v3735_v34 = vadd.f32 %v9008_v33, %v3659_v31  ;;  %v3660_v50 = vadd.f32 %v3561_v37, %v3364_v24  ;;  %v10532_v31 = vld [vmem:[#allocation77_spill] sm:$0xff]  ;;  %v3305_v22 = vpop.f32.mrf.mxu1  ;;  %v3372_v37 = vadd.f32 %v9135_v61, %v10534_v12  ;;  %v10544_v12 = vld [vmem:[#allocation26_spill] sm:$0xff] }
 0x338   : > { %v3563_v25 = vpop.f32.mrf.mxu0 }
 0x339   : > { %v3842_v13 = vpack.c.bf16 %v3798_v55, %v3796_v56  ;;  %v3799_v30 = vmax.f32 %v3735_v34, 0.0  ;;  %v3661_v62 = vadd.f32 %v3563_v25, %v3365_v17  ;;  %v3736_v23 = vadd.f32 %v9002_v44, %v3660_v50  ;;  %v10535_v50 = vld [vmem:[#allocation60_spill] sm:$0xff] }
 0x33a   : > { %v3565_v6 = vpop.f32.mrf.mxu0  ;;  %v2773_v17 = vadd.f32 %v10533_v2, %v10532_v31  ;;  %v3373_v63 = vadd.f32 %v9147_v5, %v10535_v50  ;;  %v10546_v50 = vld [vmem:[#allocation21_spill] sm:$0xff] }
 0x33b   : > { %v3662_v3 = vadd.f32 %v3565_v6, %v3366_v54  ;;  %v3843_v47 = vpack.c.bf16 %v3799_v30, %v3797_v40  ;;  %v3737_v8 = vadd.f32 %v9008_v33, %v3661_v62  ;;  %v3800_v48 = vmax.f32 %v3736_v23, 0.0  ;;  %v10537_v6 = vld [vmem:[#allocation61_spill] sm:$0xff] }
 0x33c   : > { %v3567_v32 = vpop.f32.mrf.mxu0  ;;  %v3063_v54 = vadd.f32 %v10536_v43, %v2773_v17  ;;  %v3374_v61 = vadd.f32 %v9153_v7, %v10537_v6  ;;  %v3376_v7 = vadd.f32 %v9171_v26, %v10540_v10 }
 0x33d   : > { %v3738_v36 = vadd.f32 %v9002_v44, %v3662_v3  ;;  %v3663_v18 = vadd.f32 %v3567_v32, %v3367_v4  ;;  %4095 = vmatprep.mubr.bf16.mxu1 %v3843_v47  ;;  %v3801_v11 = vmax.f32 %v3737_v8, 0.0  ;;  %v3307_v4 = vpop.f32.mrf.mxu1  ;;  %v10538_v8 = vld [vmem:[#allocation19_spill] sm:$0xff] }
 0x33e   : > { %v3571_v29 = vpop.f32.mrf.mxu0  ;;  %4096 = vmatmul.mubr.bf16.gmra.mxu1 %v3842_v13  ;;  %v3375_v5 = vadd.f32 %v9165_v15, %v3063_v54 }
 0x33f   : > { %v3802_v0 = vmax.f32 %v3738_v36, 0.0  ;;  %v3739_v60 = vadd.f32 %v9008_v33, %v3663_v18  ;;  %v3664_v38 = vadd.f32 %v3571_v29, %v3368_v41  ;;  %v10539_v36 = vld [vmem:[#allocation76_spill] sm:$0xff]  ;;  %v3309_v35 = vpop.f32.mrf.mxu1 }
 0x340   : > { %v3573_v45 = vpop.f32.mrf.mxu0  ;;  %v2777_v18 = vadd.f32 %v10539_v36, %v10538_v8 }
 0x341   : > { %v3844_v42 = vpack.c.bf16 %v3802_v0, %v3800_v48  ;;  %v3803_v1 = vmax.f32 %v3739_v60, 0.0  ;;  %v3665_v21 = vadd.f32 %v3573_v45, %v3369_v53  ;;  %v3740_v24 = vadd.f32 %v9002_v44, %v3664_v38  ;;  %v10541_v0 = vld [vmem:[#allocation25_spill] sm:$0xff]  ;;  %v10542_v60 = vld [vmem:[#allocation20_spill] sm:$0xff] }
 0x342   : > { %v3575_v9 = vpop.f32.mrf.mxu0  ;;  %v3377_v15 = vadd.f32 %v9183_v16, %v10541_v0  ;;  %v3067_v38 = vadd.f32 %v10542_v60, %v2777_v18  ;;  %v10550_v18 = vld [vmem:[#allocation79_spill] sm:$0xff]  ;;  %v10553_v60 = vld [vmem:[#allocation24_spill] sm:$0xff] }
 0x343   : > { %v3666_v46 = vadd.f32 %v3575_v9, %v3370_v28  ;;  %v3845_v20 = vpack.c.bf16 %v3803_v1, %v3801_v11  ;;  %v3741_v56 = vadd.f32 %v9008_v33, %v3665_v21  ;;  %v3804_v40 = vmax.f32 %v3740_v24, 0.0  ;;  %v10543_v1 = vld [vmem:[#allocation62_spill] sm:$0xff]  ;;  %v3311_v21 = vpop.f32.mrf.mxu1 }
 0x344   : > { %v3577_v49 = vpop.f32.mrf.mxu0  ;;  %v3378_v26 = vadd.f32 %v9189_v57, %v10543_v1  ;;  %v3379_v16 = vadd.f32 %v9201_v51, %v3067_v38  ;;  %v3380_v57 = vadd.f32 %v3305_v22, %v10546_v50  ;;  %v10548_v51 = vld [vmem:[#allocation64_spill] sm:$0xff] }
 0x345   : > { %v3742_v55 = vadd.f32 %v9002_v44, %v3666_v46  ;;  %v3667_v34 = vadd.f32 %v3577_v49, %v3371_v27  ;;  %4103 = vmatprep.mubr.bf16.mxu1 %v3845_v20  ;;  %v3805_v3 = vmax.f32 %v3741_v56, 0.0 }
 0x346   : > { %v3581_v25 = vpop.f32.mrf.mxu0  ;;  %4104 = vmatmul.mubr.bf16.gmra.mxu1 %v3844_v42 }
 0x347   : > { %v3806_v13 = vmax.f32 %v3742_v55, 0.0  ;;  %v3743_v30 = vadd.f32 %v9008_v33, %v3667_v34  ;;  %v3668_v62 = vadd.f32 %v3581_v25, %v3372_v37  ;;  %v10545_v37 = vld [vmem:[#allocation41_spill] sm:$0xff]  ;;  %v3315_v55 = vpop.f32.mrf.mxu1  ;;  %v10547_v25 = vld [vmem:[#allocation32_spill] sm:$0xff] }
 0x348   : > { %v3583_v23 = vpop.f32.mrf.mxu0  ;;  %v2781_v56 = vadd.f32 %v10545_v37, %v10544_v12 }
 0x349   : > { %v3846_v47 = vpack.c.bf16 %v3806_v13, %v3804_v40  ;;  %v3807_v39 = vmax.f32 %v3743_v30, 0.0  ;;  %v3669_v19 = vadd.f32 %v3583_v23, %v3373_v63  ;;  %v3744_v32 = vadd.f32 %v9002_v44, %v3668_v62  ;;  %v3317_v22 = vpop.f32.mrf.mxu1 }
 0x34a   : > { %v3585_v52 = vpop.f32.mrf.mxu0  ;;  %v3381_v40 = vadd.f32 %v3307_v4, %v10547_v25  ;;  %v3071_v13 = vadd.f32 %v10548_v51, %v2781_v56  ;;  %v3385_v38 = vadd.f32 %v3317_v22, %v10553_v60 }
 0x34b   : > { %v3670_v59 = vadd.f32 %v3585_v52, %v3374_v61  ;;  %v3847_v41 = vpack.c.bf16 %v3807_v39, %v3805_v3  ;;  %v3745_v14 = vadd.f32 %v9008_v33, %v3669_v19  ;;  %v3808_v28 = vmax.f32 %v3744_v32, 0.0  ;;  %v10549_v3 = vld [vmem:[#allocation63_spill] sm:$0xff] }
 0x34c   : > { %v3587_v53 = vpop.f32.mrf.mxu0 }
 0x34d   : > { %v3746_v29 = vadd.f32 %v9002_v44, %v3670_v59  ;;  %v3671_v48 = vadd.f32 %v3587_v53, %v3375_v5  ;;  %4111 = vmatprep.mubr.bf16.mxu1 %v3847_v41  ;;  %v3809_v27 = vmax.f32 %v3745_v14, 0.0  ;;  %v3383_v41 = vadd.f32 %v3311_v21, %v3071_v13  ;;  %v10551_v53 = vld [vmem:[#allocation78_spill] sm:$0xff] }
 0x34e   : > { %v3591_v58 = vpop.f32.mrf.mxu0  ;;  %4112 = vmatmul.mubr.bf16.gmra.mxu1 %v3846_v47  ;;  %v3382_v47 = vadd.f32 %v3309_v35, %v10549_v3  ;;  %v2785_v10 = vadd.f32 %v10551_v53, %v10550_v18  ;;  %v10555_v21 = vld [vmem:[#allocation30_spill] sm:$0xff]  ;;  %v10556_v13 = vmov 0  }
 0x34f   : > { %v3810_v45 = vmax.f32 %v3746_v29, 0.0  ;;  %v3747_v11 = vadd.f32 %v9008_v33, %v3671_v48  ;;  %v3672_v42 = vadd.f32 %v3591_v58, %v3376_v7  ;;  %v3319_v7 = vpop.f32.mrf.mxu1  ;;  %v10552_v29 = vld [vmem:[#allocation65_spill] sm:$0xff] }
 0x350   : > { %v3593_v9 = vpop.f32.mrf.mxu0  ;;  %v3384_v48 = vadd.f32 %v3315_v55, %v10552_v29  ;;  %v10554_v58 = vld [vmem:[#allocation33_spill] sm:$0xff] }
 0x351   : > { %v3848_v24 = vpack.c.bf16 %v3810_v45, %v3808_v28  ;;  %v3811_v46 = vmax.f32 %v3747_v11, 0.0  ;;  %v3673_v20 = vadd.f32 %v3593_v9, %v3377_v15  ;;  %v3748_v2 = vadd.f32 %v9002_v44, %v3672_v42 }
 0x352   : > { %v3595_v31 = vpop.f32.mrf.mxu0  ;;  %v3075_v28 = vadd.f32 %v10554_v58, %v2785_v10  ;;  %v3386_v9 = vadd.f32 %v3319_v7, %v10555_v21 }
 0x353   : > { %v3674_v17 = vadd.f32 %v3595_v31, %v3378_v26  ;;  %v3849_v49 = vpack.c.bf16 %v3811_v46, %v3809_v27  ;;  %v3749_v63 = vadd.f32 %v9008_v33, %v3673_v20  ;;  %v3812_v62 = vmax.f32 %v3748_v2, 0.0  ;;  %v3321_v27 = vpop.f32.mrf.mxu1 }
 0x354   : > { %v3597_v34 = vpop.f32.mrf.mxu0 }
 0x355   : > { %v3750_v43 = vadd.f32 %v9002_v44, %v3674_v17  ;;  %v3675_v54 = vadd.f32 %v3597_v34, %v3379_v16  ;;  %4119 = vmatprep.mubr.bf16.mxu1 %v3849_v49  ;;  %v3813_v19 = vmax.f32 %v3749_v63, 0.0  ;;  %v3387_v17 = vadd.f32 %v3321_v27, %v3075_v28 }
 0x356   : > { %v3601_v30 = vpop.f32.mrf.mxu0  ;;  %4120 = vmatmul.mubr.bf16.gmra.mxu1 %v3848_v24 }
 0x357   : > { %v3814_v6 = vmax.f32 %v3750_v43, 0.0  ;;  %v3751_v61 = vadd.f32 %v9008_v33, %v3675_v54  ;;  %v3676_v23 = vadd.f32 %v3601_v30, %v3380_v57 }
 0x358   : > { %v3603_v39 = vpop.f32.mrf.mxu0 }
 0x359   : > { %v3850_v52 = vpack.c.bf16 %v3814_v6, %v3812_v62  ;;  %v3815_v5 = vmax.f32 %v3751_v61, 0.0  ;;  %v3677_v32 = vadd.f32 %v3603_v39, %v3381_v40  ;;  %v3752_v4 = vadd.f32 %v9002_v44, %v3676_v23 }
 0x35a   : > { %v3605_v59 = vpop.f32.mrf.mxu0 }
 0x35b   : > { %v3678_v8 = vadd.f32 %v3605_v59, %v3382_v47  ;;  %v3851_v36 = vpack.c.bf16 %v3815_v5, %v3813_v19  ;;  %v3753_v35 = vadd.f32 %v9008_v33, %v3677_v32  ;;  %v3816_v11 = vmax.f32 %v3752_v4, 0.0  ;;  %v9266_v19 = vld [vmem:[%s10023_s4] ss:$0 sm:$0xff] }
 0x35c   : > { %v3607_v14 = vpop.f32.mrf.mxu0 }
 0x35d   : > { %v3754_v0 = vadd.f32 %v9002_v44, %v3678_v8  ;;  %v3679_v15 = vadd.f32 %v3607_v14, %v3383_v41  ;;  %4127 = vmatprep.mubr.bf16.mxu1 %v3851_v36  ;;  %v3817_v46 = vmax.f32 %v3753_v35, 0.0 }
 0x35e   : > { %v3611_v45 = vpop.f32.mrf.mxu0  ;;  %4128 = vmatmul.mubr.bf16.gmra.mxu1 %v3850_v52 }
 0x35f   : > { %v3818_v42 = vmax.f32 %v3754_v0, 0.0  ;;  %v3755_v1 = vadd.f32 %v9008_v33, %v3679_v15  ;;  %v3680_v26 = vadd.f32 %v3611_v45, %v3384_v48 }
 0x360   : > { %v3613_v24 = vpop.f32.mrf.mxu0 }
 0x361   : > { %v3852_v20 = vpack.c.bf16 %v3818_v42, %v3816_v11  ;;  %v3819_v31 = vmax.f32 %v3755_v1, 0.0  ;;  %v3681_v16 = vadd.f32 %v3613_v24, %v3385_v38  ;;  %v3756_v49 = vadd.f32 %v9002_v44, %v3680_v26 }
 0x362   : > { %v3615_v2 = vpop.f32.mrf.mxu0 }
 0x363   : > { %v3682_v12 = vadd.f32 %v3615_v2, %v3386_v9  ;;  %v3853_v37 = vpack.c.bf16 %v3819_v31, %v3817_v46  ;;  %v3757_v55 = vadd.f32 %v9008_v33, %v3681_v16  ;;  %v3820_v57 = vmax.f32 %v3756_v49, 0.0 }
 0x364   : > { %v3617_v56 = vpop.f32.mrf.mxu0 }
 0x365   : > { %v3758_v34 = vadd.f32 %v9002_v44, %v3682_v12  ;;  %v3683_v50 = vadd.f32 %v3617_v56, %v3387_v17  ;;  %4135 = vmatprep.mubr.bf16.mxu1 %v3853_v37  ;;  %v3821_v54 = vmax.f32 %v3757_v55, 0.0 }
 0x366   : > { %4136 = vmatmul.mubr.bf16.gmra.mxu1 %v3852_v20 }
 0x367   : > { %v3822_v63 = vmax.f32 %v3758_v34, 0.0  ;;  %v3759_v43 = vadd.f32 %v9008_v33, %v3683_v50 }
 0x369   : > { %v3854_v25 = vpack.c.bf16 %v3822_v63, %v3820_v57  ;;  %v3823_v40 = vmax.f32 %v3759_v43, 0.0 }
 0x36b   : > { %v3855_v51 = vpack.c.bf16 %v3823_v40, %v3821_v54 }
 0x36d   : > { %4143 = vmatprep.mubr.bf16.mxu1 %v3855_v51 }
 0x36e   : > { %4144 = vmatmul.mubr.bf16.gmra.mxu1 %v3854_v25 }
 0x36f   : > { %5310 = vmatprep.mubr.bf16.mxu1 %v10556_v13 }
 0x3b6   : > { %v6355_v30 = vpop.f32.mrf.mxu1 }
 0x3b8   : > { %v6356_v62 = vpop.f32.mrf.mxu1 }
 0x3b9   : > { %v9257_v6 = vadd.f32 %v6356_v62, %v6355_v30 }
 0x3ba   : > { %v9259_v44 = vpop.f32.mrf.mxu1 }
 0x3bc   : > { %v9261_v61 = vpop.f32.mrf.mxu1 }
 0x3be   : > { %v6361_v23 = vpop.f32.mrf.mxu1 }
 0x3c0   : > { %v6362_v3 = vpop.f32.mrf.mxu1 }
 0x3c1   : > { %v6363_v33 = vadd.f32 %v6362_v3, %v6361_v23 }
 0x3c2   : > { %v6364_v47 = vpop.f32.mrf.mxu1 }
 0x3c3   : > { %v4034_v5 = vadd.f32 %v6363_v33, %v9266_v19 }
 0x3c4   : > { %v6365_v22 = vpop.f32.mrf.mxu1 }
 0x3c5   : > { %v6366_v39 = vadd.f32 %v6365_v22, %v6364_v47 }
 0x3c6   : > { %v6367_v52 = vpop.f32.mrf.mxu1 }
 0x3c7   : > { %v4037_v32 = vadd.f32 %v6366_v39, %v9266_v19 }
 0x3c8   : > { %v6368_v59 = vpop.f32.mrf.mxu1 }
 0x3c9   : > { %v6519_v41 = vpack.i.bf16 %v4037_v32, %v4034_v5  ;;  %v6369_v8 = vadd.f32 %v6368_v59, %v6367_v52 }
 0x3ca   : > { %v6370_v4 = vpop.f32.mrf.mxu1 }
 0x3cb   : > { %6520 = vrot.lane.b32.xlu0 %v6519_v41, %s6805_s17  ;;  %v4042_v10 = vadd.f32 %v6369_v8, %v9266_v19  ;;  %s6746_s17 = sshll.u32 %s6820_s16, 4  ;;  %s6747_s17 = int_to_ptr.vmem [resolvable:$false] %s6746_s17 }
 0x3cc   : > { %v6371_v36 = vpop.f32.mrf.mxu1 }
 0x3cd   : > { %v6372_v18 = vadd.f32 %v6371_v36, %v6370_v4 }
 0x3ce   : > { %v6373_v53 = vpop.f32.mrf.mxu1 }
 0x3cf   : > { %v4045_v7 = vadd.f32 %v6372_v18, %v9266_v19 }
 0x3d0   : > { %v6374_v14 = vpop.f32.mrf.mxu1 }
 0x3d1   : > { %v6524_v29 = vpack.i.bf16 %v4045_v7, %v4042_v10  ;;  %v6375_v35 = vadd.f32 %v6374_v14, %v6373_v53 }
 0x3d2   : > { %v6376_v48 = vpop.f32.mrf.mxu1 }
 0x3d3   : > { %6525 = vrot.lane.b32.xlu0 %v6524_v29, %s6806_s18  ;;  %v4050_v38 = vadd.f32 %v6375_v35, %v9266_v19  ;;  %s6748_s18 = scalar_lea.vmem %s6747_s17, 57344 }
 0x3d4   : > { %v6377_v0 = vpop.f32.mrf.mxu1 }
 0x3d5   : > { %v6378_v15 = vadd.f32 %v6377_v0, %v6376_v48 }
 0x3d6   : > { %v6379_v60 = vpop.f32.mrf.mxu1 }
 0x3d7   : > { %v4053_v58 = vadd.f32 %v6378_v15, %v9266_v19 }
 0x3d8   : > { %v6380_v28 = vpop.f32.mrf.mxu1 }
 0x3d9   : > { %v6529_v45 = vpack.i.bf16 %v4053_v58, %v4050_v38  ;;  %v6381_v42 = vadd.f32 %v6380_v28, %v6379_v60 }
 0x3da   : > { %v6382_v11 = vpop.f32.mrf.mxu1 }
 0x3db   : > { %6530 = vrot.lane.b32.xlu1 %v6529_v45, %s6807_s20  ;;  %v4058_v9 = vadd.f32 %v6381_v42, %v9266_v19 }
 0x3dc   : > { %v6383_v1 = vpop.f32.mrf.mxu1 }
 0x3dd   : > { %v6384_v26 = vadd.f32 %v6383_v1, %v6382_v11 }
 0x3de   : > { %v6385_v21 = vpop.f32.mrf.mxu1 }
 0x3df   : > { %v4061_v27 = vadd.f32 %v6384_v26, %v9266_v19 }
 0x3e0   : > { %v6386_v24 = vpop.f32.mrf.mxu1 }
 0x3e1   : > { %v6534_v46 = vpack.i.bf16 %v4061_v27, %v4058_v9  ;;  %v6387_v31 = vadd.f32 %v6386_v24, %v6385_v21 }
 0x3e2   : > { %v6388_v20 = vpop.f32.mrf.mxu1 }
 0x3e3   : > { %6535 = vrot.lane.b32.xlu1 %v6534_v46, %s6808_s21  ;;  %v4066_v49 = vadd.f32 %v6387_v31, %v9266_v19 }
 0x3e4   : > { %v6389_v16 = vpop.f32.mrf.mxu1 }
 0x3e5   : > { %v6390_v2 = vadd.f32 %v6389_v16, %v6388_v20 }
 0x3e6   : > { %v6391_v17 = vpop.f32.mrf.mxu1 }
 0x3e7   : > { %v4069_v12 = vadd.f32 %v6390_v2, %v9266_v19 }
 0x3e8   : > { %v6392_v37 = vpop.f32.mrf.mxu1 }
 0x3e9   : > { %v6539_v56 = vpack.i.bf16 %v4069_v12, %v4066_v49  ;;  %v6393_v34 = vadd.f32 %v6392_v37, %v6391_v17 }
 0x3ea   : > { %v6394_v55 = vpop.f32.mrf.mxu1 }
 0x3eb   : > { %6540 = vrot.lane.b32.xlu0 %v6539_v56, %s6809_s22  ;;  %v4074_v43 = vadd.f32 %v6393_v34, %v9266_v19  ;;  %s6818_s22 = smov 56  }
 0x3ec   : > { %v6395_v50 = vpop.f32.mrf.mxu1 }
 0x3ed   : > { %v6396_v57 = vadd.f32 %v6395_v50, %v6394_v55 }
 0x3ee   : > { %v6397_v63 = vpop.f32.mrf.mxu1 }
 0x3ef   : > { %v4077_v54 = vadd.f32 %v6396_v57, %v9266_v19 }
 0x3f0   : > { %v6398_v25 = vpop.f32.mrf.mxu1 }
 0x3f1   : > { %v6544_v40 = vpack.i.bf16 %v4077_v54, %v4074_v43  ;;  %v6399_v30 = vadd.f32 %v6398_v25, %v6397_v63 }
 0x3f2   : > { %v6400_v51 = vpop.f32.mrf.mxu1 }
 0x3f3   : > { %6545 = vrot.lane.b32.xlu1 %v6544_v40, %s6810_s23  ;;  %v4082_v47 = vadd.f32 %v6399_v30, %v9266_v19  ;;  %s6819_s23 = smov 60  }
 0x3f4   : > { %v6401_v62 = vpop.f32.mrf.mxu1 }
 0x3f5   : > { %v6402_v23 = vadd.f32 %v6401_v62, %v6400_v51 }
 0x3f6   : > { %v6403_v3 = vpop.f32.mrf.mxu1 }
 0x3f7   : > { %v4085_v33 = vadd.f32 %v6402_v23, %v9266_v19 }
 0x3f8   : > { %v6404_v22 = vpop.f32.mrf.mxu1 }
 0x3f9   : > { %v6549_v39 = vpack.i.bf16 %v4085_v33, %v4082_v47  ;;  %v6405_v5 = vadd.f32 %v6404_v22, %v6403_v3 }
 0x3fa   : > { %v6406_v52 = vpop.f32.mrf.mxu1 }
 0x3fb   : > { %6550 = vrot.lane.b32.xlu0 %v6549_v39, %s6811_s19  ;;  %v4090_v4 = vadd.f32 %v6405_v5, %v9266_v19  ;;  %v6679_v5 = vld [vmem:[%s10025_s6 + $0x4] ss:$8 sps:$4 sm:$0xff]   ;;  %s6461_s19 = smul.u32 28672, %s6883_s28 }
 0x3fc   : > { %v6407_v32 = vpop.f32.mrf.mxu1  ;;  %4390 = vmatprep.subr.bf16.mxu0 %v6679_v5 }
 0x3fd   : > { %v6408_v59 = vadd.f32 %v6407_v32, %v6406_v52  ;;  %v6677_v52 = vld [vmem:[%s10025_s6] ss:$8 sps:$4 sm:$0xff]  }
 0x3fe   : > { %v6409_v41 = vpop.f32.mrf.mxu1  ;;  %4391 = vmatpush1.bf16.msra.mxu0 %v6677_v52 }
 0x3ff   : > { %v4093_v8 = vadd.f32 %v6408_v59, %v9266_v19 }
 0x400   : > { %v6410_v36 = vpop.f32.mrf.mxu1 }
 0x401   : > { %v6554_v18 = vpack.i.bf16 %v4093_v8, %v4090_v4  ;;  %v6411_v10 = vadd.f32 %v6410_v36, %v6409_v41 }
 0x402   : > { %v6412_v53 = vpop.f32.mrf.mxu1 }
 0x403   : > { %6555 = vrot.lane.b32.xlu1 %v6554_v18, %s6812_s29  ;;  %v4098_v48 = vadd.f32 %v6411_v10, %v9266_v19 }
 0x404   : > { %v6413_v7 = vpop.f32.mrf.mxu1 }
 0x405   : > { %v6414_v14 = vadd.f32 %v6413_v7, %v6412_v53 }
 0x406   : > { %v6415_v29 = vpop.f32.mrf.mxu1 }
 0x407   : > { %v4101_v35 = vadd.f32 %v6414_v14, %v9266_v19 }
 0x408   : > { %v6416_v0 = vpop.f32.mrf.mxu1 }
 0x409   : > { %v6559_v15 = vpack.i.bf16 %v4101_v35, %v4098_v48  ;;  %v6417_v38 = vadd.f32 %v6416_v0, %v6415_v29 }
 0x40a   : > { %v6418_v60 = vpop.f32.mrf.mxu1 }
 0x40b   : > { %6560 = vrot.lane.b32.xlu0 %v6559_v15, %s6813_s8  ;;  %v4106_v11 = vadd.f32 %v6417_v38, %v9266_v19  ;;  %v6360_v15 = vadd.f32 %v9261_v61, %v9259_v44 }
 0x40c   : > { %v6419_v58 = vpop.f32.mrf.mxu1 }
 0x40d   : > { %v6420_v28 = vadd.f32 %v6419_v58, %v6418_v60  ;;  %v4026_v58 = vadd.f32 %v9257_v6, %v9266_v19 }
 0x40e   : > { %v6421_v45 = vpop.f32.mrf.mxu1 }
 0x40f   : > { %v4109_v42 = vadd.f32 %v6420_v28, %v9266_v19  ;;  %v4029_v28 = vadd.f32 %v6360_v15, %v9266_v19 }
 0x410   : > { %v6422_v1 = vpop.f32.mrf.mxu1 }
 0x411   : > { %v6564_v26 = vpack.i.bf16 %v4109_v42, %v4106_v11  ;;  %v6423_v9 = vadd.f32 %v6422_v1, %v6421_v45 }
 0x412   : > { %v6424_v21 = vpop.f32.mrf.mxu1 }
 0x413   : > { %6565 = vrot.lane.b32.xlu1 %v6564_v26, %s6814_s9  ;;  %v4114_v20 = vadd.f32 %v6423_v9, %v9266_v19 }
 0x414   : > { %v6425_v27 = vpop.f32.mrf.mxu1 }
 0x415   : > { %v6426_v24 = vadd.f32 %v6425_v27, %v6424_v21 }
 0x416   : > { %v6427_v46 = vpop.f32.mrf.mxu1 }
 0x417   : > { %v4117_v31 = vadd.f32 %v6426_v24, %v9266_v19 }
 0x418   : > { %v6428_v16 = vpop.f32.mrf.mxu1 }
 0x419   : > { %v6569_v2 = vpack.i.bf16 %v4117_v31, %v4114_v20  ;;  %v6429_v49 = vadd.f32 %v6428_v16, %v6427_v46 }
 0x41a   : > { %v6430_v17 = vpop.f32.mrf.mxu1 }
 0x41b   : > { %6570 = vrot.lane.b32.xlu0 %v6569_v2, %s6815_s13  ;;  %v4122_v55 = vadd.f32 %v6429_v49, %v9266_v19  ;;  %s9969_s13 = scalar_lea.hbm %s10026_s7, %s6461_s19 }
 0x41c   : > { %v6431_v12 = vpop.f32.mrf.mxu1 }
 0x41d   : > { %v6432_v37 = vadd.f32 %v6431_v12, %v6430_v17 }
 0x41e   : > { %v6433_v56 = vpop.f32.mrf.mxu1 }
 0x41f   : > { %v4125_v34 = vadd.f32 %v6432_v37, %v9266_v19 }
 0x420   : > { %v6434_v50 = vpop.f32.mrf.mxu1 }
 0x421   : > { %v6574_v57 = vpack.i.bf16 %v4125_v34, %v4122_v55  ;;  %v6435_v43 = vadd.f32 %v6434_v50, %v6433_v56 }
 0x422   : > { %v6436_v63 = vpop.f32.mrf.mxu1 }
 0x423   : > { %6575 = vrot.lane.b32.xlu1 %v6574_v57, %s6816_s14  ;;  %v4130_v51 = vadd.f32 %v6435_v43, %v9266_v19  ;;  %s269_s14 = sand.u32 1, %s6794_s25  }
 0x424   : > { %v6437_v54 = vpop.f32.mrf.mxu1  ;;  %s9978_s28 = scalar_lea.sflag [#allocation3], %s269_s14 }
 0x425   : > { %v6438_v25 = vadd.f32 %v6437_v54, %v6436_v63 }
 0x426   : > { %v6439_v40 = vpop.f32.mrf.mxu1 }
 0x427   : > { %v4133_v30 = vadd.f32 %v6438_v25, %v9266_v19 }
 0x428   : > { %v6440_v62 = vpop.f32.mrf.mxu1 }
 0x429   : > { %v6579_v23 = vpack.i.bf16 %v4133_v30, %v4130_v51  ;;  %v6441_v47 = vadd.f32 %v6440_v62, %v6439_v40 }
 0x42a   : > { %v6442_v3 = vpop.f32.mrf.mxu1 }
 0x42b   : > { %6580 = vrot.lane.b32.xlu0 %v6579_v23, %s6817_s15  ;;  %v4138_v32 = vadd.f32 %v6441_v47, %v9266_v19  ;;  %s6459_s15 = smul.u32 1792, %s269_s14 }
 0x42c   : > { %v6443_v33 = vpop.f32.mrf.mxu1 }
 0x42d   : > { %v6444_v22 = vadd.f32 %v6443_v33, %v6442_v3 }
 0x42e   : > { %v6445_v39 = vpop.f32.mrf.mxu1 }
 0x42f   : > { %v4141_v59 = vadd.f32 %v6444_v22, %v9266_v19 }
 0x430   : > { %v6446_v41 = vpop.f32.mrf.mxu1 }
 0x431   : > { %v6447_v4 = vadd.f32 %v6446_v41, %v6445_v39  ;;  %v6584_v8 = vpack.i.bf16 %v4141_v59, %v4138_v32 }
 0x432   : > { %v6448_v36 = vpop.f32.mrf.mxu1 }
 0x433   : > { %v4146_v18 = vadd.f32 %v6447_v4, %v9266_v19  ;;  %6585 = vrot.lane.b32.xlu1 %v6584_v8, %s6818_s22  ;;  %s9599_s22 = scalar_lea.vmem [#allocation2], %s6459_s15 }
 0x434   : > { %v6449_v53 = vpop.f32.mrf.mxu1  ;;  %s5850_s29 = sshll.u32 %s9599_s22, 4  ;;  %s9972_s29 = int_to_ptr.vmem [resolvable:$true] %s5850_s29 }
 0x435   : > { %v6450_v10 = vadd.f32 %v6449_v53, %v6448_v36  ;;  %4266 = vrot.lane.b32.xlu0 %v4146_v18, %s6819_s23  ;;  %s6742_s15 = scalar_lea.vmem %s9972_s29, 28672  ;;  %p6749_p0 = scmp.lt.s32.totalorder %s9972_s29, %s6747_s17 }
 0x436   : > { %p6743_p11 = scmp.ne.s32.totalorder %s9972_s29, %s6742_s15  ;;  %p6750_p1 = scmp.lt.s32.totalorder %s6748_s18, %s6742_s15 }
 0x437   : > { %v4149_v7 = vadd.f32 %v6450_v10, %v9266_v19 }
 0x438   : > { %p6744_p12 = pnand %p6743_p11, %p6900_p5  ;;  %p6751_p2 = por %p6750_p1, %p6749_p0 }
 0x439   : > { %4268 = vrot.lane.b32.xlu1 %v4149_v7, %s6819_s23 }
 0x43a   : > { %p6745_p13 = pneg %p6744_p12 }
 0x43c   : > { %p6752_p3 = pnand %p6751_p2, %p6745_p13 }
 0x43d   : > { %v6521_v14 = vpop.permute.xlu0 %6520 }
 0x43e   : > { %v6522_v45 = vunpack.i.l.bf16 %v6521_v14  ;;  %v6523_v44 = vunpack.i.h.bf16 %v6521_v14 }
 0x440   : > { %v4273_v6 = vsel %vm4272_vm7, %v4026_v58, %v6522_v45  ;;  %v4274_v17 = vsel %vm4272_vm7, %v4029_v28, %v6523_v44 }
 0x445   : > { %v6526_v48 = vpop.permute.xlu0 %6525 }
 0x446   : > { %v6527_v42 = vunpack.i.l.bf16 %v6526_v48  ;;  %v6528_v21 = vunpack.i.h.bf16 %v6526_v48 }
 0x448   : > { %v4276_v27 = vsel %vm4275_vm8, %v4273_v6, %v6527_v42  ;;  %v4277_v56 = vsel %vm4275_vm8, %v4274_v17, %v6528_v21 }
 0x44d   : > { %v6531_v29 = vpop.permute.xlu1 %6530 }
 0x44e   : > { %v6532_v26 = vunpack.i.l.bf16 %v6531_v29  ;;  %v6533_v24 = vunpack.i.h.bf16 %v6531_v29 }
 0x450   : > { %v4279_v31 = vsel %vm4278_vm9, %v4276_v27, %v6532_v26  ;;  %v4280_v63 = vsel %vm4278_vm9, %v4277_v56, %v6533_v24 }
 0x455   : > { %v6536_v35 = vpop.permute.xlu1 %6535 }
 0x456   : > { %v6537_v61 = vunpack.i.l.bf16 %v6536_v35  ;;  %v6538_v16 = vunpack.i.h.bf16 %v6536_v35 }
 0x458   : > { %v4282_v49 = vsel %vm4281_vm10, %v4279_v31, %v6537_v61  ;;  %v4283_v51 = vsel %vm4281_vm10, %v4280_v63, %v6538_v16 }
 0x45d   : > { %v6541_v0 = vpop.permute.xlu0 %6540 }
 0x45e   : > { %v6542_v19 = vunpack.i.l.bf16 %v6541_v0  ;;  %v6543_v12 = vunpack.i.h.bf16 %v6541_v0 }
 0x460   : > { %v4285_v55 = vsel %vm4284_vm11, %v4282_v49, %v6542_v19  ;;  %v4286_v3 = vsel %vm4284_vm11, %v4283_v51, %v6543_v12 }
 0x465   : > { %v6546_v60 = vpop.permute.xlu1 %6545 }
 0x466   : > { %v6547_v46 = vunpack.i.l.bf16 %v6546_v60  ;;  %v6548_v34 = vunpack.i.h.bf16 %v6546_v60 }
 0x468   : > { %v4288_v43 = vsel %vm4287_vm12, %v4285_v55, %v6547_v46  ;;  %v4289_v39 = vsel %vm4287_vm12, %v4286_v3, %v6548_v34 }
 0x46d   : > { %v6551_v38 = vpop.permute.xlu0 %6550 }
 0x46e   : > { %v6552_v2 = vunpack.i.l.bf16 %v6551_v38  ;;  %v6553_v54 = vunpack.i.h.bf16 %v6551_v38 }
 0x470   : > { %v4291_v30 = vsel %vm4290_vm13, %v4288_v43, %v6552_v2  ;;  %v4292_v59 = vsel %vm4290_vm13, %v4289_v39, %v6553_v54  ;;  %v6680_v39 = vld [vmem:[%s10024_s5 + $0xd0] sm:$0xff]  }
 0x475   : > { %v6556_v11 = vpop.permute.xlu1 %6555 }
 0x476   : > { %v6557_v37 = vunpack.i.l.bf16 %v6556_v11  ;;  %v6558_v62 = vunpack.i.h.bf16 %v6556_v11 }
 0x478   : > { %v4293_v47 = vsel %vm796_vm1, %v4291_v30, %v6557_v37  ;;  %v4294_v8 = vsel %vm796_vm1, %v4292_v59, %v6558_v62  ;;  %vm4849_vm1 = vcmask 523264   ;;  %v6682_v59 = vld [vmem:[%s10024_s5 + $0xe0] sm:$0xff]  }
 0x47d   : > { %v6561_v1 = vpop.permute.xlu0 %6560 }
 0x47e   : > { %v6562_v50 = vunpack.i.l.bf16 %v6561_v1  ;;  %v6563_v33 = vunpack.i.h.bf16 %v6561_v1 }
 0x480   : > { %v4296_v52 = vsel %vm4295_vm14, %v4293_v47, %v6562_v50  ;;  %v4297_v10 = vsel %vm4295_vm14, %v4294_v8, %v6563_v33  ;;  %v6690_v8 = vld [vmem:[%s10024_s5 + $0x18] sm:$0xff]  }
 0x485   : > { %v6566_v9 = vpop.permute.xlu1 %6565 }
 0x486   : > { %v6567_v25 = vunpack.i.l.bf16 %v6566_v9  ;;  %v6568_v5 = vunpack.i.h.bf16 %v6566_v9 }
 0x488   : > { %v4299_v41 = vsel %vm4298_vm15, %v4296_v52, %v6567_v25  ;;  %v4300_v48 = vsel %vm4298_vm15, %v4297_v10, %v6568_v5  ;;  %v6684_v52 = vld [vmem:[%s10024_s5] sm:$0xff]   ;;  %v6681_v5 = vld [vmem:[%s10024_s5 + $0xd8] sm:$0xff]   ;;  %v6694_v10 = vld [vmem:[%s10024_s5 + $0x28] sm:$0xff]  }
 0x48d   : > { %v6571_v20 = vpop.permute.xlu0 %6570 }
 0x48e   : > { %v6572_v23 = vunpack.i.l.bf16 %v6571_v20  ;;  %v6573_v4 = vunpack.i.h.bf16 %v6571_v20 }
 0x490   : > { %v4302_v36 = vsel %vm4301_vm0, %v4299_v41, %v6572_v23  ;;  %v4303_v60 = vsel %vm4301_vm0, %v4300_v48, %v6573_v4  ;;  %v6688_v41 = vld [vmem:[%s10024_s5 + $0x10] sm:$0xff]   ;;  %v6683_v4 = vld [vmem:[%s10024_s5 + $0xe8] sm:$0xff]   ;;  %v6698_v48 = vld [vmem:[%s10024_s5 + $0x38] sm:$0xff]  }
 0x495   : > { %v6576_v57 = vpop.permute.xlu1 %6575 }
 0x496   : > { %v6577_v22 = vunpack.i.l.bf16 %v6576_v57  ;;  %v6578_v18 = vunpack.i.h.bf16 %v6576_v57 }
 0x498   : > { %v4305_v7 = vsel %vm4304_vm2, %v4302_v36, %v6577_v22  ;;  %v4306_v58 = vsel %vm4304_vm2, %v4303_v60, %v6578_v18  ;;  %v6685_v36 = vld [vmem:[%s10024_s5 + $0xf0] sm:$0xff]   ;;  %v6692_v18 = vld [vmem:[%s10024_s5 + $0x20] sm:$0xff]   ;;  %v6702_v60 = vld [vmem:[%s10024_s5 + $0x48] sm:$0xff]  }
 0x49d   : > { %v6581_v40 = vpop.permute.xlu0 %6580 }
 0x49e   : > { %v6582_v32 = vunpack.i.l.bf16 %v6581_v40  ;;  %v6583_v14 = vunpack.i.h.bf16 %v6581_v40 }
 0x4a0   : > { %v4308_v15 = vsel %vm4307_vm3, %v4305_v7, %v6582_v32  ;;  %v4309_v45 = vsel %vm4307_vm3, %v4306_v58, %v6583_v14  ;;  %v6686_v32 = vld [vmem:[%s10024_s5 + $0x8] sm:$0xff]   ;;  %v6689_v7 = vld [vmem:[%s10024_s5 + $0x100] sm:$0xff]   ;;  %v6696_v14 = vld [vmem:[%s10024_s5 + $0x30] sm:$0xff]  }
 0x4a1   : > { %v6704_v58 = vld [vmem:[%s10024_s5 + $0x50] sm:$0xff]  }
 0x4a5   : > { %v6586_v53 = vpop.permute.xlu1 %6585 }
 0x4a6   : > { %v6587_v29 = vunpack.i.l.bf16 %v6586_v53  ;;  %v6588_v35 = vunpack.i.h.bf16 %v6586_v53  ;;  %v6687_v53 = vld [vmem:[%s10024_s5 + $0xf8] sm:$0xff]  }
 0x4a7   : > { %v4267_v0 = vpop.permute.xlu0 %4266 }
 0x4a8   : > { %v4311_v38 = vsel %vm4310_vm4, %v4308_v15, %v6587_v29  ;;  %v4312_v42 = vsel %vm4310_vm4, %v4309_v45, %v6588_v35  ;;  %v6691_v29 = vld [vmem:[%s10024_s5 + $0x108] sm:$0xff]   ;;  %v6693_v35 = vld [vmem:[%s10024_s5 + $0x110] sm:$0xff]   ;;  %v6695_v15 = vld [vmem:[%s10024_s5 + $0x118] sm:$0xff]  }
 0x4a9   : > { %v4314_v28 = vsel %vm4313_vm5, %v4311_v38, %v4267_v0  ;;  %v6700_v0 = vld [vmem:[%s10024_s5 + $0x40] sm:$0xff]   ;;  %v6706_v45 = vld [vmem:[%s10024_s5 + $0x58] sm:$0xff]  }
 0x4aa   : > { %4316 = vxpose.xlu0.b32.start [1/2] (short) (narrow) %v4314_v28, 64  ;;  %v6697_v38 = vld [vmem:[%s10024_s5 + $0x120] sm:$0xff]   ;;  %v6699_v28 = vld [vmem:[%s10024_s5 + $0x128] sm:$0xff]  }
 0x4ab   : > { %v4269_v11 = vpop.permute.xlu1 %4268 }
 0x4ac   : > { %v4315_v1 = vsel %vm4313_vm5, %v4312_v42, %v4269_v11  ;;  %v6701_v11 = vld [vmem:[%s10024_s5 + $0x130] sm:$0xff]   ;;  %v6708_v42 = vld [vmem:[%s10024_s5 + $0x60] sm:$0xff]  }
 0x4ae   : > { %4317 = vxpose.xlu0.b32.end [2/2] (short) (narrow) %v4315_v1, 64  ;;  %v6703_v1 = vld [vmem:[%s10024_s5 + $0x138] sm:$0xff]  }
 0x526   : > { %v4332_v26 = vpop.trf.xlu0 }
 0x52a   : > { %v4333_v44 = vpop.trf.xlu0 }
 0x52b   : > { %v4348_v61 = vpack.c.bf16 %v4333_v44, %v4332_v26  ;;  %v6710_v26 = vld [vmem:[%s10024_s5 + $0x68] sm:$0xff]   ;;  %v6705_v44 = vld [vmem:[%s10024_s5 + $0x140] sm:$0xff]  }
 0x52d   : > { %6220 = vmatmul.mubr.msk.bf16.vlgmr.msra.gmra.mxu0 %vm4281_vm10, %v4348_v61  ;;  %v6712_v61 = vld [vmem:[%s10024_s5 + $0x70] sm:$0xff]  }
 0x52e   : > { %v4334_v6 = vpop.trf.xlu0  ;;  %4418 = vmatprep.mubr.bf16.mxu0 %v10556_v13 }
 0x532   : > { %v4335_v21 = vpop.trf.xlu0 }
 0x533   : > { %v4349_v19 = vpack.c.bf16 %v4335_v21, %v4334_v6  ;;  %v6707_v6 = vld [vmem:[%s10024_s5 + $0x148] sm:$0xff]   ;;  %v6714_v21 = vld [vmem:[%s10024_s5 + $0x78] sm:$0xff]  }
 0x535   : > { %6221 = vmatmul.mubr.msk.bf16.gmra.mxu0 %vm4281_vm10, %v4349_v19  ;;  %v6709_v19 = vld [vmem:[%s10024_s5 + $0x150] sm:$0xff]  }
 0x536   : > { %v4336_v9 = vpop.trf.xlu0  ;;  %4428 = vmatprep.mubr.bf16.mxu0 %v10556_v13 }
 0x53a   : > { %v4337_v27 = vpop.trf.xlu0 }
 0x53b   : > { %v4350_v24 = vpack.c.bf16 %v4337_v27, %v4336_v9  ;;  %v6716_v9 = vld [vmem:[%s10024_s5 + $0x80] sm:$0xff]   ;;  %v6711_v27 = vld [vmem:[%s10024_s5 + $0x158] sm:$0xff]  }
 0x53d   : > { %6222 = vmatmul.mubr.msk.bf16.gmra.mxu0 %vm4281_vm10, %v4350_v24  ;;  %v6718_v24 = vld [vmem:[%s10024_s5 + $0x88] sm:$0xff]  }
 0x53e   : > { %v4338_v46 = vpop.trf.xlu0  ;;  %4438 = vmatprep.mubr.bf16.mxu0 %v10556_v13 }
 0x542   : > { %v4339_v20 = vpop.trf.xlu0 }
 0x543   : > { %v4351_v31 = vpack.c.bf16 %v4339_v20, %v4338_v46  ;;  %v6713_v46 = vld [vmem:[%s10024_s5 + $0x160] sm:$0xff]   ;;  %v6720_v20 = vld [vmem:[%s10024_s5 + $0x90] sm:$0xff]  }
 0x545   : > { %6223 = vmatmul.mubr.msk.bf16.gmra.mxu0 %vm4281_vm10, %v4351_v31  ;;  %v6715_v31 = vld [vmem:[%s10024_s5 + $0x168] sm:$0xff]  }
 0x546   : > { %5050 = vmatprep.mubr.bf16.mxu0 %v10556_v13 }
 0x5ed   : > { %v4410_v16 = vpop.f32.mrf.mxu0 }
 0x5ef   : > { %v4412_v2 = vpop.f32.mrf.mxu0 }
 0x5f1   : > { %v4414_v17 = vpop.f32.mrf.mxu0 }
 0x5f2   : > { %v4561_v22 = vpack.c.bf16 %v4414_v17, %v4410_v16  ;;  %v6722_v16 = vld [vmem:[%s10024_s5 + $0x98] sm:$0xff]   ;;  %v6724_v17 = vld [vmem:[%s10024_s5 + $0xa0] sm:$0xff]  }
 0x5f3   : > { %v4416_v49 = vpop.f32.mrf.mxu0 }
 0x5f4   : > { %v4562_v33 = vpack.c.bf16 %v4416_v49, %v4412_v2  ;;  %v6717_v2 = vld [vmem:[%s10024_s5 + $0x170] sm:$0xff]   ;;  %v6719_v49 = vld [vmem:[%s10024_s5 + $0x178] sm:$0xff]  }
 0x5f5   : > { %v4420_v12 = vpop.f32.mrf.mxu0 }
 0x5f7   : > { %v4422_v37 = vpop.f32.mrf.mxu0 }
 0x5f9   : > { %v4424_v56 = vpop.f32.mrf.mxu0 }
 0x5fa   : > { %v4563_v47 = vpack.c.bf16 %v4424_v56, %v4420_v12  ;;  %v6726_v12 = vld [vmem:[%s10024_s5 + $0xa8] sm:$0xff]   ;;  %v6728_v56 = vld [vmem:[%s10024_s5 + $0xb0] sm:$0xff]  }
 0x5fb   : > { %v4426_v55 = vpop.f32.mrf.mxu0 }
 0x5fc   : > { %v4564_v3 = vpack.c.bf16 %v4426_v55, %v4422_v37  ;;  %v6721_v37 = vld [vmem:[%s10024_s5 + $0x180] sm:$0xff]   ;;  %v6723_v55 = vld [vmem:[%s10024_s5 + $0x188] sm:$0xff]  }
 0x5fd   : > { %v4430_v34 = vpop.f32.mrf.mxu0 }
 0x5ff   : > { %v4432_v50 = vpop.f32.mrf.mxu0 }
 0x601   : > { %v4434_v57 = vpop.f32.mrf.mxu0 }
 0x602   : > { %v4565_v23 = vpack.c.bf16 %v4434_v57, %v4430_v34  ;;  %v6730_v34 = vld [vmem:[%s10024_s5 + $0xb8] sm:$0xff]   ;;  %v6732_v57 = vld [vmem:[%s10024_s5 + $0xc0] sm:$0xff]  }
 0x603   : > { %v4436_v63 = vpop.f32.mrf.mxu0 }
 0x604   : > { %v4566_v62 = vpack.c.bf16 %v4436_v63, %v4432_v50  ;;  %v6725_v50 = vld [vmem:[%s10024_s5 + $0x190] sm:$0xff]  }
 0x605   : > { %v4440_v43 = vpop.f32.mrf.mxu0 }
 0x607   : > { %v4442_v54 = vpop.f32.mrf.mxu0 }
 0x609   : > { %v4444_v25 = vpop.f32.mrf.mxu0 }
 0x60a   : > { %v4567_v30 = vpack.c.bf16 %v4444_v25, %v4440_v43 }
 0x60b   : > { %v4446_v40 = vpop.f32.mrf.mxu0 }
 0x60c   : > { %v4568_v51 = vpack.c.bf16 %v4446_v40, %v4442_v54 }
 0x60e   : > { %5026 = vmatprep.subr.bf16.mxu0 %v4568_v51  ;;  %6451 = vmatprep.subr.bf16.mxu1 %v4568_v51  ;;  %v6727_v51 = vld [vmem:[%s10024_s5 + $0x198] sm:$0xff]  }
 0x60f   : > { %5027 = vmatpush1.bf16.msra.mxu0 %v4567_v30  ;;  %6455 = vmatpush1.bf16.msra.mxu1 %v4567_v30 }
 0x610   : > { %5028 = vmatprep.subr.bf16.mxu0 %v4566_v62  ;;  %6452 = vmatprep.subr.bf16.mxu1 %v4566_v62  ;;  %v6734_v62 = vld [vmem:[%s10024_s5 + $0xc8] sm:$0xff]  }
 0x613   : > { %5029 = vmatpush1.bf16.msra.mxu0 %v4565_v23  ;;  %6456 = vmatpush1.bf16.msra.mxu1 %v4565_v23 }
 0x614   : > { %5030 = vmatprep.subr.bf16.mxu0 %v4564_v3  ;;  %6453 = vmatprep.subr.bf16.mxu1 %v4564_v3 }
 0x617   : > { %5031 = vmatpush1.bf16.msra.mxu0 %v4563_v47  ;;  %6457 = vmatpush1.bf16.msra.mxu1 %v4563_v47 }
 0x618   : > { %5032 = vmatprep.subr.bf16.mxu0 %v4562_v33  ;;  %6454 = vmatprep.subr.bf16.mxu1 %v4562_v33 }
 0x61b   : > { %5033 = vmatpush1.bf16.msra.mxu0 %v4561_v22  ;;  %6458 = vmatpush1.bf16.msra.mxu1 %v4561_v22 }
 0x61e   : > { %6306 = vmatmul.mubr.msk.bf16.vlgmr.msra.gmra.mxu1 %vm4849_vm1, %v6680_v39  ;;  %6280 = vmatmul.mubr.msk.bf16.vlgmr.msra.gmra.mxu0 %vm4849_vm1, %v6684_v52 }
 0x61f   : > { %5320 = vmatprep.mubr.bf16.mxu1 %v10556_v13  ;;  %5060 = vmatprep.mubr.bf16.mxu0 %v10556_v13 }
 0x626   : > { %6307 = vmatmul.mubr.msk.bf16.gmra.mxu1 %vm4849_vm1, %v6681_v5  ;;  %6281 = vmatmul.mubr.msk.bf16.gmra.mxu0 %vm4849_vm1, %v6686_v32  ;;  %v6729_v5 = vld [vmem:[%s10024_s5 + $0x1a0] sm:$0xff]  }
 0x627   : > { %5330 = vmatprep.mubr.bf16.mxu1 %v10556_v13  ;;  %5070 = vmatprep.mubr.bf16.mxu0 %v10556_v13 }
 0x62e   : > { %6308 = vmatmul.mubr.msk.bf16.gmra.mxu1 %vm4849_vm1, %v6682_v59  ;;  %6282 = vmatmul.mubr.msk.bf16.gmra.mxu0 %vm4849_vm1, %v6688_v41 }
 0x62f   : > { %5340 = vmatprep.mubr.bf16.mxu1 %v10556_v13  ;;  %5080 = vmatprep.mubr.bf16.mxu0 %v10556_v13 }
 0x636   : > { %6309 = vmatmul.mubr.msk.bf16.gmra.mxu1 %vm4849_vm1, %v6683_v4  ;;  %6283 = vmatmul.mubr.msk.bf16.gmra.mxu0 %vm4849_vm1, %v6690_v8 }
 0x637   : > { %5350 = vmatprep.mubr.bf16.mxu1 %v10556_v13  ;;  %5090 = vmatprep.mubr.bf16.mxu0 %v10556_v13 }
 0x63e   : > { %6310 = vmatmul.mubr.msk.bf16.gmra.mxu1 %vm4849_vm1, %v6685_v36  ;;  %6284 = vmatmul.mubr.msk.bf16.gmra.mxu0 %vm4849_vm1, %v6692_v18 }
 0x63f   : > { %5360 = vmatprep.mubr.bf16.mxu1 %v10556_v13  ;;  %5100 = vmatprep.mubr.bf16.mxu0 %v10556_v13 }
 0x646   : > { %6311 = vmatmul.mubr.msk.bf16.gmra.mxu1 %vm4849_vm1, %v6687_v53  ;;  %6285 = vmatmul.mubr.msk.bf16.gmra.mxu0 %vm4849_vm1, %v6694_v10  ;;  %v6731_v10 = vld [vmem:[%s10024_s5 + $0x1a8] sm:$0xff]  }
 0x647   : > { %5370 = vmatprep.mubr.bf16.mxu1 %v10556_v13  ;;  %5110 = vmatprep.mubr.bf16.mxu0 %v10556_v13 }
 0x64e   : > { %6312 = vmatmul.mubr.msk.bf16.gmra.mxu1 %vm4849_vm1, %v6689_v7  ;;  %6286 = vmatmul.mubr.msk.bf16.gmra.mxu0 %vm4849_vm1, %v6696_v14 }
 0x64f   : > { %5380 = vmatprep.mubr.bf16.mxu1 %v10556_v13  ;;  %5120 = vmatprep.mubr.bf16.mxu0 %v10556_v13 }
 0x656   : > { %6313 = vmatmul.mubr.msk.bf16.gmra.mxu1 %vm4849_vm1, %v6691_v29  ;;  %6287 = vmatmul.mubr.msk.bf16.gmra.mxu0 %vm4849_vm1, %v6698_v48 }
 0x657   : > { %5390 = vmatprep.mubr.bf16.mxu1 %v10556_v13  ;;  %5130 = vmatprep.mubr.bf16.mxu0 %v10556_v13 }
 0x65e   : > { %6314 = vmatmul.mubr.msk.bf16.gmra.mxu1 %vm4849_vm1, %v6693_v35  ;;  %6288 = vmatmul.mubr.msk.bf16.gmra.mxu0 %vm4849_vm1, %v6700_v0 }
 0x65f   : > { %5400 = vmatprep.mubr.bf16.mxu1 %v10556_v13  ;;  %5140 = vmatprep.mubr.bf16.mxu0 %v10556_v13 }
 0x666   : > { %6315 = vmatmul.mubr.msk.bf16.gmra.mxu1 %vm4849_vm1, %v6695_v15  ;;  %6289 = vmatmul.mubr.msk.bf16.gmra.mxu0 %vm4849_vm1, %v6702_v60 }
 0x667   : > { %5410 = vmatprep.mubr.bf16.mxu1 %v10556_v13  ;;  %5150 = vmatprep.mubr.bf16.mxu0 %v10556_v13 }
 0x66e   : > { %6316 = vmatmul.mubr.msk.bf16.gmra.mxu1 %vm4849_vm1, %v6697_v38  ;;  %6290 = vmatmul.mubr.msk.bf16.gmra.mxu0 %vm4849_vm1, %v6704_v58  ;;  %v6733_v38 = vld [vmem:[%s10024_s5 + $0x1b0] sm:$0xff]  }
 0x66f   : > { %5420 = vmatprep.mubr.bf16.mxu1 %v10556_v13  ;;  %5160 = vmatprep.mubr.bf16.mxu0 %v10556_v13 }
 0x676   : > { %6317 = vmatmul.mubr.msk.bf16.gmra.mxu1 %vm4849_vm1, %v6699_v28  ;;  %6291 = vmatmul.mubr.msk.bf16.gmra.mxu0 %vm4849_vm1, %v6706_v45 }
 0x677   : > { %5430 = vmatprep.mubr.bf16.mxu1 %v10556_v13  ;;  %5170 = vmatprep.mubr.bf16.mxu0 %v10556_v13 }
 0x67e   : > { %6318 = vmatmul.mubr.msk.bf16.gmra.mxu1 %vm4849_vm1, %v6701_v11  ;;  %6292 = vmatmul.mubr.msk.bf16.gmra.mxu0 %vm4849_vm1, %v6708_v42 }
 0x67f   : > { %5440 = vmatprep.mubr.bf16.mxu1 %v10556_v13  ;;  %5180 = vmatprep.mubr.bf16.mxu0 %v10556_v13 }
 0x686   : > { %6319 = vmatmul.mubr.msk.bf16.gmra.mxu1 %vm4849_vm1, %v6703_v1  ;;  %6293 = vmatmul.mubr.msk.bf16.gmra.mxu0 %vm4849_vm1, %v6710_v26 }
 0x687   : > { %5450 = vmatprep.mubr.bf16.mxu1 %v10556_v13  ;;  %5190 = vmatprep.mubr.bf16.mxu0 %v10556_v13 }
 0x68e   : > { %6320 = vmatmul.mubr.msk.bf16.gmra.mxu1 %vm4849_vm1, %v6705_v44  ;;  %6294 = vmatmul.mubr.msk.bf16.gmra.mxu0 %vm4849_vm1, %v6712_v61  ;;  %v6735_v61 = vld [vmem:[%s10024_s5 + $0x1b8] sm:$0xff]  }
 0x68f   : > { %5460 = vmatprep.mubr.bf16.mxu1 %v10556_v13  ;;  %5200 = vmatprep.mubr.bf16.mxu0 %v10556_v13 }
 0x696   : > { %6321 = vmatmul.mubr.msk.bf16.gmra.mxu1 %vm4849_vm1, %v6707_v6  ;;  %6295 = vmatmul.mubr.msk.bf16.gmra.mxu0 %vm4849_vm1, %v6714_v21 }
 0x697   : > { %5470 = vmatprep.mubr.bf16.mxu1 %v10556_v13  ;;  %5210 = vmatprep.mubr.bf16.mxu0 %v10556_v13 }
 0x69e   : > { %6322 = vmatmul.mubr.msk.bf16.gmra.mxu1 %vm4849_vm1, %v6709_v19  ;;  %6296 = vmatmul.mubr.msk.bf16.gmra.mxu0 %vm4849_vm1, %v6716_v9 }
 0x69f   : > { %5480 = vmatprep.mubr.bf16.mxu1 %v10556_v13  ;;  %5220 = vmatprep.mubr.bf16.mxu0 %v10556_v13 }
 0x6a6   : > { %6323 = vmatmul.mubr.msk.bf16.gmra.mxu1 %vm4849_vm1, %v6711_v27  ;;  %6297 = vmatmul.mubr.msk.bf16.gmra.mxu0 %vm4849_vm1, %v6718_v24 }
 0x6a7   : > { %5490 = vmatprep.mubr.bf16.mxu1 %v10556_v13  ;;  %5230 = vmatprep.mubr.bf16.mxu0 %v10556_v13 }
 0x6ae   : > { %6324 = vmatmul.mubr.msk.bf16.gmra.mxu1 %vm4849_vm1, %v6713_v46  ;;  %6298 = vmatmul.mubr.msk.bf16.gmra.mxu0 %vm4849_vm1, %v6720_v20 }
 0x6af   : > { %5500 = vmatprep.mubr.bf16.mxu1 %v10556_v13  ;;  %5240 = vmatprep.mubr.bf16.mxu0 %v10556_v13 }
 0x6b6   : > { %6325 = vmatmul.mubr.msk.bf16.gmra.mxu1 %vm4849_vm1, %v6715_v31  ;;  %6299 = vmatmul.mubr.msk.bf16.gmra.mxu0 %vm4849_vm1, %v6722_v16 }
 0x6b7   : > { %5510 = vmatprep.mubr.bf16.mxu1 %v10556_v13  ;;  %5250 = vmatprep.mubr.bf16.mxu0 %v10556_v13 }
 0x6be   : > { %6326 = vmatmul.mubr.msk.bf16.gmra.mxu1 %vm4849_vm1, %v6717_v2  ;;  %6300 = vmatmul.mubr.msk.bf16.gmra.mxu0 %vm4849_vm1, %v6724_v17 }
 0x6bf   : > { %5520 = vmatprep.mubr.bf16.mxu1 %v10556_v13  ;;  %5260 = vmatprep.mubr.bf16.mxu0 %v10556_v13 }
 0x6c6   : > { %6327 = vmatmul.mubr.msk.bf16.gmra.mxu1 %vm4849_vm1, %v6719_v49  ;;  %6301 = vmatmul.mubr.msk.bf16.gmra.mxu0 %vm4849_vm1, %v6726_v12 }
 0x6c7   : > { %5530 = vmatprep.mubr.bf16.mxu1 %v10556_v13  ;;  %5270 = vmatprep.mubr.bf16.mxu0 %v10556_v13 }
 0x6ce   : > { %6328 = vmatmul.mubr.msk.bf16.gmra.mxu1 %vm4849_vm1, %v6721_v37  ;;  %6302 = vmatmul.mubr.msk.bf16.gmra.mxu0 %vm4849_vm1, %v6728_v56 }
 0x6cf   : > { %5540 = vmatprep.mubr.bf16.mxu1 %v10556_v13  ;;  %5280 = vmatprep.mubr.bf16.mxu0 %v10556_v13 }
 0x6d6   : > { %6329 = vmatmul.mubr.msk.bf16.gmra.mxu1 %vm4849_vm1, %v6723_v55  ;;  %6303 = vmatmul.mubr.msk.bf16.gmra.mxu0 %vm4849_vm1, %v6730_v34 }
 0x6d7   : > { %5550 = vmatprep.mubr.bf16.mxu1 %v10556_v13  ;;  %5290 = vmatprep.mubr.bf16.mxu0 %v10556_v13 }
 0x6de   : > { %v5312_v63 = vpop.f32.mrf.mxu1  ;;  %6330 = vmatmul.mubr.msk.bf16.gmra.mxu1 %vm4849_vm1, %v6725_v50  ;;  %v5052_v43 = vpop.f32.mrf.mxu0  ;;  %6304 = vmatmul.mubr.msk.bf16.gmra.mxu0 %vm4849_vm1, %v6732_v57 }
 0x6df   : > { %5716 = vst [vmem:[%s9599_s22 + $0x340] sm:$0xff] %v5312_v63  ;;  %5560 = vmatprep.mubr.bf16.mxu1 %v10556_v13  ;;  %5611 = vst [vmem:[%s9599_s22] sm:$0xff] %v5052_v43  ;;  %5300 = vmatprep.mubr.bf16.mxu0 %v10556_v13 }
 0x6e0   : > { %v5314_v54 = vpop.f32.mrf.mxu1  ;;  %v5054_v25 = vpop.f32.mrf.mxu0 }
 0x6e1   : > { %5717 = vst.msk [vmem:[%s9599_s22 + $0x348] sm:$0xff] %vm5612_vm6, %v5314_v54  ;;  %5613 = vst.msk [vmem:[%s9599_s22 + $0x8] sm:$0xff] %vm5612_vm6, %v5054_v25 }
 0x6e2   : > { %v5316_v40 = vpop.f32.mrf.mxu1  ;;  %v5056_v30 = vpop.f32.mrf.mxu0 }
 0x6e3   : > { %5718 = vst [vmem:[%s9599_s22 + $0x350] sm:$0xff] %v5316_v40  ;;  %5614 = vst [vmem:[%s9599_s22 + $0x10] sm:$0xff] %v5056_v30 }
 0x6e4   : > { %v5318_v23 = vpop.f32.mrf.mxu1  ;;  %v5058_v3 = vpop.f32.mrf.mxu0 }
 0x6e5   : > { %5719 = vst.msk [vmem:[%s9599_s22 + $0x358] sm:$0xff] %vm5612_vm6, %v5318_v23  ;;  %5615 = vst.msk [vmem:[%s9599_s22 + $0x18] sm:$0xff] %vm5612_vm6, %v5058_v3 }
 0x6e6   : > { %v5322_v47 = vpop.f32.mrf.mxu1  ;;  %6331 = vmatmul.mubr.msk.bf16.gmra.mxu1 %vm4849_vm1, %v6727_v51  ;;  %v5062_v33 = vpop.f32.mrf.mxu0  ;;  %6305 = vmatmul.mubr.msk.bf16.gmra.mxu0 %vm4849_vm1, %v6734_v62 }
 0x6e7   : > { %5720 = vst [vmem:[%s9599_s22 + $0x360] sm:$0xff] %v5322_v47  ;;  %5570 = vmatprep.mubr.bf16.mxu1 %v10556_v13  ;;  %5616 = vst [vmem:[%s9599_s22 + $0x20] sm:$0xff] %v5062_v33 }
 0x6e8   : > { %v5324_v22 = vpop.f32.mrf.mxu1  ;;  %v5064_v39 = vpop.f32.mrf.mxu0 }
 0x6e9   : > { %5721 = vst.msk [vmem:[%s9599_s22 + $0x368] sm:$0xff] %vm5612_vm6, %v5324_v22  ;;  %5617 = vst.msk [vmem:[%s9599_s22 + $0x28] sm:$0xff] %vm5612_vm6, %v5064_v39 }
 0x6ea   : > { %v5326_v52 = vpop.f32.mrf.mxu1  ;;  %v5066_v32 = vpop.f32.mrf.mxu0 }
 0x6eb   : > { %5722 = vst [vmem:[%s9599_s22 + $0x370] sm:$0xff] %v5326_v52  ;;  %5618 = vst [vmem:[%s9599_s22 + $0x30] sm:$0xff] %v5066_v32 }
 0x6ec   : > { %v5328_v59 = vpop.f32.mrf.mxu1  ;;  %v5068_v41 = vpop.f32.mrf.mxu0 }
 0x6ed   : > { %5723 = vst.msk [vmem:[%s9599_s22 + $0x378] sm:$0xff] %vm5612_vm6, %v5328_v59  ;;  %5619 = vst.msk [vmem:[%s9599_s22 + $0x38] sm:$0xff] %vm5612_vm6, %v5068_v41 }
 0x6ee   : > { %v5332_v4 = vpop.f32.mrf.mxu1  ;;  %6332 = vmatmul.mubr.msk.bf16.gmra.mxu1 %vm4849_vm1, %v6729_v5  ;;  %v5072_v8 = vpop.f32.mrf.mxu0 }
 0x6ef   : > { %5724 = vst [vmem:[%s9599_s22 + $0x380] sm:$0xff] %v5332_v4  ;;  %5580 = vmatprep.mubr.bf16.mxu1 %v10556_v13  ;;  %5620 = vst [vmem:[%s9599_s22 + $0x40] sm:$0xff] %v5072_v8 }
 0x6f0   : > { %v5334_v36 = vpop.f32.mrf.mxu1  ;;  %v5074_v18 = vpop.f32.mrf.mxu0 }
 0x6f1   : > { %5725 = vst.msk [vmem:[%s9599_s22 + $0x388] sm:$0xff] %vm5612_vm6, %v5334_v36  ;;  %5621 = vst.msk [vmem:[%s9599_s22 + $0x48] sm:$0xff] %vm5612_vm6, %v5074_v18 }
 0x6f2   : > { %v5336_v53 = vpop.f32.mrf.mxu1  ;;  %v5076_v7 = vpop.f32.mrf.mxu0 }
 0x6f3   : > { %5726 = vst [vmem:[%s9599_s22 + $0x390] sm:$0xff] %v5336_v53  ;;  %5622 = vst [vmem:[%s9599_s22 + $0x50] sm:$0xff] %v5076_v7 }
 0x6f4   : > { %v5338_v14 = vpop.f32.mrf.mxu1  ;;  %v5078_v29 = vpop.f32.mrf.mxu0 }
 0x6f5   : > { %5727 = vst.msk [vmem:[%s9599_s22 + $0x398] sm:$0xff] %vm5612_vm6, %v5338_v14  ;;  %5623 = vst.msk [vmem:[%s9599_s22 + $0x58] sm:$0xff] %vm5612_vm6, %v5078_v29 }
 0x6f6   : > { %v5342_v48 = vpop.f32.mrf.mxu1  ;;  %6333 = vmatmul.mubr.msk.bf16.gmra.mxu1 %vm4849_vm1, %v6731_v10  ;;  %v5082_v35 = vpop.f32.mrf.mxu0 }
 0x6f7   : > { %5728 = vst [vmem:[%s9599_s22 + $0x3a0] sm:$0xff] %v5342_v48  ;;  %5590 = vmatprep.mubr.bf16.mxu1 %v10556_v13  ;;  %5624 = vst [vmem:[%s9599_s22 + $0x60] sm:$0xff] %v5082_v35 }
 0x6f8   : > { %v5344_v0 = vpop.f32.mrf.mxu1  ;;  %v5084_v15 = vpop.f32.mrf.mxu0 }
 0x6f9   : > { %5729 = vst.msk [vmem:[%s9599_s22 + $0x3a8] sm:$0xff] %vm5612_vm6, %v5344_v0  ;;  %5625 = vst.msk [vmem:[%s9599_s22 + $0x68] sm:$0xff] %vm5612_vm6, %v5084_v15 }
 0x6fa   : > { %v5346_v60 = vpop.f32.mrf.mxu1  ;;  %v5086_v58 = vpop.f32.mrf.mxu0 }
 0x6fb   : > { %5730 = vst [vmem:[%s9599_s22 + $0x3b0] sm:$0xff] %v5346_v60  ;;  %5626 = vst [vmem:[%s9599_s22 + $0x70] sm:$0xff] %v5086_v58 }
 0x6fc   : > { %v5348_v28 = vpop.f32.mrf.mxu1  ;;  %v5088_v45 = vpop.f32.mrf.mxu0 }
 0x6fd   : > { %5731 = vst.msk [vmem:[%s9599_s22 + $0x3b8] sm:$0xff] %vm5612_vm6, %v5348_v28  ;;  %5627 = vst.msk [vmem:[%s9599_s22 + $0x78] sm:$0xff] %vm5612_vm6, %v5088_v45 }
 0x6fe   : > { %v5352_v11 = vpop.f32.mrf.mxu1  ;;  %6334 = vmatmul.mubr.msk.bf16.gmra.mxu1 %vm4849_vm1, %v6733_v38  ;;  %v5092_v42 = vpop.f32.mrf.mxu0 }
 0x6ff   : > { %5732 = vst [vmem:[%s9599_s22 + $0x3c0] sm:$0xff] %v5352_v11  ;;  %5600 = vmatprep.mubr.bf16.mxu1 %v10556_v13  ;;  %5628 = vst [vmem:[%s9599_s22 + $0x80] sm:$0xff] %v5092_v42 }
 0x700   : > { %v5354_v1 = vpop.f32.mrf.mxu1  ;;  %v5094_v26 = vpop.f32.mrf.mxu0 }
 0x701   : > { %5733 = vst.msk [vmem:[%s9599_s22 + $0x3c8] sm:$0xff] %vm5612_vm6, %v5354_v1  ;;  %5629 = vst.msk [vmem:[%s9599_s22 + $0x88] sm:$0xff] %vm5612_vm6, %v5094_v26 }
 0x702   : > { %v5356_v44 = vpop.f32.mrf.mxu1  ;;  %v5096_v6 = vpop.f32.mrf.mxu0 }
 0x703   : > { %5734 = vst [vmem:[%s9599_s22 + $0x3d0] sm:$0xff] %v5356_v44  ;;  %5630 = vst [vmem:[%s9599_s22 + $0x90] sm:$0xff] %v5096_v6 }
 0x704   : > { %v5358_v13 = vpop.f32.mrf.mxu1  ;;  %v5098_v21 = vpop.f32.mrf.mxu0 }
 0x705   : > { %5735 = vst.msk [vmem:[%s9599_s22 + $0x3d8] sm:$0xff] %vm5612_vm6, %v5358_v13  ;;  %5631 = vst.msk [vmem:[%s9599_s22 + $0x98] sm:$0xff] %vm5612_vm6, %v5098_v21 }
 0x706   : > { %v5362_v19 = vpop.f32.mrf.mxu1  ;;  %6335 = vmatmul.mubr.msk.bf16.gmra.mxu1 %vm4849_vm1, %v6735_v61  ;;  %v5102_v9 = vpop.f32.mrf.mxu0 }
 0x707   : > { %5736 = vst [vmem:[%s9599_s22 + $0x3e0] sm:$0xff] %v5362_v19  ;;  %5632 = vst [vmem:[%s9599_s22 + $0xa0] sm:$0xff] %v5102_v9 }
 0x708   : > { %v5364_v27 = vpop.f32.mrf.mxu1  ;;  %v5104_v24 = vpop.f32.mrf.mxu0 }
 0x709   : > { %5737 = vst.msk [vmem:[%s9599_s22 + $0x3e8] sm:$0xff] %vm5612_vm6, %v5364_v27  ;;  %5633 = vst.msk [vmem:[%s9599_s22 + $0xa8] sm:$0xff] %vm5612_vm6, %v5104_v24 }
 0x70a   : > { %v5366_v46 = vpop.f32.mrf.mxu1  ;;  %v5106_v20 = vpop.f32.mrf.mxu0 }
 0x70b   : > { %5738 = vst [vmem:[%s9599_s22 + $0x3f0] sm:$0xff] %v5366_v46  ;;  %5634 = vst [vmem:[%s9599_s22 + $0xb0] sm:$0xff] %v5106_v20 }
 0x70c   : > { %v5368_v31 = vpop.f32.mrf.mxu1  ;;  %v5108_v16 = vpop.f32.mrf.mxu0 }
 0x70d   : > { %5739 = vst.msk [vmem:[%s9599_s22 + $0x3f8] sm:$0xff] %vm5612_vm6, %v5368_v31  ;;  %5635 = vst.msk [vmem:[%s9599_s22 + $0xb8] sm:$0xff] %vm5612_vm6, %v5108_v16 }
 0x70e   : > { %v5372_v2 = vpop.f32.mrf.mxu1  ;;  %v5112_v17 = vpop.f32.mrf.mxu0 }
 0x70f   : > { %5740 = vst [vmem:[%s9599_s22 + $0x400] sm:$0xff] %v5372_v2  ;;  %5636 = vst [vmem:[%s9599_s22 + $0xc0] sm:$0xff] %v5112_v17 }
 0x710   : > { %v5374_v49 = vpop.f32.mrf.mxu1  ;;  %v5114_v12 = vpop.f32.mrf.mxu0 }
 0x711   : > { %5741 = vst.msk [vmem:[%s9599_s22 + $0x408] sm:$0xff] %vm5612_vm6, %v5374_v49  ;;  %5637 = vst.msk [vmem:[%s9599_s22 + $0xc8] sm:$0xff] %vm5612_vm6, %v5114_v12 }
 0x712   : > { %v5376_v37 = vpop.f32.mrf.mxu1  ;;  %v5116_v56 = vpop.f32.mrf.mxu0 }
 0x713   : > { %5742 = vst [vmem:[%s9599_s22 + $0x410] sm:$0xff] %v5376_v37  ;;  %5638 = vst [vmem:[%s9599_s22 + $0xd0] sm:$0xff] %v5116_v56 }
 0x714   : > { %v5378_v55 = vpop.f32.mrf.mxu1  ;;  %v5118_v34 = vpop.f32.mrf.mxu0 }
 0x715   : > { %5743 = vst.msk [vmem:[%s9599_s22 + $0x418] sm:$0xff] %vm5612_vm6, %v5378_v55  ;;  %5639 = vst.msk [vmem:[%s9599_s22 + $0xd8] sm:$0xff] %vm5612_vm6, %v5118_v34 }
 0x716   : > { %v5382_v50 = vpop.f32.mrf.mxu1  ;;  %v5122_v57 = vpop.f32.mrf.mxu0 }
 0x717   : > { %5744 = vst [vmem:[%s9599_s22 + $0x420] sm:$0xff] %v5382_v50  ;;  %5640 = vst [vmem:[%s9599_s22 + $0xe0] sm:$0xff] %v5122_v57 }
 0x718   : > { %v5384_v63 = vpop.f32.mrf.mxu1  ;;  %v5124_v43 = vpop.f32.mrf.mxu0 }
 0x719   : > { %5745 = vst.msk [vmem:[%s9599_s22 + $0x428] sm:$0xff] %vm5612_vm6, %v5384_v63  ;;  %5641 = vst.msk [vmem:[%s9599_s22 + $0xe8] sm:$0xff] %vm5612_vm6, %v5124_v43 }
 0x71a   : > { %v5386_v54 = vpop.f32.mrf.mxu1  ;;  %v5126_v25 = vpop.f32.mrf.mxu0 }
 0x71b   : > { %5746 = vst [vmem:[%s9599_s22 + $0x430] sm:$0xff] %v5386_v54  ;;  %5642 = vst [vmem:[%s9599_s22 + $0xf0] sm:$0xff] %v5126_v25 }
 0x71c   : > { %v5388_v40 = vpop.f32.mrf.mxu1  ;;  %v5128_v51 = vpop.f32.mrf.mxu0 }
 0x71d   : > { %5747 = vst.msk [vmem:[%s9599_s22 + $0x438] sm:$0xff] %vm5612_vm6, %v5388_v40  ;;  %5643 = vst.msk [vmem:[%s9599_s22 + $0xf8] sm:$0xff] %vm5612_vm6, %v5128_v51 }
 0x71e   : > { %v5392_v30 = vpop.f32.mrf.mxu1  ;;  %v5132_v62 = vpop.f32.mrf.mxu0 }
 0x71f   : > { %5748 = vst [vmem:[%s9599_s22 + $0x440] sm:$0xff] %v5392_v30  ;;  %5644 = vst [vmem:[%s9599_s22 + $0x100] sm:$0xff] %v5132_v62 }
 0x720   : > { %v5394_v23 = vpop.f32.mrf.mxu1  ;;  %v5134_v3 = vpop.f32.mrf.mxu0 }
 0x721   : > { %5749 = vst.msk [vmem:[%s9599_s22 + $0x448] sm:$0xff] %vm5612_vm6, %v5394_v23  ;;  %5645 = vst.msk [vmem:[%s9599_s22 + $0x108] sm:$0xff] %vm5612_vm6, %v5134_v3 }
 0x722   : > { %v5396_v47 = vpop.f32.mrf.mxu1  ;;  %v5136_v33 = vpop.f32.mrf.mxu0 }
 0x723   : > { %5750 = vst [vmem:[%s9599_s22 + $0x450] sm:$0xff] %v5396_v47  ;;  %5646 = vst [vmem:[%s9599_s22 + $0x110] sm:$0xff] %v5136_v33 }
 0x724   : > { %v5398_v22 = vpop.f32.mrf.mxu1  ;;  %v5138_v39 = vpop.f32.mrf.mxu0 }
 0x725   : > { %5751 = vst.msk [vmem:[%s9599_s22 + $0x458] sm:$0xff] %vm5612_vm6, %v5398_v22  ;;  %5647 = vst.msk [vmem:[%s9599_s22 + $0x118] sm:$0xff] %vm5612_vm6, %v5138_v39 }
 0x726   : > { %v5402_v52 = vpop.f32.mrf.mxu1  ;;  %v5142_v5 = vpop.f32.mrf.mxu0 }
 0x727   : > { %5752 = vst [vmem:[%s9599_s22 + $0x460] sm:$0xff] %v5402_v52  ;;  %5648 = vst [vmem:[%s9599_s22 + $0x120] sm:$0xff] %v5142_v5 }
 0x728   : > { %v5404_v32 = vpop.f32.mrf.mxu1  ;;  %v5144_v59 = vpop.f32.mrf.mxu0 }
 0x729   : > { %5753 = vst.msk [vmem:[%s9599_s22 + $0x468] sm:$0xff] %vm5612_vm6, %v5404_v32  ;;  %5649 = vst.msk [vmem:[%s9599_s22 + $0x128] sm:$0xff] %vm5612_vm6, %v5144_v59 }
 0x72a   : > { %v5406_v41 = vpop.f32.mrf.mxu1  ;;  %v5146_v4 = vpop.f32.mrf.mxu0 }
 0x72b   : > { %5754 = vst [vmem:[%s9599_s22 + $0x470] sm:$0xff] %v5406_v41  ;;  %5650 = vst [vmem:[%s9599_s22 + $0x130] sm:$0xff] %v5146_v4 }
 0x72c   : > { %v5408_v8 = vpop.f32.mrf.mxu1  ;;  %v5148_v36 = vpop.f32.mrf.mxu0 }
 0x72d   : > { %5755 = vst.msk [vmem:[%s9599_s22 + $0x478] sm:$0xff] %vm5612_vm6, %v5408_v8  ;;  %5651 = vst.msk [vmem:[%s9599_s22 + $0x138] sm:$0xff] %vm5612_vm6, %v5148_v36 }
 0x72e   : > { %v5412_v18 = vpop.f32.mrf.mxu1  ;;  %v5152_v53 = vpop.f32.mrf.mxu0 }
 0x72f   : > { %5756 = vst [vmem:[%s9599_s22 + $0x480] sm:$0xff] %v5412_v18  ;;  %5652 = vst [vmem:[%s9599_s22 + $0x140] sm:$0xff] %v5152_v53 }
 0x730   : > { %v5414_v10 = vpop.f32.mrf.mxu1  ;;  %v5154_v7 = vpop.f32.mrf.mxu0 }
 0x731   : > { %5757 = vst.msk [vmem:[%s9599_s22 + $0x488] sm:$0xff] %vm5612_vm6, %v5414_v10  ;;  %5653 = vst.msk [vmem:[%s9599_s22 + $0x148] sm:$0xff] %vm5612_vm6, %v5154_v7 }
 0x732   : > { %v5416_v14 = vpop.f32.mrf.mxu1  ;;  %v5156_v29 = vpop.f32.mrf.mxu0 }
 0x733   : > { %5758 = vst [vmem:[%s9599_s22 + $0x490] sm:$0xff] %v5416_v14  ;;  %5654 = vst [vmem:[%s9599_s22 + $0x150] sm:$0xff] %v5156_v29 }
 0x734   : > { %v5418_v48 = vpop.f32.mrf.mxu1  ;;  %v5158_v35 = vpop.f32.mrf.mxu0 }
 0x735   : > { %5759 = vst.msk [vmem:[%s9599_s22 + $0x498] sm:$0xff] %vm5612_vm6, %v5418_v48  ;;  %5655 = vst.msk [vmem:[%s9599_s22 + $0x158] sm:$0xff] %vm5612_vm6, %v5158_v35 }
 0x736   : > { %v5422_v0 = vpop.f32.mrf.mxu1  ;;  %v5162_v15 = vpop.f32.mrf.mxu0 }
 0x737   : > { %5760 = vst [vmem:[%s9599_s22 + $0x4a0] sm:$0xff] %v5422_v0  ;;  %5656 = vst [vmem:[%s9599_s22 + $0x160] sm:$0xff] %v5162_v15 }
 0x738   : > { %v5424_v60 = vpop.f32.mrf.mxu1  ;;  %v5164_v38 = vpop.f32.mrf.mxu0 }
 0x739   : > { %5761 = vst.msk [vmem:[%s9599_s22 + $0x4a8] sm:$0xff] %vm5612_vm6, %v5424_v60  ;;  %5657 = vst.msk [vmem:[%s9599_s22 + $0x168] sm:$0xff] %vm5612_vm6, %v5164_v38 }
 0x73a   : > { %v5426_v58 = vpop.f32.mrf.mxu1  ;;  %v5166_v28 = vpop.f32.mrf.mxu0 }
 0x73b   : > { %5762 = vst [vmem:[%s9599_s22 + $0x4b0] sm:$0xff] %v5426_v58  ;;  %5658 = vst [vmem:[%s9599_s22 + $0x170] sm:$0xff] %v5166_v28 }
 0x73c   : > { %v5428_v45 = vpop.f32.mrf.mxu1  ;;  %v5168_v11 = vpop.f32.mrf.mxu0 }
 0x73d   : > { %5763 = vst.msk [vmem:[%s9599_s22 + $0x4b8] sm:$0xff] %vm5612_vm6, %v5428_v45  ;;  %5659 = vst.msk [vmem:[%s9599_s22 + $0x178] sm:$0xff] %vm5612_vm6, %v5168_v11 }
 0x73e   : > { %v5432_v42 = vpop.f32.mrf.mxu1  ;;  %v5172_v1 = vpop.f32.mrf.mxu0 }
 0x73f   : > { %5764 = vst [vmem:[%s9599_s22 + $0x4c0] sm:$0xff] %v5432_v42  ;;  %5660 = vst [vmem:[%s9599_s22 + $0x180] sm:$0xff] %v5172_v1 }
 0x740   : > { %v5434_v26 = vpop.f32.mrf.mxu1  ;;  %v5174_v44 = vpop.f32.mrf.mxu0 }
 0x741   : > { %5765 = vst.msk [vmem:[%s9599_s22 + $0x4c8] sm:$0xff] %vm5612_vm6, %v5434_v26  ;;  %5661 = vst.msk [vmem:[%s9599_s22 + $0x188] sm:$0xff] %vm5612_vm6, %v5174_v44 }
 0x742   : > { %v5436_v61 = vpop.f32.mrf.mxu1  ;;  %v5176_v6 = vpop.f32.mrf.mxu0 }
 0x743   : > { %5766 = vst [vmem:[%s9599_s22 + $0x4d0] sm:$0xff] %v5436_v61  ;;  %5662 = vst [vmem:[%s9599_s22 + $0x190] sm:$0xff] %v5176_v6 }
 0x744   : > { %v5438_v13 = vpop.f32.mrf.mxu1  ;;  %v5178_v21 = vpop.f32.mrf.mxu0 }
 0x745   : > { %5767 = vst.msk [vmem:[%s9599_s22 + $0x4d8] sm:$0xff] %vm5612_vm6, %v5438_v13  ;;  %5663 = vst.msk [vmem:[%s9599_s22 + $0x198] sm:$0xff] %vm5612_vm6, %v5178_v21 }
 0x746   : > { %v5442_v19 = vpop.f32.mrf.mxu1  ;;  %v5182_v9 = vpop.f32.mrf.mxu0 }
 0x747   : > { %5768 = vst [vmem:[%s9599_s22 + $0x4e0] sm:$0xff] %v5442_v19  ;;  %5664 = vst [vmem:[%s9599_s22 + $0x1a0] sm:$0xff] %v5182_v9 }
 0x748   : > { %v5444_v27 = vpop.f32.mrf.mxu1  ;;  %v5184_v24 = vpop.f32.mrf.mxu0 }
 0x749   : > { %5769 = vst.msk [vmem:[%s9599_s22 + $0x4e8] sm:$0xff] %vm5612_vm6, %v5444_v27  ;;  %5665 = vst.msk [vmem:[%s9599_s22 + $0x1a8] sm:$0xff] %vm5612_vm6, %v5184_v24 }
 0x74a   : > { %v5446_v46 = vpop.f32.mrf.mxu1  ;;  %v5186_v20 = vpop.f32.mrf.mxu0 }
 0x74b   : > { %5770 = vst [vmem:[%s9599_s22 + $0x4f0] sm:$0xff] %v5446_v46  ;;  %5666 = vst [vmem:[%s9599_s22 + $0x1b0] sm:$0xff] %v5186_v20 }
 0x74c   : > { %v5448_v31 = vpop.f32.mrf.mxu1  ;;  %v5188_v16 = vpop.f32.mrf.mxu0 }
 0x74d   : > { %5771 = vst.msk [vmem:[%s9599_s22 + $0x4f8] sm:$0xff] %vm5612_vm6, %v5448_v31  ;;  %5667 = vst.msk [vmem:[%s9599_s22 + $0x1b8] sm:$0xff] %vm5612_vm6, %v5188_v16 }
 0x74e   : > { %v5452_v2 = vpop.f32.mrf.mxu1  ;;  %v5192_v17 = vpop.f32.mrf.mxu0 }
 0x74f   : > { %5772 = vst [vmem:[%s9599_s22 + $0x500] sm:$0xff] %v5452_v2  ;;  %5668 = vst [vmem:[%s9599_s22 + $0x1c0] sm:$0xff] %v5192_v17 }
 0x750   : > { %v5454_v49 = vpop.f32.mrf.mxu1  ;;  %v5194_v12 = vpop.f32.mrf.mxu0 }
 0x751   : > { %5773 = vst.msk [vmem:[%s9599_s22 + $0x508] sm:$0xff] %vm5612_vm6, %v5454_v49  ;;  %5669 = vst.msk [vmem:[%s9599_s22 + $0x1c8] sm:$0xff] %vm5612_vm6, %v5194_v12 }
 0x752   : > { %v5456_v37 = vpop.f32.mrf.mxu1  ;;  %v5196_v56 = vpop.f32.mrf.mxu0 }
 0x753   : > { %5774 = vst [vmem:[%s9599_s22 + $0x510] sm:$0xff] %v5456_v37  ;;  %5670 = vst [vmem:[%s9599_s22 + $0x1d0] sm:$0xff] %v5196_v56 }
 0x754   : > { %v5458_v55 = vpop.f32.mrf.mxu1  ;;  %v5198_v34 = vpop.f32.mrf.mxu0 }
 0x755   : > { %5775 = vst.msk [vmem:[%s9599_s22 + $0x518] sm:$0xff] %vm5612_vm6, %v5458_v55  ;;  %5671 = vst.msk [vmem:[%s9599_s22 + $0x1d8] sm:$0xff] %vm5612_vm6, %v5198_v34 }
 0x756   : > { %v5462_v50 = vpop.f32.mrf.mxu1  ;;  %v5202_v57 = vpop.f32.mrf.mxu0 }
 0x757   : > { %5776 = vst [vmem:[%s9599_s22 + $0x520] sm:$0xff] %v5462_v50  ;;  %5672 = vst [vmem:[%s9599_s22 + $0x1e0] sm:$0xff] %v5202_v57 }
 0x758   : > { %v5464_v63 = vpop.f32.mrf.mxu1  ;;  %v5204_v43 = vpop.f32.mrf.mxu0 }
 0x759   : > { %5777 = vst.msk [vmem:[%s9599_s22 + $0x528] sm:$0xff] %vm5612_vm6, %v5464_v63  ;;  %5673 = vst.msk [vmem:[%s9599_s22 + $0x1e8] sm:$0xff] %vm5612_vm6, %v5204_v43 }
 0x75a   : > { %v5466_v54 = vpop.f32.mrf.mxu1  ;;  %v5206_v25 = vpop.f32.mrf.mxu0 }
 0x75b   : > { %5778 = vst [vmem:[%s9599_s22 + $0x530] sm:$0xff] %v5466_v54  ;;  %5674 = vst [vmem:[%s9599_s22 + $0x1f0] sm:$0xff] %v5206_v25 }
 0x75c   : > { %v5468_v40 = vpop.f32.mrf.mxu1  ;;  %v5208_v51 = vpop.f32.mrf.mxu0 }
 0x75d   : > { %5779 = vst.msk [vmem:[%s9599_s22 + $0x538] sm:$0xff] %vm5612_vm6, %v5468_v40  ;;  %5675 = vst.msk [vmem:[%s9599_s22 + $0x1f8] sm:$0xff] %vm5612_vm6, %v5208_v51 }
 0x75e   : > { %v5472_v30 = vpop.f32.mrf.mxu1  ;;  %v5212_v62 = vpop.f32.mrf.mxu0 }
 0x75f   : > { %5780 = vst [vmem:[%s9599_s22 + $0x540] sm:$0xff] %v5472_v30  ;;  %5676 = vst [vmem:[%s9599_s22 + $0x200] sm:$0xff] %v5212_v62 }
 0x760   : > { %v5474_v23 = vpop.f32.mrf.mxu1  ;;  %v5214_v3 = vpop.f32.mrf.mxu0 }
 0x761   : > { %5781 = vst.msk [vmem:[%s9599_s22 + $0x548] sm:$0xff] %vm5612_vm6, %v5474_v23  ;;  %5677 = vst.msk [vmem:[%s9599_s22 + $0x208] sm:$0xff] %vm5612_vm6, %v5214_v3 }
 0x762   : > { %v5476_v47 = vpop.f32.mrf.mxu1  ;;  %v5216_v33 = vpop.f32.mrf.mxu0 }
 0x763   : > { %5782 = vst [vmem:[%s9599_s22 + $0x550] sm:$0xff] %v5476_v47  ;;  %5678 = vst [vmem:[%s9599_s22 + $0x210] sm:$0xff] %v5216_v33 }
 0x764   : > { %v5478_v22 = vpop.f32.mrf.mxu1  ;;  %v5218_v39 = vpop.f32.mrf.mxu0 }
 0x765   : > { %5783 = vst.msk [vmem:[%s9599_s22 + $0x558] sm:$0xff] %vm5612_vm6, %v5478_v22  ;;  %5679 = vst.msk [vmem:[%s9599_s22 + $0x218] sm:$0xff] %vm5612_vm6, %v5218_v39 }
 0x766   : > { %v5482_v52 = vpop.f32.mrf.mxu1  ;;  %v5222_v5 = vpop.f32.mrf.mxu0 }
 0x767   : > { %5784 = vst [vmem:[%s9599_s22 + $0x560] sm:$0xff] %v5482_v52  ;;  %5680 = vst [vmem:[%s9599_s22 + $0x220] sm:$0xff] %v5222_v5 }
 0x768   : > { %v5484_v32 = vpop.f32.mrf.mxu1  ;;  %v5224_v59 = vpop.f32.mrf.mxu0 }
 0x769   : > { %5785 = vst.msk [vmem:[%s9599_s22 + $0x568] sm:$0xff] %vm5612_vm6, %v5484_v32  ;;  %5681 = vst.msk [vmem:[%s9599_s22 + $0x228] sm:$0xff] %vm5612_vm6, %v5224_v59 }
 0x76a   : > { %v5486_v41 = vpop.f32.mrf.mxu1  ;;  %v5226_v4 = vpop.f32.mrf.mxu0 }
 0x76b   : > { %5786 = vst [vmem:[%s9599_s22 + $0x570] sm:$0xff] %v5486_v41  ;;  %5682 = vst [vmem:[%s9599_s22 + $0x230] sm:$0xff] %v5226_v4 }
 0x76c   : > { %v5488_v8 = vpop.f32.mrf.mxu1  ;;  %v5228_v36 = vpop.f32.mrf.mxu0 }
 0x76d   : > { %5787 = vst.msk [vmem:[%s9599_s22 + $0x578] sm:$0xff] %vm5612_vm6, %v5488_v8  ;;  %5683 = vst.msk [vmem:[%s9599_s22 + $0x238] sm:$0xff] %vm5612_vm6, %v5228_v36 }
 0x76e   : > { %v5492_v18 = vpop.f32.mrf.mxu1  ;;  %v5232_v53 = vpop.f32.mrf.mxu0 }
 0x76f   : > { %5788 = vst [vmem:[%s9599_s22 + $0x580] sm:$0xff] %v5492_v18  ;;  %5684 = vst [vmem:[%s9599_s22 + $0x240] sm:$0xff] %v5232_v53 }
 0x770   : > { %v5494_v10 = vpop.f32.mrf.mxu1  ;;  %v5234_v7 = vpop.f32.mrf.mxu0 }
 0x771   : > { %5789 = vst.msk [vmem:[%s9599_s22 + $0x588] sm:$0xff] %vm5612_vm6, %v5494_v10  ;;  %5685 = vst.msk [vmem:[%s9599_s22 + $0x248] sm:$0xff] %vm5612_vm6, %v5234_v7 }
 0x772   : > { %v5496_v14 = vpop.f32.mrf.mxu1  ;;  %v5236_v29 = vpop.f32.mrf.mxu0 }
 0x773   : > { %5790 = vst [vmem:[%s9599_s22 + $0x590] sm:$0xff] %v5496_v14  ;;  %5686 = vst [vmem:[%s9599_s22 + $0x250] sm:$0xff] %v5236_v29 }
 0x774   : > { %v5498_v48 = vpop.f32.mrf.mxu1  ;;  %v5238_v35 = vpop.f32.mrf.mxu0 }
 0x775   : > { %5791 = vst.msk [vmem:[%s9599_s22 + $0x598] sm:$0xff] %vm5612_vm6, %v5498_v48  ;;  %5687 = vst.msk [vmem:[%s9599_s22 + $0x258] sm:$0xff] %vm5612_vm6, %v5238_v35 }
 0x776   : > { %v5502_v0 = vpop.f32.mrf.mxu1  ;;  %v5242_v15 = vpop.f32.mrf.mxu0 }
 0x777   : > { %5792 = vst [vmem:[%s9599_s22 + $0x5a0] sm:$0xff] %v5502_v0  ;;  %5688 = vst [vmem:[%s9599_s22 + $0x260] sm:$0xff] %v5242_v15 }
 0x778   : > { %v5504_v60 = vpop.f32.mrf.mxu1  ;;  %v5244_v38 = vpop.f32.mrf.mxu0 }
 0x779   : > { %5793 = vst.msk [vmem:[%s9599_s22 + $0x5a8] sm:$0xff] %vm5612_vm6, %v5504_v60  ;;  %5689 = vst.msk [vmem:[%s9599_s22 + $0x268] sm:$0xff] %vm5612_vm6, %v5244_v38 }
 0x77a   : > { %v5506_v58 = vpop.f32.mrf.mxu1  ;;  %v5246_v28 = vpop.f32.mrf.mxu0 }
 0x77b   : > { %5794 = vst [vmem:[%s9599_s22 + $0x5b0] sm:$0xff] %v5506_v58  ;;  %5690 = vst [vmem:[%s9599_s22 + $0x270] sm:$0xff] %v5246_v28 }
 0x77c   : > { %v5508_v45 = vpop.f32.mrf.mxu1  ;;  %v5248_v11 = vpop.f32.mrf.mxu0 }
 0x77d   : > { %5795 = vst.msk [vmem:[%s9599_s22 + $0x5b8] sm:$0xff] %vm5612_vm6, %v5508_v45  ;;  %5691 = vst.msk [vmem:[%s9599_s22 + $0x278] sm:$0xff] %vm5612_vm6, %v5248_v11 }
 0x77e   : > { %v5512_v42 = vpop.f32.mrf.mxu1  ;;  %v5252_v1 = vpop.f32.mrf.mxu0 }
 0x77f   : > { %5796 = vst [vmem:[%s9599_s22 + $0x5c0] sm:$0xff] %v5512_v42  ;;  %5692 = vst [vmem:[%s9599_s22 + $0x280] sm:$0xff] %v5252_v1 }
 0x780   : > { %v5514_v26 = vpop.f32.mrf.mxu1  ;;  %v5254_v44 = vpop.f32.mrf.mxu0 }
 0x781   : > { %5797 = vst.msk [vmem:[%s9599_s22 + $0x5c8] sm:$0xff] %vm5612_vm6, %v5514_v26  ;;  %5693 = vst.msk [vmem:[%s9599_s22 + $0x288] sm:$0xff] %vm5612_vm6, %v5254_v44 }
 0x782   : > { %v5516_v61 = vpop.f32.mrf.mxu1  ;;  %v5256_v6 = vpop.f32.mrf.mxu0 }
 0x783   : > { %5798 = vst [vmem:[%s9599_s22 + $0x5d0] sm:$0xff] %v5516_v61  ;;  %5694 = vst [vmem:[%s9599_s22 + $0x290] sm:$0xff] %v5256_v6 }
 0x784   : > { %v5518_v13 = vpop.f32.mrf.mxu1  ;;  %v5258_v21 = vpop.f32.mrf.mxu0 }
 0x785   : > { %5799 = vst.msk [vmem:[%s9599_s22 + $0x5d8] sm:$0xff] %vm5612_vm6, %v5518_v13  ;;  %5695 = vst.msk [vmem:[%s9599_s22 + $0x298] sm:$0xff] %vm5612_vm6, %v5258_v21 }
 0x786   : > { %v5522_v19 = vpop.f32.mrf.mxu1  ;;  %v5262_v9 = vpop.f32.mrf.mxu0 }
 0x787   : > { %5800 = vst [vmem:[%s9599_s22 + $0x5e0] sm:$0xff] %v5522_v19  ;;  %5696 = vst [vmem:[%s9599_s22 + $0x2a0] sm:$0xff] %v5262_v9 }
 0x788   : > { %v5524_v27 = vpop.f32.mrf.mxu1  ;;  %v5264_v24 = vpop.f32.mrf.mxu0 }
 0x789   : > { %5801 = vst.msk [vmem:[%s9599_s22 + $0x5e8] sm:$0xff] %vm5612_vm6, %v5524_v27  ;;  %5697 = vst.msk [vmem:[%s9599_s22 + $0x2a8] sm:$0xff] %vm5612_vm6, %v5264_v24 }
 0x78a   : > { %v5526_v46 = vpop.f32.mrf.mxu1  ;;  %v5266_v20 = vpop.f32.mrf.mxu0 }
 0x78b   : > { %5802 = vst [vmem:[%s9599_s22 + $0x5f0] sm:$0xff] %v5526_v46  ;;  %5698 = vst [vmem:[%s9599_s22 + $0x2b0] sm:$0xff] %v5266_v20 }
 0x78c   : > { %v5528_v31 = vpop.f32.mrf.mxu1  ;;  %v5268_v16 = vpop.f32.mrf.mxu0 }
 0x78d   : > { %5803 = vst.msk [vmem:[%s9599_s22 + $0x5f8] sm:$0xff] %vm5612_vm6, %v5528_v31  ;;  %5699 = vst.msk [vmem:[%s9599_s22 + $0x2b8] sm:$0xff] %vm5612_vm6, %v5268_v16 }
 0x78e   : > { %v5532_v2 = vpop.f32.mrf.mxu1  ;;  %v5272_v17 = vpop.f32.mrf.mxu0 }
 0x78f   : > { %5804 = vst [vmem:[%s9599_s22 + $0x600] sm:$0xff] %v5532_v2  ;;  %5700 = vst [vmem:[%s9599_s22 + $0x2c0] sm:$0xff] %v5272_v17 }
 0x790   : > { %v5534_v49 = vpop.f32.mrf.mxu1  ;;  %v5274_v12 = vpop.f32.mrf.mxu0 }
 0x791   : > { %5805 = vst.msk [vmem:[%s9599_s22 + $0x608] sm:$0xff] %vm5612_vm6, %v5534_v49  ;;  %5701 = vst.msk [vmem:[%s9599_s22 + $0x2c8] sm:$0xff] %vm5612_vm6, %v5274_v12 }
 0x792   : > { %v5536_v37 = vpop.f32.mrf.mxu1  ;;  %v5276_v56 = vpop.f32.mrf.mxu0 }
 0x793   : > { %5806 = vst [vmem:[%s9599_s22 + $0x610] sm:$0xff] %v5536_v37  ;;  %5702 = vst [vmem:[%s9599_s22 + $0x2d0] sm:$0xff] %v5276_v56 }
 0x794   : > { %v5538_v55 = vpop.f32.mrf.mxu1  ;;  %v5278_v34 = vpop.f32.mrf.mxu0 }
 0x795   : > { %5807 = vst.msk [vmem:[%s9599_s22 + $0x618] sm:$0xff] %vm5612_vm6, %v5538_v55  ;;  %5703 = vst.msk [vmem:[%s9599_s22 + $0x2d8] sm:$0xff] %vm5612_vm6, %v5278_v34 }
 0x796   : > { %v5542_v50 = vpop.f32.mrf.mxu1  ;;  %v5282_v57 = vpop.f32.mrf.mxu0 }
 0x797   : > { %5808 = vst [vmem:[%s9599_s22 + $0x620] sm:$0xff] %v5542_v50  ;;  %5704 = vst [vmem:[%s9599_s22 + $0x2e0] sm:$0xff] %v5282_v57 }
 0x798   : > { %v5544_v63 = vpop.f32.mrf.mxu1  ;;  %v5284_v43 = vpop.f32.mrf.mxu0 }
 0x799   : > { %5809 = vst.msk [vmem:[%s9599_s22 + $0x628] sm:$0xff] %vm5612_vm6, %v5544_v63  ;;  %5705 = vst.msk [vmem:[%s9599_s22 + $0x2e8] sm:$0xff] %vm5612_vm6, %v5284_v43 }
 0x79a   : > { %v5546_v54 = vpop.f32.mrf.mxu1  ;;  %v5286_v25 = vpop.f32.mrf.mxu0 }
 0x79b   : > { %5810 = vst [vmem:[%s9599_s22 + $0x630] sm:$0xff] %v5546_v54  ;;  %5706 = vst [vmem:[%s9599_s22 + $0x2f0] sm:$0xff] %v5286_v25 }
 0x79c   : > { %v5548_v40 = vpop.f32.mrf.mxu1  ;;  %v5288_v51 = vpop.f32.mrf.mxu0 }
 0x79d   : > { %5811 = vst.msk [vmem:[%s9599_s22 + $0x638] sm:$0xff] %vm5612_vm6, %v5548_v40  ;;  %5707 = vst.msk [vmem:[%s9599_s22 + $0x2f8] sm:$0xff] %vm5612_vm6, %v5288_v51 }
 0x79e   : > { %v5552_v30 = vpop.f32.mrf.mxu1  ;;  %v5292_v62 = vpop.f32.mrf.mxu0 }
 0x79f   : > { %5812 = vst [vmem:[%s9599_s22 + $0x640] sm:$0xff] %v5552_v30  ;;  %5708 = vst [vmem:[%s9599_s22 + $0x300] sm:$0xff] %v5292_v62 }
 0x7a0   : > { %v5554_v23 = vpop.f32.mrf.mxu1  ;;  %v5294_v3 = vpop.f32.mrf.mxu0 }
 0x7a1   : > { %5813 = vst.msk [vmem:[%s9599_s22 + $0x648] sm:$0xff] %vm5612_vm6, %v5554_v23  ;;  %5709 = vst.msk [vmem:[%s9599_s22 + $0x308] sm:$0xff] %vm5612_vm6, %v5294_v3 }
 0x7a2   : > { %v5556_v47 = vpop.f32.mrf.mxu1  ;;  %v5296_v33 = vpop.f32.mrf.mxu0 }
 0x7a3   : > { %5814 = vst [vmem:[%s9599_s22 + $0x650] sm:$0xff] %v5556_v47  ;;  %5710 = vst [vmem:[%s9599_s22 + $0x310] sm:$0xff] %v5296_v33 }
 0x7a4   : > { %v5558_v22 = vpop.f32.mrf.mxu1  ;;  %v5298_v39 = vpop.f32.mrf.mxu0 }
 0x7a5   : > { %5815 = vst.msk [vmem:[%s9599_s22 + $0x658] sm:$0xff] %vm5612_vm6, %v5558_v22  ;;  %5711 = vst.msk [vmem:[%s9599_s22 + $0x318] sm:$0xff] %vm5612_vm6, %v5298_v39 }
 0x7a6   : > { %v5562_v52 = vpop.f32.mrf.mxu1  ;;  %v5302_v5 = vpop.f32.mrf.mxu0 }
 0x7a7   : > { %5816 = vst [vmem:[%s9599_s22 + $0x660] sm:$0xff] %v5562_v52  ;;  %5712 = vst [vmem:[%s9599_s22 + $0x320] sm:$0xff] %v5302_v5 }
 0x7a8   : > { %v5564_v32 = vpop.f32.mrf.mxu1  ;;  %v5304_v59 = vpop.f32.mrf.mxu0 }
 0x7a9   : > { %5817 = vst.msk [vmem:[%s9599_s22 + $0x668] sm:$0xff] %vm5612_vm6, %v5564_v32  ;;  %5713 = vst.msk [vmem:[%s9599_s22 + $0x328] sm:$0xff] %vm5612_vm6, %v5304_v59 }
 0x7aa   : > { %v5566_v41 = vpop.f32.mrf.mxu1  ;;  %v5306_v4 = vpop.f32.mrf.mxu0 }
 0x7ab   : > { %5818 = vst [vmem:[%s9599_s22 + $0x670] sm:$0xff] %v5566_v41  ;;  %5714 = vst [vmem:[%s9599_s22 + $0x330] sm:$0xff] %v5306_v4 }
 0x7ac   : > { %v5568_v8 = vpop.f32.mrf.mxu1  ;;  %v5308_v36 = vpop.f32.mrf.mxu0 }
 0x7ad   : > { %5819 = vst.msk [vmem:[%s9599_s22 + $0x678] sm:$0xff] %vm5612_vm6, %v5568_v8  ;;  %5715 = vst.msk [vmem:[%s9599_s22 + $0x338] sm:$0xff] %vm5612_vm6, %v5308_v36 }
 0x7ae   : > { %v5572_v18 = vpop.f32.mrf.mxu1 }
 0x7af   : > { %5820 = vst [vmem:[%s9599_s22 + $0x680] sm:$0xff] %v5572_v18 }
 0x7b0   : > { %v5574_v53 = vpop.f32.mrf.mxu1 }
 0x7b1   : > { %5821 = vst.msk [vmem:[%s9599_s22 + $0x688] sm:$0xff] %vm5612_vm6, %v5574_v53 }
 0x7b2   : > { %v5576_v10 = vpop.f32.mrf.mxu1 }
 0x7b3   : > { %5822 = vst [vmem:[%s9599_s22 + $0x690] sm:$0xff] %v5576_v10 }
 0x7b4   : > { %v5578_v7 = vpop.f32.mrf.mxu1 }
 0x7b5   : > { %5823 = vst.msk [vmem:[%s9599_s22 + $0x698] sm:$0xff] %vm5612_vm6, %v5578_v7 }
 0x7b6   : > { %v5582_v14 = vpop.f32.mrf.mxu1 }
 0x7b7   : > { %5824 = vst [vmem:[%s9599_s22 + $0x6a0] sm:$0xff] %v5582_v14 }
 0x7b8   : > { %v5584_v29 = vpop.f32.mrf.mxu1 }
 0x7b9   : > { %5825 = vst.msk [vmem:[%s9599_s22 + $0x6a8] sm:$0xff] %vm5612_vm6, %v5584_v29 }
 0x7ba   : > { %v5586_v48 = vpop.f32.mrf.mxu1 }
 0x7bb   : > { %5826 = vst [vmem:[%s9599_s22 + $0x6b0] sm:$0xff] %v5586_v48 }
 0x7bc   : > { %v5588_v35 = vpop.f32.mrf.mxu1 }
 0x7bd   : > { %5827 = vst.msk [vmem:[%s9599_s22 + $0x6b8] sm:$0xff] %vm5612_vm6, %v5588_v35 }
 0x7be   : > { %v5592_v0 = vpop.f32.mrf.mxu1 }
 0x7bf   : > { %5828 = vst [vmem:[%s9599_s22 + $0x6c0] sm:$0xff] %v5592_v0 }
 0x7c0   : > { %v5594_v15 = vpop.f32.mrf.mxu1 }
 0x7c1   : > { %5829 = vst.msk [vmem:[%s9599_s22 + $0x6c8] sm:$0xff] %vm5612_vm6, %v5594_v15 }
 0x7c2   : > { %v5596_v60 = vpop.f32.mrf.mxu1 }
 0x7c3   : > { %5830 = vst [vmem:[%s9599_s22 + $0x6d0] sm:$0xff] %v5596_v60 }
 0x7c4   : > { %v5598_v38 = vpop.f32.mrf.mxu1 }
 0x7c5   : > { %5831 = vst.msk [vmem:[%s9599_s22 + $0x6d8] sm:$0xff] %vm5612_vm6, %v5598_v38 }
 0x7c6   : > { %v5602_v58 = vpop.f32.mrf.mxu1 }
 0x7c7   : > { %5832 = vst [vmem:[%s9599_s22 + $0x6e0] sm:$0xff] %v5602_v58 }
 0x7c8   : > { %v5604_v28 = vpop.f32.mrf.mxu1 }
 0x7c9   : > { %5833 = vst.msk [vmem:[%s9599_s22 + $0x6e8] sm:$0xff] %vm5612_vm6, %v5604_v28 }
 0x7ca   : > { %v5606_v45 = vpop.f32.mrf.mxu1 }
 0x7cb   : > { %5834 = vst [vmem:[%s9599_s22 + $0x6f0] sm:$0xff] %v5606_v45 }
 0x7cc   : > { %v5608_v11 = vpop.f32.mrf.mxu1 }
 0x7cd   : > { %5835 = vst.msk [vmem:[%s9599_s22 + $0x6f8] sm:$0xff] %vm5612_vm6, %v5608_v11 }
 0x7ce   : > { %6755 = shalt.err (!%p6752_p3)
}
 0x7cf   : > { %s6756_s14 = scalar_lea.hbm %s9969_s13, 28672  ;;  %s6760_s23 = scalar_lea.hbm %s10026_s7, 57344 }
 0x7d0   : > { %p6757_p4 = scmp.ne.s32.totalorder %s9969_s13, %s6756_s14  ;;  %p6761_p9 = scmp.lt.s32.totalorder %s9969_s13, %s10026_s7 }
 0x7d1   : > { %p6762_p10 = scmp.lt.s32.totalorder %s6760_s23, %s6756_s14 }
 0x7d2   : > { %p6758_p7 = pnand %p6757_p4, %p6900_p5 }
 0x7d3   : > { %p6763_p11 = por %p6762_p10, %p6761_p9 }
 0x7d4   : > { %p6759_p8 = pneg %p6758_p7 }
 0x7d6   : > { %p6764_p12 = pnand %p6763_p11, %p6759_p8 }
 0x7d8   : > { %6767 = shalt.err (!%p6764_p12)
}
 0x7d9   : > { %s6821_s9 = smov 256  }
 0x7da   : > { %6462 = dma.vmem_to_hbm [thread:$0]  (%p6900_p5), %s9972_s29, 28672, %s9969_s13, %s9978_s28, %s6821_s9, %s6821_s9, %s6808_s21  }
 0x7db PF: > { %p6468_p13 = scmp.ge.s32.totalorder %s6802_s27, 2  ;;  %s5865_s15 = sand.u32 1, %s6790_s24  }
 0x7dc   : > { %s5866_s16 = scalar_lea.sflag [#allocation3], %s5865_s15 }
 0x7dd   : > { %p6465_p0 = pnand %p6468_p13, %p6904_p6 }
 0x7df   : > { %p6466_p1 = pneg %p6465_p0 }
 0x7e1   : > { %6785 = dma.done.wait (%p6466_p1), %s5866_s16, 28672  }
 0x7e2   : > { %6787 = vsyncadd (%p6466_p1), %s5866_s16, 4294938624  ;;  %p17_p2 = scmp.ge.s32.totalorder %s6887_s30, 4   ;;  %s10557_s24 = smov %s6794_s25 }
 0x7e3   : > { %s10558_s25 = smov %s6798_s26  ;;  %s10559_s26 = smov %s6898_s10 }
 0x7e4   : > { %s10560_s27 = smov %s6887_s30  ;;  %19 = sbr.rel (!%p17_p2) target bundleno = 3 (0x3), region = 91 }
 0x7e9   :  { %5871 = vsyncpa [#allocation3], 1 }
 0x7ea   :  { %5873 = vsyncpa [#allocation3 + $0x1], 1 }

</bundles_post_ra>
